<compile_context>
chip_gen: v6e
topology: v6e:2x2x1
jax: 0.10.0
libtpu: 0.0.40
codegen_flags: <defaults>
</compile_context>

<pallas_src>
import jax
import jax.numpy as jnp
import numpy as np
from jax.experimental import pallas as pl
from jax.experimental.pallas import tpu as pltpu


def _round_up(x, m):
    return (x + m - 1) // m * m


def _pad_to(x, shape):
    return jnp.pad(x, [(0, t - s) for s, t in zip(x.shape, shape)])


def _summarization_kernel(tok_ref, scale_ref, emb_t_ref, w1_t_ref, b1_ref,
                          w2_ref, b2_ref, out_ref, counts_ref):
    """One row-tile of TILE_M sentences; sentence axis is the lane (fast) axis.

    tok_ref    : (W, TILE_M)       int32 token ids (pad_index-padded)
    scale_ref  : (1, TILE_M)       f32   fused (1 - pad_mask) / sentence_length
    emb_t_ref  : (D_pad, V_pad)    embedding table, transposed, pad column zeroed
    w1_t_ref   : (H_pad, D_pad)    extractor layer-1 weight, transposed
    b1_ref     : (H_pad, 1)        layer-1 bias (column)
    w2_ref     : (H_pad, 1)        layer-2 weight (column)
    b2_ref     : (1, 1)            layer-2 bias
    out_ref    : (1, TILE_M)       per-sentence logits (lane-dense store)
    counts_ref : (V_pad, TILE_M)   VMEM scratch, bag-of-words counts
    """
    W, tile_m = tok_ref.shape
    v_pad = emb_t_ref.shape[1]
    cdtype = emb_t_ref.dtype

    # ---- Phase 1: bag-of-words counts  counts[v, m] = #{w : tok[w, m] == v}.
    # Built 128 lanes at a time into VMEM scratch so the live vreg set of the
    # VALU-heavy compare/add loop stays well under the register file even at
    # tile_m = 512.  Counts are exact small integers (<= W), so accumulating
    # directly in the embedding dtype is lossless and avoids a cast pass.
    C1 = 128
    vocab_id = jax.lax.broadcasted_iota(jnp.int32, (v_pad, C1), 0)  # hoisted
    for c in range(tile_m // C1):
        lo, hi = c * C1, (c + 1) * C1
        tok_c = tok_ref[:, lo:hi]                                   # (W, C1)
        cnt = jnp.zeros((v_pad, C1), cdtype)
        for w in range(W):
            cnt = cnt + (tok_c[w:w + 1, :] == vocab_id).astype(cdtype)
        counts_ref[:, lo:hi] = cnt
    # Pad tokens hit the (wrapper-zeroed) pad column of emb_t, so no in-kernel
    # masking pass is needed for nn.Embedding(padding_idx) semantics.

    # ---- Phase 2: word-axis sum as an MXU contraction + extractor MLP,
    # 256 lanes at a time (fills the 256-wide MXU output columns on v6e/v7x
    # while keeping sent/h register pressure bounded).
    C2 = 256 if tile_m % 256 == 0 else 128
    for c in range(tile_m // C2):
        sl = slice(c * C2, (c + 1) * C2)
        # (D_pad, V_pad) @ (V_pad, C2) -> (D_pad, C2); the (W, D)-expanded
        # gather is never materialized anywhere.
        sent = jnp.dot(emb_t_ref[...], counts_ref[:, sl],
                       preferred_element_type=jnp.float32)
        # Fused averaging + sentence pad mask: scale = (1 - mask) / length.
        sent = sent * scale_ref[:, sl]

        # Extractor hidden layer on the MXU.
        h = jnp.dot(w1_t_ref[...], sent.astype(w1_t_ref.dtype),
                    preferred_element_type=jnp.float32) + b1_ref[...]
        h = jnp.maximum(h, 0.0)                                     # (H_pad, C2)

        # N=1 output projection: VPU multiply + sublane reduce (no wasted MXU
        # pass); the result is lane-major, so the store is a dense (1, C2) row.
        out_ref[:, sl] = (jnp.sum(h * w2_ref[...], axis=0, keepdims=True)
                          + b2_ref[...])


def summarization_forward(documents, sentence_lengths, params,
                          pad_index=0, mask_logits=False,
                          param_dtype=jnp.float32, tile_m=512):
    """documents: (B, S, W) int32 token ids; sentence_lengths: (B, S) int32.

    param_dtype=jnp.bfloat16 is the v6e/v7x fast path (halves weight footprint,
    doubles MXU rate); the f32 default keeps 1e-5-level exactness vs. reference.
    """
    emb = params["embedding"]                     # (V, D)
    w1, b1, w2, b2 = params["w1"], params["b1"], params["w2"], params["b2"]

    B, S, W = documents.shape
    V, D = emb.shape
    H = w1.shape[1]

    M = B * S
    # Biggest lane tile the row count allows, but keep >= 2 grid steps whenever
    # M > 128 so the "parallel" axis actually feeds both TensorCores on v7x.
    m_ceil = _round_up(M, 128)
    half = max(128, _round_up(m_ceil // 2, 128))
    tile_m = max(128, min(_round_up(tile_m, 128), half))
    n_tiles = pl.cdiv(M, tile_m)
    M_pad = n_tiles * tile_m

    V_pad, D_pad = _round_up(V, 128), _round_up(D, 128)
    H_pad = _round_up(H, 8)   # H only ever sits on sublane axes -> 8-align

    # ---- parameter prep (tiny, XLA): zero-pad to MXU/lane-friendly sizes and
    # transpose so the sentence axis is the lane axis everywhere.  The pad_index
    # row is explicitly zeroed (nn.Embedding(padding_idx) semantics) so the
    # kernel needs no masking pass for pad tokens.
    emb_z = emb.astype(param_dtype).at[pad_index].set(0)
    emb_t = _pad_to(emb_z, (V_pad, D_pad)).T                     # (D_pad, V_pad)
    w1_t = _pad_to(w1.astype(param_dtype), (D_pad, H_pad)).T     # (H_pad, D_pad)
    b1_c = _pad_to(b1.astype(jnp.float32), (1, H_pad)).T         # (H_pad, 1)
    w2_c = _pad_to(w2.astype(jnp.float32), (H_pad, 1))           # (H_pad, 1)
    b2_c = b2.astype(jnp.float32).reshape(1, 1)                  # (1, 1)

    # ---- per-sentence prep: only int32 ids + one f32 scalar per sentence cross
    # HBM (never a (B, S, W, D) float gather).
    tok = documents.reshape(M, W)
    tok = jnp.pad(tok, ((0, M_pad - M), (0, 0)), constant_values=pad_index)
    tok_t = tok.T.astype(jnp.int32)                              # (W, M_pad)

    sent_pad_mask = documents[:, :, 0] == pad_index              # (B, S)
    lengths = jnp.maximum(sentence_lengths.reshape(M), 1).astype(jnp.float32)
    scale = jnp.where(sent_pad_mask.reshape(M), 0.0, 1.0 / lengths)
    scale = jnp.pad(scale, (0, M_pad - M)).reshape(1, M_pad)     # (1, M_pad)

    out = pl.pallas_call(
        _summarization_kernel,
        out_shape=jax.ShapeDtypeStruct((1, M_pad), jnp.float32),
        grid_spec=pltpu.PrefetchScalarGridSpec(
            num_scalar_prefetch=0,
            grid=(n_tiles,),
            in_specs=[
                pl.BlockSpec((W, tile_m), lambda i: (0, i)),      # token ids
                pl.BlockSpec((1, tile_m), lambda i: (0, i)),      # per-sentence scale
                pl.BlockSpec((D_pad, V_pad), lambda i: (0, 0)),   # embedding (T)
                pl.BlockSpec((H_pad, D_pad), lambda i: (0, 0)),   # w1 (T)
                pl.BlockSpec((H_pad, 1), lambda i: (0, 0)),       # b1
                pl.BlockSpec((H_pad, 1), lambda i: (0, 0)),       # w2
                pl.BlockSpec((1, 1), lambda i: (0, 0)),           # b2
            ],
            out_specs=pl.BlockSpec((1, tile_m), lambda i: (0, i)),
            scratch_shapes=[pltpu.VMEM((V_pad, tile_m), param_dtype)],
        ),
        compiler_params=pltpu.CompilerParams(
            dimension_semantics=("parallel",),   # row tiles shard across TCs (v7x)
            vmem_limit_bytes=32 * 1024 * 1024,   # headroom for bigger vocab/tiles
        ),
    )(tok_t, scale, emb_t, w1_t, b1_c, w2_c, b2_c)

    logits = out[0, :M].reshape(B, S)
    if mask_logits:
        logits = jnp.where(sent_pad_mask, -jnp.inf, logits)
    return logits


def _reference_forward(documents, sentence_lengths, params, pad_index=0,
                       mask_logits=False):
    """Pure-JAX reference mirroring the PyTorch forward (default args)."""
    emb_table = params["embedding"]
    tok_emb = emb_table[documents].astype(jnp.float32)           # (B, S, W, D)
    lengths = jnp.maximum(sentence_lengths, 1).astype(jnp.float32)[..., None]
    sent = jnp.sum(tok_emb, axis=2) / lengths
    mask = (documents[:, :, 0] == pad_index)[..., None]
    sent = jnp.where(mask, 0.0, sent)
    hp = jax.lax.Precision.HIGHEST
    h = jnp.maximum(jnp.dot(sent, params["w1"], precision=hp) + params["b1"], 0.0)
    logits = (jnp.dot(h, params["w2"], precision=hp) + params["b2"])[..., 0]
    if mask_logits:
        logits = jnp.where(mask[..., 0], -jnp.inf, logits)
    return logits


def _init_params(key, vocab, D, H, pad_index=0):
    k1, k2, k3 = jax.random.split(key, 3)
    emb = jax.random.normal(k1, (vocab, D), jnp.float32) * 0.1
    emb = emb.at[pad_index].set(0.0)                  # padding_idx -> zero vector
    w1 = jax.random.normal(k2, (D, H), jnp.float32) * (1.0 / np.sqrt(D))
    b1 = jnp.zeros((1, H), jnp.float32)
    w2 = jax.random.normal(k3, (H, 1), jnp.float32) * (1.0 / np.sqrt(H))
    b2 = jnp.zeros((1, 1), jnp.float32)
    return {"embedding": emb, "w1": w1, "b1": b1, "w2": w2, "b2": b2}


if __name__ == "__main__":
    B, S, W, D, H = 8, 128, 8, 32, 32        # 1024 sentences -> 2 row tiles of 512
    VOCAB, PAD = 64, 0

    key = jax.random.PRNGKey(0)
    kp, kt, kl = jax.random.split(key, 3)

    params = _init_params(kp, VOCAB, D, H, pad_index=PAD)

    # Ragged documents (sentences padded with PAD token beyond their length,
    # documents padded with all-PAD sentences beyond num_sentences).
    num_sentences = jnp.array([S, 96, 40, 17, 1, 64, 100, 5], dtype=jnp.int32)
    raw_lengths = jax.random.randint(kl, (B, S), 1, W + 1)        # 1..W
    sent_idx = jnp.arange(S)[None, :]
    sentence_lengths = jnp.where(sent_idx < num_sentences[:, None],
                                 raw_lengths, 0).astype(jnp.int32)

    raw_tokens = jax.random.randint(kt, (B, S, W), 1, VOCAB)      # non-pad ids
    word_idx = jnp.arange(W)[None, None, :]
    documents = jnp.where(word_idx < sentence_lengths[..., None],
                          raw_tokens, PAD).astype(jnp.int32)

    logits = summarization_forward(documents, sentence_lengths, params,
                                   pad_index=PAD, mask_logits=False)
    logits = jax.block_until_ready(logits)

    ref = _reference_forward(documents, sentence_lengths, params, pad_index=PAD)
    np.testing.assert_allclose(np.asarray(logits), np.asarray(ref),
                               rtol=1e-4, atol=1e-5)

    # TODO(synk): predict()'s top-k sentence/text selection and _prepare_input's
    # ragged packing are host-side Python control flow over string/list data and
    # are not TPU kernel concerns; only forward() is kernelized.
    print("KERNEL_OK")
</pallas_src>

<mosaic_0001>
module attributes {stable_mosaic.version = 11 : i64} {
  func.func @_summarization_kernel(%arg0: i32, %arg1: memref<8x512xi32, #tpu.memory_space<vmem>>, %arg2: memref<1x512xf32, #tpu.memory_space<vmem>>, %arg3: memref<128x128xf32, #tpu.memory_space<vmem>>, %arg4: memref<32x128xf32, #tpu.memory_space<vmem>>, %arg5: memref<32x1xf32, #tpu.memory_space<vmem>>, %arg6: memref<32x1xf32, #tpu.memory_space<vmem>>, %arg7: memref<1x1xf32, #tpu.memory_space<vmem>>, %arg8: memref<1x512xf32, #tpu.memory_space<vmem>>, %arg9: memref<128x512xf32, #tpu.memory_space<vmem>>) attributes {dimension_semantics = [#tpu.dimension_semantics<parallel>], iteration_bounds = array<i64: 2>, scalar_prefetch = 0 : i64, scratch_operands = 1 : i64, tpu.core_type = #tpu.core_type<tc>, window_params = [{transform_indices = @transform_0, window_bounds = array<i64: 8, 512>}, {transform_indices = @transform_1, window_bounds = array<i64: 1, 512>}, {pipeline_mode = #tpu.pipeline_mode<synchronous>, transform_indices = @transform_2, window_bounds = array<i64: 128, 128>}, {pipeline_mode = #tpu.pipeline_mode<synchronous>, transform_indices = @transform_3, window_bounds = array<i64: 32, 128>}, {pipeline_mode = #tpu.pipeline_mode<synchronous>, transform_indices = @transform_4, window_bounds = array<i64: 32, 1>}, {pipeline_mode = #tpu.pipeline_mode<synchronous>, transform_indices = @transform_5, window_bounds = array<i64: 32, 1>}, {pipeline_mode = #tpu.pipeline_mode<synchronous>, transform_indices = @transform_6, window_bounds = array<i64: 1, 1>}, {transform_indices = @transform_7, window_bounds = array<i64: 1, 512>}]} {
    %0 = tpu.iota {dimensions = array<i32: 0>} : vector<128x128xi32>
    %c0 = arith.constant 0 : index
    %c0_0 = arith.constant 0 : index
    %1 = vector.load %arg1[%c0, %c0_0] : memref<8x512xi32, #tpu.memory_space<vmem>>, vector<8x128xi32>
    %cst = arith.constant 0.000000e+00 : f32
    %2 = vector.broadcast %cst : f32 to vector<128x128xf32>
    %3 = vector.extract_strided_slice %1 {offsets = [0, 0], sizes = [1, 128], strides = [1, 1]} : vector<8x128xi32> to vector<1x128xi32>
    %4 = vector.broadcast %3 : vector<1x128xi32> to vector<128x128xi32>
    %5 = arith.cmpi eq, %4, %0 : vector<128x128xi32>
    %6 = arith.extui %5 : vector<128x128xi1> to vector<128x128xi32>
    %7 = arith.sitofp %6 : vector<128x128xi32> to vector<128x128xf32>
    %8 = arith.addf %2, %7 : vector<128x128xf32>
    %9 = vector.extract_strided_slice %1 {offsets = [1, 0], sizes = [1, 128], strides = [1, 1]} : vector<8x128xi32> to vector<1x128xi32>
    %10 = vector.broadcast %9 : vector<1x128xi32> to vector<128x128xi32>
    %11 = arith.cmpi eq, %10, %0 : vector<128x128xi32>
    %12 = arith.extui %11 : vector<128x128xi1> to vector<128x128xi32>
    %13 = arith.sitofp %12 : vector<128x128xi32> to vector<128x128xf32>
    %14 = arith.addf %8, %13 : vector<128x128xf32>
    %15 = vector.extract_strided_slice %1 {offsets = [2, 0], sizes = [1, 128], strides = [1, 1]} : vector<8x128xi32> to vector<1x128xi32>
    %16 = vector.broadcast %15 : vector<1x128xi32> to vector<128x128xi32>
    %17 = arith.cmpi eq, %16, %0 : vector<128x128xi32>
    %18 = arith.extui %17 : vector<128x128xi1> to vector<128x128xi32>
    %19 = arith.sitofp %18 : vector<128x128xi32> to vector<128x128xf32>
    %20 = arith.addf %14, %19 : vector<128x128xf32>
    %21 = vector.extract_strided_slice %1 {offsets = [3, 0], sizes = [1, 128], strides = [1, 1]} : vector<8x128xi32> to vector<1x128xi32>
    %22 = vector.broadcast %21 : vector<1x128xi32> to vector<128x128xi32>
    %23 = arith.cmpi eq, %22, %0 : vector<128x128xi32>
    %24 = arith.extui %23 : vector<128x128xi1> to vector<128x128xi32>
    %25 = arith.sitofp %24 : vector<128x128xi32> to vector<128x128xf32>
    %26 = arith.addf %20, %25 : vector<128x128xf32>
    %27 = vector.extract_strided_slice %1 {offsets = [4, 0], sizes = [1, 128], strides = [1, 1]} : vector<8x128xi32> to vector<1x128xi32>
    %28 = vector.broadcast %27 : vector<1x128xi32> to vector<128x128xi32>
    %29 = arith.cmpi eq, %28, %0 : vector<128x128xi32>
    %30 = arith.extui %29 : vector<128x128xi1> to vector<128x128xi32>
    %31 = arith.sitofp %30 : vector<128x128xi32> to vector<128x128xf32>
    %32 = arith.addf %26, %31 : vector<128x128xf32>
    %33 = vector.extract_strided_slice %1 {offsets = [5, 0], sizes = [1, 128], strides = [1, 1]} : vector<8x128xi32> to vector<1x128xi32>
    %34 = vector.broadcast %33 : vector<1x128xi32> to vector<128x128xi32>
    %35 = arith.cmpi eq, %34, %0 : vector<128x128xi32>
    %36 = arith.extui %35 : vector<128x128xi1> to vector<128x128xi32>
    %37 = arith.sitofp %36 : vector<128x128xi32> to vector<128x128xf32>
    %38 = arith.addf %32, %37 : vector<128x128xf32>
    %39 = vector.extract_strided_slice %1 {offsets = [6, 0], sizes = [1, 128], strides = [1, 1]} : vector<8x128xi32> to vector<1x128xi32>
    %40 = vector.broadcast %39 : vector<1x128xi32> to vector<128x128xi32>
    %41 = arith.cmpi eq, %40, %0 : vector<128x128xi32>
    %42 = arith.extui %41 : vector<128x128xi1> to vector<128x128xi32>
    %43 = arith.sitofp %42 : vector<128x128xi32> to vector<128x128xf32>
    %44 = arith.addf %38, %43 : vector<128x128xf32>
    %45 = vector.extract_strided_slice %1 {offsets = [7, 0], sizes = [1, 128], strides = [1, 1]} : vector<8x128xi32> to vector<1x128xi32>
    %46 = vector.broadcast %45 : vector<1x128xi32> to vector<128x128xi32>
    %47 = arith.cmpi eq, %46, %0 : vector<128x128xi32>
    %48 = arith.extui %47 : vector<128x128xi1> to vector<128x128xi32>
    %49 = arith.sitofp %48 : vector<128x128xi32> to vector<128x128xf32>
    %50 = arith.addf %44, %49 : vector<128x128xf32>
    %c0_1 = arith.constant 0 : index
    %c0_2 = arith.constant 0 : index
    %51 = vector.load %arg9[%c0_1, %c0_2] : memref<128x512xf32, #tpu.memory_space<vmem>>, vector<128x128xf32>
    tpu.vector_store %arg9[%c0_1, %c0_2], %50 {strides = array<i32>} : memref<128x512xf32, #tpu.memory_space<vmem>>, vector<128x128xf32>,
    %c0_3 = arith.constant 0 : index
    %c128 = arith.constant 128 : index
    %52 = vector.load %arg1[%c0_3, %c128] : memref<8x512xi32, #tpu.memory_space<vmem>>, vector<8x128xi32>
    %cst_4 = arith.constant 0.000000e+00 : f32
    %53 = vector.broadcast %cst_4 : f32 to vector<128x128xf32>
    %54 = vector.extract_strided_slice %52 {offsets = [0, 0], sizes = [1, 128], strides = [1, 1]} : vector<8x128xi32> to vector<1x128xi32>
    %55 = vector.broadcast %54 : vector<1x128xi32> to vector<128x128xi32>
    %56 = arith.cmpi eq, %55, %0 : vector<128x128xi32>
    %57 = arith.extui %56 : vector<128x128xi1> to vector<128x128xi32>
    %58 = arith.sitofp %57 : vector<128x128xi32> to vector<128x128xf32>
    %59 = arith.addf %53, %58 : vector<128x128xf32>
    %60 = vector.extract_strided_slice %52 {offsets = [1, 0], sizes = [1, 128], strides = [1, 1]} : vector<8x128xi32> to vector<1x128xi32>
    %61 = vector.broadcast %60 : vector<1x128xi32> to vector<128x128xi32>
    %62 = arith.cmpi eq, %61, %0 : vector<128x128xi32>
    %63 = arith.extui %62 : vector<128x128xi1> to vector<128x128xi32>
    %64 = arith.sitofp %63 : vector<128x128xi32> to vector<128x128xf32>
    %65 = arith.addf %59, %64 : vector<128x128xf32>
    %66 = vector.extract_strided_slice %52 {offsets = [2, 0], sizes = [1, 128], strides = [1, 1]} : vector<8x128xi32> to vector<1x128xi32>
    %67 = vector.broadcast %66 : vector<1x128xi32> to vector<128x128xi32>
    %68 = arith.cmpi eq, %67, %0 : vector<128x128xi32>
    %69 = arith.extui %68 : vector<128x128xi1> to vector<128x128xi32>
    %70 = arith.sitofp %69 : vector<128x128xi32> to vector<128x128xf32>
    %71 = arith.addf %65, %70 : vector<128x128xf32>
    %72 = vector.extract_strided_slice %52 {offsets = [3, 0], sizes = [1, 128], strides = [1, 1]} : vector<8x128xi32> to vector<1x128xi32>
    %73 = vector.broadcast %72 : vector<1x128xi32> to vector<128x128xi32>
    %74 = arith.cmpi eq, %73, %0 : vector<128x128xi32>
    %75 = arith.extui %74 : vector<128x128xi1> to vector<128x128xi32>
    %76 = arith.sitofp %75 : vector<128x128xi32> to vector<128x128xf32>
    %77 = arith.addf %71, %76 : vector<128x128xf32>
    %78 = vector.extract_strided_slice %52 {offsets = [4, 0], sizes = [1, 128], strides = [1, 1]} : vector<8x128xi32> to vector<1x128xi32>
    %79 = vector.broadcast %78 : vector<1x128xi32> to vector<128x128xi32>
    %80 = arith.cmpi eq, %79, %0 : vector<128x128xi32>
    %81 = arith.extui %80 : vector<128x128xi1> to vector<128x128xi32>
    %82 = arith.sitofp %81 : vector<128x128xi32> to vector<128x128xf32>
    %83 = arith.addf %77, %82 : vector<128x128xf32>
    %84 = vector.extract_strided_slice %52 {offsets = [5, 0], sizes = [1, 128], strides = [1, 1]} : vector<8x128xi32> to vector<1x128xi32>
    %85 = vector.broadcast %84 : vector<1x128xi32> to vector<128x128xi32>
    %86 = arith.cmpi eq, %85, %0 : vector<128x128xi32>
    %87 = arith.extui %86 : vector<128x128xi1> to vector<128x128xi32>
    %88 = arith.sitofp %87 : vector<128x128xi32> to vector<128x128xf32>
    %89 = arith.addf %83, %88 : vector<128x128xf32>
    %90 = vector.extract_strided_slice %52 {offsets = [6, 0], sizes = [1, 128], strides = [1, 1]} : vector<8x128xi32> to vector<1x128xi32>
    %91 = vector.broadcast %90 : vector<1x128xi32> to vector<128x128xi32>
    %92 = arith.cmpi eq, %91, %0 : vector<128x128xi32>
    %93 = arith.extui %92 : vector<128x128xi1> to vector<128x128xi32>
    %94 = arith.sitofp %93 : vector<128x128xi32> to vector<128x128xf32>
    %95 = arith.addf %89, %94 : vector<128x128xf32>
    %96 = vector.extract_strided_slice %52 {offsets = [7, 0], sizes = [1, 128], strides = [1, 1]} : vector<8x128xi32> to vector<1x128xi32>
    %97 = vector.broadcast %96 : vector<1x128xi32> to vector<128x128xi32>
    %98 = arith.cmpi eq, %97, %0 : vector<128x128xi32>
    %99 = arith.extui %98 : vector<128x128xi1> to vector<128x128xi32>
    %100 = arith.sitofp %99 : vector<128x128xi32> to vector<128x128xf32>
    %101 = arith.addf %95, %100 : vector<128x128xf32>
    %c0_5 = arith.constant 0 : index
    %c128_6 = arith.constant 128 : index
    %102 = vector.load %arg9[%c0_5, %c128_6] : memref<128x512xf32, #tpu.memory_space<vmem>>, vector<128x128xf32>
    tpu.vector_store %arg9[%c0_5, %c128_6], %101 {strides = array<i32>} : memref<128x512xf32, #tpu.memory_space<vmem>>, vector<128x128xf32>,
    %c0_7 = arith.constant 0 : index
    %c256 = arith.constant 256 : index
    %103 = vector.load %arg1[%c0_7, %c256] : memref<8x512xi32, #tpu.memory_space<vmem>>, vector<8x128xi32>
    %cst_8 = arith.constant 0.000000e+00 : f32
    %104 = vector.broadcast %cst_8 : f32 to vector<128x128xf32>
    %105 = vector.extract_strided_slice %103 {offsets = [0, 0], sizes = [1, 128], strides = [1, 1]} : vector<8x128xi32> to vector<1x128xi32>
    %106 = vector.broadcast %105 : vector<1x128xi32> to vector<128x128xi32>
    %107 = arith.cmpi eq, %106, %0 : vector<128x128xi32>
    %108 = arith.extui %107 : vector<128x128xi1> to vector<128x128xi32>
    %109 = arith.sitofp %108 : vector<128x128xi32> to vector<128x128xf32>
    %110 = arith.addf %104, %109 : vector<128x128xf32>
    %111 = vector.extract_strided_slice %103 {offsets = [1, 0], sizes = [1, 128], strides = [1, 1]} : vector<8x128xi32> to vector<1x128xi32>
    %112 = vector.broadcast %111 : vector<1x128xi32> to vector<128x128xi32>
    %113 = arith.cmpi eq, %112, %0 : vector<128x128xi32>
    %114 = arith.extui %113 : vector<128x128xi1> to vector<128x128xi32>
    %115 = arith.sitofp %114 : vector<128x128xi32> to vector<128x128xf32>
    %116 = arith.addf %110, %115 : vector<128x128xf32>
    %117 = vector.extract_strided_slice %103 {offsets = [2, 0], sizes = [1, 128], strides = [1, 1]} : vector<8x128xi32> to vector<1x128xi32>
    %118 = vector.broadcast %117 : vector<1x128xi32> to vector<128x128xi32>
    %119 = arith.cmpi eq, %118, %0 : vector<128x128xi32>
    %120 = arith.extui %119 : vector<128x128xi1> to vector<128x128xi32>
    %121 = arith.sitofp %120 : vector<128x128xi32> to vector<128x128xf32>
    %122 = arith.addf %116, %121 : vector<128x128xf32>
    %123 = vector.extract_strided_slice %103 {offsets = [3, 0], sizes = [1, 128], strides = [1, 1]} : vector<8x128xi32> to vector<1x128xi32>
    %124 = vector.broadcast %123 : vector<1x128xi32> to vector<128x128xi32>
    %125 = arith.cmpi eq, %124, %0 : vector<128x128xi32>
    %126 = arith.extui %125 : vector<128x128xi1> to vector<128x128xi32>
    %127 = arith.sitofp %126 : vector<128x128xi32> to vector<128x128xf32>
    %128 = arith.addf %122, %127 : vector<128x128xf32>
    %129 = vector.extract_strided_slice %103 {offsets = [4, 0], sizes = [1, 128], strides = [1, 1]} : vector<8x128xi32> to vector<1x128xi32>
    %130 = vector.broadcast %129 : vector<1x128xi32> to vector<128x128xi32>
    %131 = arith.cmpi eq, %130, %0 : vector<128x128xi32>
    %132 = arith.extui %131 : vector<128x128xi1> to vector<128x128xi32>
    %133 = arith.sitofp %132 : vector<128x128xi32> to vector<128x128xf32>
    %134 = arith.addf %128, %133 : vector<128x128xf32>
    %135 = vector.extract_strided_slice %103 {offsets = [5, 0], sizes = [1, 128], strides = [1, 1]} : vector<8x128xi32> to vector<1x128xi32>
    %136 = vector.broadcast %135 : vector<1x128xi32> to vector<128x128xi32>
    %137 = arith.cmpi eq, %136, %0 : vector<128x128xi32>
    %138 = arith.extui %137 : vector<128x128xi1> to vector<128x128xi32>
    %139 = arith.sitofp %138 : vector<128x128xi32> to vector<128x128xf32>
    %140 = arith.addf %134, %139 : vector<128x128xf32>
    %141 = vector.extract_strided_slice %103 {offsets = [6, 0], sizes = [1, 128], strides = [1, 1]} : vector<8x128xi32> to vector<1x128xi32>
    %142 = vector.broadcast %141 : vector<1x128xi32> to vector<128x128xi32>
    %143 = arith.cmpi eq, %142, %0 : vector<128x128xi32>
    %144 = arith.extui %143 : vector<128x128xi1> to vector<128x128xi32>
    %145 = arith.sitofp %144 : vector<128x128xi32> to vector<128x128xf32>
    %146 = arith.addf %140, %145 : vector<128x128xf32>
    %147 = vector.extract_strided_slice %103 {offsets = [7, 0], sizes = [1, 128], strides = [1, 1]} : vector<8x128xi32> to vector<1x128xi32>
    %148 = vector.broadcast %147 : vector<1x128xi32> to vector<128x128xi32>
    %149 = arith.cmpi eq, %148, %0 : vector<128x128xi32>
    %150 = arith.extui %149 : vector<128x128xi1> to vector<128x128xi32>
    %151 = arith.sitofp %150 : vector<128x128xi32> to vector<128x128xf32>
    %152 = arith.addf %146, %151 : vector<128x128xf32>
    %c0_9 = arith.constant 0 : index
    %c256_10 = arith.constant 256 : index
    %153 = vector.load %arg9[%c0_9, %c256_10] : memref<128x512xf32, #tpu.memory_space<vmem>>, vector<128x128xf32>
    tpu.vector_store %arg9[%c0_9, %c256_10], %152 {strides = array<i32>} : memref<128x512xf32, #tpu.memory_space<vmem>>, vector<128x128xf32>,
    %c0_11 = arith.constant 0 : index
    %c384 = arith.constant 384 : index
    %154 = vector.load %arg1[%c0_11, %c384] : memref<8x512xi32, #tpu.memory_space<vmem>>, vector<8x128xi32>
    %cst_12 = arith.constant 0.000000e+00 : f32
    %155 = vector.broadcast %cst_12 : f32 to vector<128x128xf32>
    %156 = vector.extract_strided_slice %154 {offsets = [0, 0], sizes = [1, 128], strides = [1, 1]} : vector<8x128xi32> to vector<1x128xi32>
    %157 = vector.broadcast %156 : vector<1x128xi32> to vector<128x128xi32>
    %158 = arith.cmpi eq, %157, %0 : vector<128x128xi32>
    %159 = arith.extui %158 : vector<128x128xi1> to vector<128x128xi32>
    %160 = arith.sitofp %159 : vector<128x128xi32> to vector<128x128xf32>
    %161 = arith.addf %155, %160 : vector<128x128xf32>
    %162 = vector.extract_strided_slice %154 {offsets = [1, 0], sizes = [1, 128], strides = [1, 1]} : vector<8x128xi32> to vector<1x128xi32>
    %163 = vector.broadcast %162 : vector<1x128xi32> to vector<128x128xi32>
    %164 = arith.cmpi eq, %163, %0 : vector<128x128xi32>
    %165 = arith.extui %164 : vector<128x128xi1> to vector<128x128xi32>
    %166 = arith.sitofp %165 : vector<128x128xi32> to vector<128x128xf32>
    %167 = arith.addf %161, %166 : vector<128x128xf32>
    %168 = vector.extract_strided_slice %154 {offsets = [2, 0], sizes = [1, 128], strides = [1, 1]} : vector<8x128xi32> to vector<1x128xi32>
    %169 = vector.broadcast %168 : vector<1x128xi32> to vector<128x128xi32>
    %170 = arith.cmpi eq, %169, %0 : vector<128x128xi32>
    %171 = arith.extui %170 : vector<128x128xi1> to vector<128x128xi32>
    %172 = arith.sitofp %171 : vector<128x128xi32> to vector<128x128xf32>
    %173 = arith.addf %167, %172 : vector<128x128xf32>
    %174 = vector.extract_strided_slice %154 {offsets = [3, 0], sizes = [1, 128], strides = [1, 1]} : vector<8x128xi32> to vector<1x128xi32>
    %175 = vector.broadcast %174 : vector<1x128xi32> to vector<128x128xi32>
    %176 = arith.cmpi eq, %175, %0 : vector<128x128xi32>
    %177 = arith.extui %176 : vector<128x128xi1> to vector<128x128xi32>
    %178 = arith.sitofp %177 : vector<128x128xi32> to vector<128x128xf32>
    %179 = arith.addf %173, %178 : vector<128x128xf32>
    %180 = vector.extract_strided_slice %154 {offsets = [4, 0], sizes = [1, 128], strides = [1, 1]} : vector<8x128xi32> to vector<1x128xi32>
    %181 = vector.broadcast %180 : vector<1x128xi32> to vector<128x128xi32>
    %182 = arith.cmpi eq, %181, %0 : vector<128x128xi32>
    %183 = arith.extui %182 : vector<128x128xi1> to vector<128x128xi32>
    %184 = arith.sitofp %183 : vector<128x128xi32> to vector<128x128xf32>
    %185 = arith.addf %179, %184 : vector<128x128xf32>
    %186 = vector.extract_strided_slice %154 {offsets = [5, 0], sizes = [1, 128], strides = [1, 1]} : vector<8x128xi32> to vector<1x128xi32>
    %187 = vector.broadcast %186 : vector<1x128xi32> to vector<128x128xi32>
    %188 = arith.cmpi eq, %187, %0 : vector<128x128xi32>
    %189 = arith.extui %188 : vector<128x128xi1> to vector<128x128xi32>
    %190 = arith.sitofp %189 : vector<128x128xi32> to vector<128x128xf32>
    %191 = arith.addf %185, %190 : vector<128x128xf32>
    %192 = vector.extract_strided_slice %154 {offsets = [6, 0], sizes = [1, 128], strides = [1, 1]} : vector<8x128xi32> to vector<1x128xi32>
    %193 = vector.broadcast %192 : vector<1x128xi32> to vector<128x128xi32>
    %194 = arith.cmpi eq, %193, %0 : vector<128x128xi32>
    %195 = arith.extui %194 : vector<128x128xi1> to vector<128x128xi32>
    %196 = arith.sitofp %195 : vector<128x128xi32> to vector<128x128xf32>
    %197 = arith.addf %191, %196 : vector<128x128xf32>
    %198 = vector.extract_strided_slice %154 {offsets = [7, 0], sizes = [1, 128], strides = [1, 1]} : vector<8x128xi32> to vector<1x128xi32>
    %199 = vector.broadcast %198 : vector<1x128xi32> to vector<128x128xi32>
    %200 = arith.cmpi eq, %199, %0 : vector<128x128xi32>
    %201 = arith.extui %200 : vector<128x128xi1> to vector<128x128xi32>
    %202 = arith.sitofp %201 : vector<128x128xi32> to vector<128x128xf32>
    %203 = arith.addf %197, %202 : vector<128x128xf32>
    %c0_13 = arith.constant 0 : index
    %c384_14 = arith.constant 384 : index
    %204 = vector.load %arg9[%c0_13, %c384_14] : memref<128x512xf32, #tpu.memory_space<vmem>>, vector<128x128xf32>
    tpu.vector_store %arg9[%c0_13, %c384_14], %203 {strides = array<i32>} : memref<128x512xf32, #tpu.memory_space<vmem>>, vector<128x128xf32>,
    %c0_15 = arith.constant 0 : index
    %c0_16 = arith.constant 0 : index
    %205 = vector.load %arg3[%c0_15, %c0_16] : memref<128x128xf32, #tpu.memory_space<vmem>>, vector<128x128xf32>
    %c0_17 = arith.constant 0 : index
    %c0_18 = arith.constant 0 : index
    %206 = vector.load %arg9[%c0_17, %c0_18] : memref<128x512xf32, #tpu.memory_space<vmem>>, vector<128x256xf32>
    %cst_19 = arith.constant dense<0.000000e+00> : vector<128x256xf32>
    %207 = tpu.matmul %205, %206, %cst_19 {dimension_numbers = #tpu.dot_dimension_numbers<[1], [0], [0], [1], [0, 0, 1, 1], [], []>} : vector<128x128xf32>, vector<128x256xf32>, vector<128x256xf32> -> vector<128x256xf32>
    %c0_20 = arith.constant 0 : index
    %c0_21 = arith.constant 0 : index
    %208 = vector.load %arg2[%c0_20, %c0_21] : memref<1x512xf32, #tpu.memory_space<vmem>>, vector<1x256xf32>
    %209 = vector.broadcast %208 : vector<1x256xf32> to vector<128x256xf32>
    %210 = arith.mulf %207, %209 : vector<128x256xf32>
    %c0_22 = arith.constant 0 : index
    %c0_23 = arith.constant 0 : index
    %211 = vector.load %arg4[%c0_22, %c0_23] : memref<32x128xf32, #tpu.memory_space<vmem>>, vector<32x128xf32>
    %cst_24 = arith.constant dense<0.000000e+00> : vector<32x256xf32>
    %212 = tpu.matmul %211, %210, %cst_24 {dimension_numbers = #tpu.dot_dimension_numbers<[1], [0], [0], [1], [0, 0, 1, 1], [], []>} : vector<32x128xf32>, vector<128x256xf32>, vector<32x256xf32> -> vector<32x256xf32>
    %c0_25 = arith.constant 0 : index
    %c0_26 = arith.constant 0 : index
    %213 = vector.load %arg5[%c0_25, %c0_26] : memref<32x1xf32, #tpu.memory_space<vmem>>, vector<32x1xf32>
    %214 = vector.broadcast %213 : vector<32x1xf32> to vector<32x256xf32>
    %215 = arith.addf %212, %214 : vector<32x256xf32>
    %cst_27 = arith.constant 0.000000e+00 : f32
    %216 = vector.broadcast %cst_27 : f32 to vector<32x256xf32>
    %217 = arith.maximumf %215, %216 : vector<32x256xf32>
    %c0_28 = arith.constant 0 : index
    %c0_29 = arith.constant 0 : index
    %218 = vector.load %arg6[%c0_28, %c0_29] : memref<32x1xf32, #tpu.memory_space<vmem>>, vector<32x1xf32>
    %219 = vector.broadcast %218 : vector<32x1xf32> to vector<32x256xf32>
    %220 = arith.mulf %217, %219 : vector<32x256xf32>
    %cst_30 = arith.constant dense<0.000000e+00> : vector<256xf32>
    %221 = vector.multi_reduction <add>, %220, %cst_30 [0] : vector<32x256xf32> to vector<256xf32>
    %222 = vector.shape_cast %221 : vector<256xf32> to vector<1x256xf32>
    %c0_31 = arith.constant 0 : index
    %c0_32 = arith.constant 0 : index
    %223 = vector.load %arg7[%c0_31, %c0_32] : memref<1x1xf32, #tpu.memory_space<vmem>>, vector<1x1xf32>
    %224 = vector.broadcast %223 : vector<1x1xf32> to vector<1x256xf32>
    %225 = arith.addf %222, %224 : vector<1x256xf32>
    %c0_33 = arith.constant 0 : index
    %c0_34 = arith.constant 0 : index
    %226 = vector.load %arg8[%c0_33, %c0_34] : memref<1x512xf32, #tpu.memory_space<vmem>>, vector<1x256xf32>
    tpu.vector_store %arg8[%c0_33, %c0_34], %225 {strides = array<i32>} : memref<1x512xf32, #tpu.memory_space<vmem>>, vector<1x256xf32>,
    %c0_35 = arith.constant 0 : index
    %c0_36 = arith.constant 0 : index
    %227 = vector.load %arg3[%c0_35, %c0_36] : memref<128x128xf32, #tpu.memory_space<vmem>>, vector<128x128xf32>
    %c0_37 = arith.constant 0 : index
    %c256_38 = arith.constant 256 : index
    %228 = vector.load %arg9[%c0_37, %c256_38] : memref<128x512xf32, #tpu.memory_space<vmem>>, vector<128x256xf32>
    %cst_39 = arith.constant dense<0.000000e+00> : vector<128x256xf32>
    %229 = tpu.matmul %227, %228, %cst_39 {dimension_numbers = #tpu.dot_dimension_numbers<[1], [0], [0], [1], [0, 0, 1, 1], [], []>} : vector<128x128xf32>, vector<128x256xf32>, vector<128x256xf32> -> vector<128x256xf32>
    %c0_40 = arith.constant 0 : index
    %c256_41 = arith.constant 256 : index
    %230 = vector.load %arg2[%c0_40, %c256_41] : memref<1x512xf32, #tpu.memory_space<vmem>>, vector<1x256xf32>
    %231 = vector.broadcast %230 : vector<1x256xf32> to vector<128x256xf32>
    %232 = arith.mulf %229, %231 : vector<128x256xf32>
    %c0_42 = arith.constant 0 : index
    %c0_43 = arith.constant 0 : index
    %233 = vector.load %arg4[%c0_42, %c0_43] : memref<32x128xf32, #tpu.memory_space<vmem>>, vector<32x128xf32>
    %cst_44 = arith.constant dense<0.000000e+00> : vector<32x256xf32>
    %234 = tpu.matmul %233, %232, %cst_44 {dimension_numbers = #tpu.dot_dimension_numbers<[1], [0], [0], [1], [0, 0, 1, 1], [], []>} : vector<32x128xf32>, vector<128x256xf32>, vector<32x256xf32> -> vector<32x256xf32>
    %c0_45 = arith.constant 0 : index
    %c0_46 = arith.constant 0 : index
    %235 = vector.load %arg5[%c0_45, %c0_46] : memref<32x1xf32, #tpu.memory_space<vmem>>, vector<32x1xf32>
    %236 = vector.broadcast %235 : vector<32x1xf32> to vector<32x256xf32>
    %237 = arith.addf %234, %236 : vector<32x256xf32>
    %cst_47 = arith.constant 0.000000e+00 : f32
    %238 = vector.broadcast %cst_47 : f32 to vector<32x256xf32>
    %239 = arith.maximumf %237, %238 : vector<32x256xf32>
    %c0_48 = arith.constant 0 : index
    %c0_49 = arith.constant 0 : index
    %240 = vector.load %arg6[%c0_48, %c0_49] : memref<32x1xf32, #tpu.memory_space<vmem>>, vector<32x1xf32>
    %241 = vector.broadcast %240 : vector<32x1xf32> to vector<32x256xf32>
    %242 = arith.mulf %239, %241 : vector<32x256xf32>
    %cst_50 = arith.constant dense<0.000000e+00> : vector<256xf32>
    %243 = vector.multi_reduction <add>, %242, %cst_50 [0] : vector<32x256xf32> to vector<256xf32>
    %244 = vector.shape_cast %243 : vector<256xf32> to vector<1x256xf32>
    %c0_51 = arith.constant 0 : index
    %c0_52 = arith.constant 0 : index
    %245 = vector.load %arg7[%c0_51, %c0_52] : memref<1x1xf32, #tpu.memory_space<vmem>>, vector<1x1xf32>
    %246 = vector.broadcast %245 : vector<1x1xf32> to vector<1x256xf32>
    %247 = arith.addf %244, %246 : vector<1x256xf32>
    %c0_53 = arith.constant 0 : index
    %c256_54 = arith.constant 256 : index
    %248 = vector.load %arg8[%c0_53, %c256_54] : memref<1x512xf32, #tpu.memory_space<vmem>>, vector<1x256xf32>
    tpu.vector_store %arg8[%c0_53, %c256_54], %247 {strides = array<i32>} : memref<1x512xf32, #tpu.memory_space<vmem>>, vector<1x256xf32>,
    return
  }
  func.func @transform_0(%arg0: i32) -> (i32, i32) {
    %c0_i32 = arith.constant 0 : i32
    %c0_i32_0 = arith.constant 0 : i32
    return %c0_i32, %arg0 : i32, i32
  }
  func.func @transform_1(%arg0: i32) -> (i32, i32) {
    %c0_i32 = arith.constant 0 : i32
    %c0_i32_0 = arith.constant 0 : i32
    return %c0_i32, %arg0 : i32, i32
  }
  func.func @transform_2(%arg0: i32) -> (i32, i32) {
    %c0_i32 = arith.constant 0 : i32
    %c0_i32_0 = arith.constant 0 : i32
    %c0_i32_1 = arith.constant 0 : i32
    return %c0_i32, %c0_i32_0 : i32, i32
  }
  func.func @transform_3(%arg0: i32) -> (i32, i32) {
    %c0_i32 = arith.constant 0 : i32
    %c0_i32_0 = arith.constant 0 : i32
    %c0_i32_1 = arith.constant 0 : i32
    return %c0_i32, %c0_i32_0 : i32, i32
  }
  func.func @transform_4(%arg0: i32) -> (i32, i32) {
    %c0_i32 = arith.constant 0 : i32
    %c0_i32_0 = arith.constant 0 : i32
    %c0_i32_1 = arith.constant 0 : i32
    return %c0_i32, %c0_i32_0 : i32, i32
  }
  func.func @transform_5(%arg0: i32) -> (i32, i32) {
    %c0_i32 = arith.constant 0 : i32
    %c0_i32_0 = arith.constant 0 : i32
    %c0_i32_1 = arith.constant 0 : i32
    return %c0_i32, %c0_i32_0 : i32, i32
  }
  func.func @transform_6(%arg0: i32) -> (i32, i32) {
    %c0_i32 = arith.constant 0 : i32
    %c0_i32_0 = arith.constant 0 : i32
    %c0_i32_1 = arith.constant 0 : i32
    return %c0_i32, %c0_i32_0 : i32, i32
  }
  func.func @transform_7(%arg0: i32) -> (i32, i32) {
    %c0_i32 = arith.constant 0 : i32
    %c0_i32_0 = arith.constant 0 : i32
    return %c0_i32, %arg0 : i32, i32
  }
}

</mosaic_0001>

<bundles_post_ra>
// kernel: tpu_custom_call.1
= control target key start
LH: loop header
LB: loop body
LE: loop exit
PB: predicated region body
PF: predicated region fallthrough
CT: control target
= control target key end

     0   :  { %s6822_s0 = inlined_call_operand.vmem [shape: s32[8,1024], index: 0, kind: input, shape index: {}]   ;;  %s6823_s1 = inlined_call_operand.hbm [shape: f32[1,1024], index: 1, kind: input, shape index: {}]   ;;  %s6824_s2 = inlined_call_operand.hbm [shape: f32[128,128], index: 2, kind: input, shape index: {}]   ;;  %s6825_s3 = inlined_call_operand.hbm [shape: f32[32,128], index: 3, kind: input, shape index: {}]   ;;  %s6826_s4 = inlined_call_operand.vmem [shape: f32[32,1], index: 4, kind: input, shape index: {}]   ;;  %s6827_s5 = inlined_call_operand.vmem [shape: f32[32,1], index: 5, kind: input, shape index: {}]   ;;  %s6828_s6 = inlined_call_operand.<no memory space> [shape: f32[1,1], index: 6, kind: input, shape index: {}]   ;;  %s6829_s7 = inlined_call_operand.hbm [shape: f32[1,1024], index: 7, kind: output, shape index: {}]  }
   0x1   :  { %6848 = sst [smem:[#allocation42_spill]] %s6824_s2  ;;  %v12_v0 = vstv %s6828_s6 }
   0x2   :  { %13 = vst [vmem:[#allocation3] sm:$0x1] %v12_v0 }
   0x3   :  { %14 = vsyncpa [#allocation5], 0 }
   0x4   :  { %16 = vsyncpa [#allocation5 + $0x1], 0 }
   0x5   :  { %17 = vsyncpa [#allocation8], 0 }
   0x6   :  { %18 = vsyncpa [#allocation6], 0 }
   0x7   :  { %20 = vsyncpa [#allocation6 + $0x1], 0  ;;  %s4459_s26 = smov 0   ;;  %s4461_s27 = smov 0  }
   0x8   :  { %s4463_s28 = smov 0   ;;  %s4465_s29 = smov 0  }
   0x9 LB: > { %s4480_s6 = sadd.s32 4294967295, %s4405_s29   ;;  %s3649_s30 = sadd.s32 4294967294, %s4405_s29   ;;  %s4405_s29 = sphi %s4465_s29, %s6927_s29   ;;  %s4401_s28 = sphi %s4463_s28, %s6926_s28   ;;  %s4397_s27 = sphi %s4461_s27, %s6925_s27   ;;  %s4393_s26 = sphi %s4459_s26, %s6924_s26  }
   0xa   : > { %p72_p0 = scmp.ne.s32.totalorder %s4397_s27, %s4393_s26  ;;  %p6830_p1 = scmp.eq.s32.totalorder %s4480_s6, 0 }
   0xb   : > { %p207_p3 = scmp.eq.s32.totalorder %s3649_s30, 1  ;;  %p3650_p5 = scmp.ge.s32.totalorder %s4405_s29, 1 }
   0xc   : > { %p4489_p4 = por %p6830_p1, %p72_p0  ;;  %p214_p7 = scmp.lt.s32.totalorder %s4405_s29, 3 }
   0xd   : > { %p4494_p6 = por %p207_p3, %p72_p0  ;;  %s4407_s11 = smov [#allocation7]  }
   0xe   : > { %s6849_s8 = scalar_select %p4489_p4, 1, 0 }
   0xf   : > { %s6850_s9 = scalar_select %p4494_p6, 1, 0 }
  0x10   : > { %p4499_p8 = pnand %p3650_p5, %p214_p7  ;;  %s226_s12 = sshll.u32 %s4407_s11, 4  ;;  %s227_s12 = int_to_ptr.vmem [resolvable:$true] %s226_s12 }
  0x11   : > { %s4408_s14 = smov [#allocation9]   ;;  %s4268_s16 = scalar_lea.vmem %s227_s12, 2048 }
  0x12   : > { %s6851_s10 = scalar_select %p4499_p8, 1, 0 }
  0x13   : > { %p4195_p9 = pneg %p4499_p8  ;;  %s239_s15 = sshll.u32 %s4408_s14, 4  ;;  %s240_s15 = int_to_ptr.vmem [resolvable:$true] %s239_s15 }
  0x14   : > { %p4269_p13 = scmp.ne.s32.totalorder %s227_s12, %s4268_s16  ;;  %p4276_p5 = scmp.lt.s32.totalorder %s227_s12, %s227_s12 }
  0x15   : > { %p4508_p11 = pnand %p4195_p9, %p6830_p1  ;;  %p4277_p7 = scmp.lt.s32.totalorder %s4268_s16, %s4268_s16 }
  0x17   : > { %p4259_p12 = pneg %p4508_p11  ;;  %p4278_p10 = por %p4277_p7, %p4276_p5 }
  0x19   : > { %p4271_p0 = pnand %p4269_p13, %p4259_p12 }
  0x1b   : > { %p4272_p3 = pneg %p4271_p0 }
  0x1d   : > { %p4279_p9 = pnand %p4278_p10, %p4272_p3 }
  0x1f   : > { %4282 = shalt.err (!%p4279_p9)
}
  0x20   : > { %s4409_s17 = smov 128   ;;  %s4410_s18 = smov 8  }
  0x21   : > { %s6853_s2 = sld [smem:[#allocation42_spill]]  ;;  %s4294_s21 = scalar_lea.vmem %s240_s15, 512 }
  0x22   : > { %p4295_p1 = scmp.ne.s32.totalorder %s240_s15, %s4294_s21  ;;  %p4302_p2 = scmp.lt.s32.totalorder %s240_s15, %s240_s15 }
  0x23   : > { %p4303_p6 = scmp.lt.s32.totalorder %s4294_s21, %s4294_s21 }
  0x24   : > { %p4297_p13 = pnand %p4295_p1, %p4259_p12 }
  0x25   : > { %p4304_p5 = por %p4303_p6, %p4302_p2 }
  0x26   : > { %p4298_p0 = pneg %p4297_p13 }
  0x27   : > { %4198 = dma.hbm_to_vmem [thread:$0]  (!%p4508_p11), %s6853_s2, 2048, %s227_s12, [#allocation8], %s4409_s17, %s4409_s17, %s4410_s18  }
  0x28   : > { %p4305_p10 = pnand %p4304_p5, %p4298_p0 }
  0x2a   : > { %4308 = shalt.err (!%p4305_p10)
}
  0x2b   : > { %4201 = dma.hbm_to_vmem [thread:$0]  (!%p4508_p11), %s6825_s3, 512, %s240_s15, [#allocation8], %s4409_s17, %s4409_s17, %s4410_s18  }
  0x2c   : > { %s4531_s24 = sadd.s32 1, %s4405_s29   ;;  %s59_s25 = sadd.s32 1, %s4401_s28 }
  0x2d   : > { %s56_s30 = ssub.s32 %s4405_s29, %s4531_s24  ;;  %p66_p1 = scmp.ne.s32.totalorder %s4401_s28, %s4397_s27 }
  0x2e   : > { %p57_p2 = scmp.eq.s32.totalorder %s56_s30, 0  ;;  %p67_p6 = scmp.eq.s32.totalorder %s4405_s29, 0 }
  0x2f   : > { %p6854_p12 = scmp.eq.s32.totalorder %s4480_s6, 1  ;;  %p4212_p7 = scmp.lt.s32.totalorder %s4405_s29, 2 }
  0x30   : > { %s4547_s12 = scalar_select %p57_p2, %s4401_s28, %s59_s25  }
  0x31   : > { %p4541_p3 = por %p6854_p12, %p66_p1  ;;  %p68_p9 = por %p67_p6, %p66_p1 }
  0x32   : > { %s271_s13 = sand.u32 1, %s4401_s28   ;;  %s4181_s15 = sshll.u32 %s4405_s29, 6 }
  0x33   : > { %s6855_s11 = scalar_select %p4541_p3, 1, 0 }
  0x34   : > { %s3654_s14 = sshll.u32 %s271_s13, 2  ;;  %s4554_s18 = scalar_lea.hbm %s6823_s1, %s4181_s15 }
  0x35   : > { %s275_s19 = scalar_lea.vmem [#allocation4], %s3654_s14  ;;  %p4556_p11 = pnand %p4212_p7, %p68_p9 }
  0x36   : > { %s283_s20 = sshll.u32 %s275_s19, 4  ;;  %s272_s22 = scalar_lea.sflag [#allocation5], %s271_s13  ;;  %s284_s20 = int_to_ptr.vmem [resolvable:$true] %s283_s20 }
  0x37   : > { %s4309_s23 = scalar_lea.hbm %s4554_s18, 64  ;;  %p4311_p0 = pneg %p4556_p11 }
  0x38   : > { %p4310_p13 = scmp.ne.s32.totalorder %s4554_s18, %s4309_s23  ;;  %s4314_s15 = scalar_lea.hbm %s6823_s1, 128 }
  0x39   : > { %p4315_p1 = scmp.lt.s32.totalorder %s4554_s18, %s6823_s1  ;;  %p4316_p2 = scmp.lt.s32.totalorder %s4314_s15, %s4309_s23 }
  0x3a   : > { %p4312_p5 = pnand %p4311_p0, %p4310_p13 }
  0x3b   : > { %p4317_p6 = por %p4316_p2, %p4315_p1 }
  0x3c   : > { %p4313_p10 = pneg %p4312_p5 }
  0x3e   : > { %p4318_p12 = pnand %p4317_p6, %p4313_p10 }
  0x40   : > { %4321 = shalt.err (!%p4318_p12)
}
  0x41   : > { %s4322_s17 = scalar_lea.vmem %s284_s20, 64  ;;  %s4411_s13 = smov [#allocation4]  }
  0x42   : > { %p4323_p7 = scmp.ne.s32.totalorder %s284_s20, %s4322_s17  ;;  %s4327_s19 = sshll.u32 %s4411_s13, 4  ;;  %s4328_s19 = int_to_ptr.vmem [resolvable:$false] %s4327_s19 }
  0x43   : > { %s4329_s2 = scalar_lea.vmem %s4328_s19, 128  ;;  %p4330_p13 = scmp.lt.s32.totalorder %s284_s20, %s4328_s19 }
  0x44   : > { %p4325_p9 = pnand %p4323_p7, %p4311_p0  ;;  %p4331_p5 = scmp.lt.s32.totalorder %s4329_s2, %s4322_s17 }
  0x46   : > { %p4326_p3 = pneg %p4325_p9  ;;  %p4332_p4 = por %p4331_p5, %p4330_p13 }
  0x48   : > { %p4333_p8 = pnand %p4332_p4, %p4326_p3 }
  0x4a   : > { %4336 = shalt.err (!%p4333_p8)
}
  0x4b   : > { %4205 = dma.hbm_to_vmem [thread:$0]  (!%p4556_p11), %s4554_s18, 64, %s284_s20, %s272_s22  }
  0x4c   : > { %p6857_p10 = scmp.ne.s32.totalorder %s6851_s10, 0 }
  0x4e   : > { %292 = sbr.rel (%p6857_p10) target bundleno = 1178 (0x49a), region = 48 }
  0x53   : > { %s4577_s23 = sand.u32 1, %s4397_s27   ;;  %p6858_p4 = scmp.ne.s32.totalorder %s6849_s8, 0 }
  0x54   : > { %s3658_s25 = sshll.u32 %s4577_s23, 2  ;;  %s295_s30 = scalar_lea.sflag [#allocation5], %s4577_s23 }
  0x55   : > { %s4583_s2 = scalar_lea.vmem [#allocation4], %s3658_s25 }
  0x56   : > { %4380 = dma.done.wait (%p6858_p4), %s295_s30, 64  }
  0x57   : > { %4382 = vsyncadd (%p6858_p4), %s295_s30, 4294967232  ;;  %p6859_p8 = scmp.eq.s32.totalorder %s4480_s6, 0 }
  0x59   : > { %4384 = dma.done.wait (%p6859_p8), [#allocation8], 2560   ;;  %p6860_p3 = pmov %p6859_p8 }
  0x5a   : > { %s3662_s10 = sshll.u32 %s4480_s6, 2  ;;  %v6834_v1 = vlaneseq  ;;  %v6846_v2 = vmov 0.0   ;;  %s6728_s14 = scalar_lea.vmem [#allocation10], %s3658_s25 }
  0x5b   : > { %4386 = vsyncadd (%p6860_p3), [#allocation8], 4294964736  ;;  %p343_p11 = scmp.lt.s32.totalorder %s3662_s10, 7  ;;  %2723 = vmatprep.mubr.f32.mxu0 %v6846_v2  ;;  %2956 = vmatprep.mubr.f32.mxu1 %v6846_v2  ;;  %s4182_s25 = sshll.u32 %s4480_s6, 6 }
  0x5c   : > { %v4597_v3 = vshrl.u32 %v6834_v1, 7  ;;  %s3546_s19 = scalar_lea.hbm %s6829_s7, %s4182_s25  ;;  %s3534_s30 = scalar_lea.sflag [#allocation6], %s4577_s23 }
  0x5d   : > { %s6929_s10 = smov (!%p343_p11, %s3662_s10), 7  ;;  %p6921_p1 = scmp.ne.s32.totalorder %s6855_s11, 0 }
  0x5e   : > { %6861 = vst [vmem:[#allocation14_spill] sm:$0xff] %v4597_v3  ;;  %v4600_v4 = vsub.s32 0, %v4597_v3  ;;  %v4603_v5 = vsub.s32 1, %v4597_v3  ;;  %v4606_v6 = vsub.s32 2, %v4597_v3  ;;  %s3663_s8 = sshll.u32 %s6929_s10, 3  ;;  %v4609_v7 = vsub.s32 3, %v4597_v3 }
  0x5f   : > { %v4612_v8 = vsub.s32 4, %v4597_v3  ;;  %v4615_v9 = vsub.s32 5, %v4597_v3  ;;  %v4618_v10 = vsub.s32 6, %v4597_v3  ;;  %s4623_s21 = scalar_lea.vmem %s6822_s0, %s3663_s8  ;;  %v4626_v11 = vadd.s32 120, %v4597_v3  ;;  %s4415_s6 = smov [#allocation10]  }
  0x60   : > { %6862 = vst [vmem:[#allocation15_spill] sm:$0xff] %v4600_v4  ;;  %6863 = vst [vmem:[#allocation16_spill] sm:$0xff] %v4603_v5  ;;  %v4629_v12 = vsub.s32 7, %v4597_v3  ;;  %v4632_v13 = vadd.s32 112, %v4597_v3  ;;  %v928_v14 = vld [vmem:[%s4623_s21 + $0x8] sm:$0xff]  ;;  %v4636_v15 = vadd.s32 104, %v4597_v3 }
  0x61   : > { %v4639_v16 = vadd.s32 96, %v4597_v3  ;;  %v4642_v17 = vadd.s32 88, %v4597_v3  ;;  %v4645_v18 = vadd.s32 80, %v4597_v3  ;;  %v4648_v19 = vrot.slane %v928_v14, %v4600_v4  ;;  %v367_v30 = vld [vmem:[%s4623_s21] sm:$0xff]  ;;  %s4341_s8 = sshll.u32 %s4415_s6, 4  ;;  %s4342_s8 = int_to_ptr.vmem [resolvable:$false] %s4341_s8 }
  0x62   : > { %v4651_v20 = vrot.slane %v928_v14, %v4603_v5  ;;  %v4654_v21 = vrot.slane %v928_v14, %v4606_v6  ;;  %v4657_v22 = vrot.slane %v928_v14, %v4609_v7  ;;  %v4660_v23 = vrot.slane %v928_v14, %v4612_v8  ;;  %s4343_s18 = scalar_lea.vmem %s4342_s8, 128 }
  0x63   : > { %v4663_v24 = vrot.slane %v928_v14, %v4615_v9  ;;  %v4666_v25 = vrot.slane %v928_v14, %v4618_v10  ;;  %v4669_v26 = vrot.slane %v928_v14, %v4629_v12  ;;  %vm948_vm0 = vcmp.eq.s32.totalorder %v4648_v19, %v4626_v11 }
  0x64   : > { %vm1016_vm1 = vcmp.eq.s32.totalorder %v4651_v20, %v4626_v11  ;;  %vm1084_vm2 = vcmp.eq.s32.totalorder %v4654_v21, %v4626_v11  ;;  %vm1152_vm3 = vcmp.eq.s32.totalorder %v4657_v22, %v4626_v11  ;;  %v3807_v27 = vsel %vm948_vm0, 1.0, %v6846_v2 }
  0x65   : > { %v3823_v28 = vsel %vm1016_vm1, 1.0, %v6846_v2  ;;  %v3839_v29 = vsel %vm1084_vm2, 1.0, %v6846_v2  ;;  %v4684_v31 = vadd.s32 72, %v4597_v3  ;;  %vm1220_vm4 = vcmp.eq.s32.totalorder %v4660_v23, %v4626_v11 }
  0x66   : > { %v1064_v32 = vadd.f32 %v3823_v28, %v3807_v27  ;;  %vm1288_vm5 = vcmp.eq.s32.totalorder %v4663_v24, %v4626_v11  ;;  %v4691_v33 = vadd.s32 64, %v4597_v3  ;;  %v3855_v34 = vsel %vm1152_vm3, 1.0, %v6846_v2 }
  0x67   : > { %v3871_v35 = vsel %vm1220_vm4, 1.0, %v6846_v2  ;;  %v3887_v36 = vsel %vm1288_vm5, 1.0, %v6846_v2  ;;  %vm1356_vm6 = vcmp.eq.s32.totalorder %v4666_v25, %v4626_v11  ;;  %vm1424_vm7 = vcmp.eq.s32.totalorder %v4669_v26, %v4626_v11 }
  0x68   : > { %v1132_v37 = vadd.f32 %v3839_v29, %v1064_v32  ;;  %v4701_v38 = vrot.slane %v367_v30, %v4600_v4  ;;  %v4704_v39 = vrot.slane %v367_v30, %v4603_v5  ;;  %v4707_v40 = vrot.slane %v367_v30, %v4606_v6 }
  0x69   : > { %v4710_v41 = vrot.slane %v367_v30, %v4609_v7  ;;  %v4713_v42 = vrot.slane %v367_v30, %v4612_v8  ;;  %v4716_v43 = vrot.slane %v367_v30, %v4615_v9  ;;  %v4723_v45 = vrot.slane %v367_v30, %v4618_v10 }
  0x6a   : > { %v1200_v44 = vadd.f32 %v3855_v34, %v1132_v37  ;;  %vm387_vm8 = vcmp.eq.s32.totalorder %v4701_v38, %v4626_v11  ;;  %vm455_vm9 = vcmp.eq.s32.totalorder %v4704_v39, %v4626_v11  ;;  %vm523_vm10 = vcmp.eq.s32.totalorder %v4707_v40, %v4626_v11 }
  0x6b   : > { %v3679_v46 = vsel %vm387_vm8, 1.0, %v6846_v2  ;;  %v3695_v47 = vsel %vm455_vm9, 1.0, %v6846_v2  ;;  %vm591_vm11 = vcmp.eq.s32.totalorder %v4710_v41, %v4626_v11  ;;  %v3903_v49 = vsel %vm1356_vm6, 1.0, %v6846_v2 }
  0x6c   : > { %v1268_v48 = vadd.f32 %v3871_v35, %v1200_v44  ;;  %v503_v50 = vadd.f32 %v3695_v47, %v3679_v46  ;;  %v3711_v51 = vsel %vm523_vm10, 1.0, %v6846_v2  ;;  %v3727_v52 = vsel %vm591_vm11, 1.0, %v6846_v2 }
  0x6d   : > { %vm659_vm12 = vcmp.eq.s32.totalorder %v4713_v42, %v4626_v11  ;;  %vm727_vm13 = vcmp.eq.s32.totalorder %v4716_v43, %v4626_v11  ;;  %v4742_v53 = vrot.slane %v367_v30, %v4629_v12  ;;  %v3919_v55 = vsel %vm1424_vm7, 1.0, %v6846_v2 }
  0x6e   : > { %v1336_v54 = vadd.f32 %v3887_v36, %v1268_v48  ;;  %v571_v56 = vadd.f32 %v3711_v51, %v503_v50  ;;  %vm795_vm14 = vcmp.eq.s32.totalorder %v4723_v45, %v4626_v11  ;;  %v3743_v57 = vsel %vm659_vm12, 1.0, %v6846_v2 }
  0x6f   : > { %v3759_v58 = vsel %vm727_vm13, 1.0, %v6846_v2  ;;  %vm947_vm15 = vcmp.eq.s32.totalorder %v4648_v19, %v4632_v13  ;;  %vm1015_vm0 = vcmp.eq.s32.totalorder %v4651_v20, %v4632_v13  ;;  %vm863_vm1 = vcmp.eq.s32.totalorder %v4742_v53, %v4626_v11 }
  0x70   : > { %v1404_v59 = vadd.f32 %v3903_v49, %v1336_v54  ;;  %v639_v60 = vadd.f32 %v3727_v52, %v571_v56  ;;  %v3806_v61 = vsel %vm947_vm15, 1.0, %v6846_v2  ;;  %v3822_v62 = vsel %vm1015_vm0, 1.0, %v6846_v2 }
  0x71   : > { %vm1083_vm2 = vcmp.eq.s32.totalorder %v4654_v21, %v4632_v13  ;;  %vm1151_vm3 = vcmp.eq.s32.totalorder %v4657_v22, %v4632_v13  ;;  %vm1219_vm4 = vcmp.eq.s32.totalorder %v4660_v23, %v4632_v13  ;;  %v1063_v14 = vadd.f32 %v3822_v62, %v3806_v61 }
  0x72   : > { %v1472_v63 = vadd.f32 %v3919_v55, %v1404_v59  ;;  %v707_v0 = vadd.f32 %v3743_v57, %v639_v60  ;;  %v3838_v27 = vsel %vm1083_vm2, 1.0, %v6846_v2  ;;  %v3775_v28 = vsel %vm795_vm14, 1.0, %v6846_v2 }
  0x73   : > { %v3791_v29 = vsel %vm863_vm1, 1.0, %v6846_v2  ;;  %v3854_v30 = vsel %vm1151_vm3, 1.0, %v6846_v2  ;;  %vm1287_vm5 = vcmp.eq.s32.totalorder %v4663_v24, %v4632_v13  ;;  %v1131_v34 = vadd.f32 %v3838_v27, %v1063_v14 }
  0x74   : > { %2659 = vmatprep.subr.mxu0 %v1472_v63  ;;  %v775_v32 = vadd.f32 %v3759_v58, %v707_v0  ;;  %v3870_v35 = vsel %vm1219_vm4, 1.0, %v6846_v2  ;;  %vm1355_vm6 = vcmp.eq.s32.totalorder %v4666_v25, %v4632_v13  ;;  %v3886_v36 = vsel %vm1287_vm5, 1.0, %v6846_v2 }
  0x75   : > { %vm386_vm7 = vcmp.eq.s32.totalorder %v4701_v38, %v4632_v13  ;;  %vm454_vm8 = vcmp.eq.s32.totalorder %v4704_v39, %v4632_v13  ;;  %vm522_vm9 = vcmp.eq.s32.totalorder %v4707_v40, %v4632_v13  ;;  %v1199_v44 = vadd.f32 %v3854_v30, %v1131_v34 }
  0x76   : > { %v843_v37 = vadd.f32 %v3775_v28, %v775_v32  ;;  %vm1423_vm10 = vcmp.eq.s32.totalorder %v4669_v26, %v4632_v13  ;;  %v3678_v46 = vsel %vm386_vm7, 1.0, %v6846_v2  ;;  %v3694_v47 = vsel %vm454_vm8, 1.0, %v6846_v2 }
  0x77   : > { %v3710_v48 = vsel %vm522_vm9, 1.0, %v6846_v2  ;;  %vm590_vm11 = vcmp.eq.s32.totalorder %v4710_v41, %v4632_v13  ;;  %vm658_vm12 = vcmp.eq.s32.totalorder %v4713_v42, %v4632_v13  ;;  %v1267_v50 = vadd.f32 %v3870_v35, %v1199_v44 }
  0x78   : > { %v911_v49 = vadd.f32 %v3791_v29, %v843_v37  ;;  %v3902_v51 = vsel %vm1355_vm6, 1.0, %v6846_v2  ;;  %v502_v52 = vadd.f32 %v3694_v47, %v3678_v46  ;;  %v3918_v54 = vsel %vm1423_vm10, 1.0, %v6846_v2 }
  0x79   : > { %v3726_v55 = vsel %vm590_vm11, 1.0, %v6846_v2  ;;  %v3742_v56 = vsel %vm658_vm12, 1.0, %v6846_v2  ;;  %vm726_vm13 = vcmp.eq.s32.totalorder %v4716_v43, %v4632_v13  ;;  %v1335_v57 = vadd.f32 %v3886_v36, %v1267_v50 }
  0x7a   : > { %2660 = vmatpush1.msra.mxu0 %v911_v49  ;;  %v570_v58 = vadd.f32 %v3710_v48, %v502_v52  ;;  %vm794_vm14 = vcmp.eq.s32.totalorder %v4723_v45, %v4632_v13  ;;  %vm862_vm15 = vcmp.eq.s32.totalorder %v4742_v53, %v4632_v13  ;;  %v3758_v59 = vsel %vm726_vm13, 1.0, %v6846_v2 }
  0x7b   : > { %vm946_vm0 = vcmp.eq.s32.totalorder %v4648_v19, %v4636_v15  ;;  %vm1014_vm1 = vcmp.eq.s32.totalorder %v4651_v20, %v4636_v15  ;;  %vm1082_vm2 = vcmp.eq.s32.totalorder %v4654_v21, %v4636_v15  ;;  %v1403_v60 = vadd.f32 %v3902_v51, %v1335_v57 }
  0x7c   : > { %v638_v61 = vadd.f32 %v3726_v55, %v570_v58  ;;  %v3805_v62 = vsel %vm946_vm0, 1.0, %v6846_v2  ;;  %v3821_v63 = vsel %vm1014_vm1, 1.0, %v6846_v2  ;;  %v3837_v14 = vsel %vm1082_vm2, 1.0, %v6846_v2 }
  0x7d   : > { %v1062_v0 = vadd.f32 %v3821_v63, %v3805_v62  ;;  %vm1150_vm3 = vcmp.eq.s32.totalorder %v4657_v22, %v4636_v15  ;;  %vm1218_vm4 = vcmp.eq.s32.totalorder %v4660_v23, %v4636_v15  ;;  %v1471_v27 = vadd.f32 %v3918_v54, %v1403_v60 }
  0x7e   : > { %v706_v28 = vadd.f32 %v3742_v56, %v638_v61  ;;  %v3774_v29 = vsel %vm794_vm14, 1.0, %v6846_v2  ;;  %v3853_v30 = vsel %vm1150_vm3, 1.0, %v6846_v2  ;;  %v3790_v32 = vsel %vm862_vm15, 1.0, %v6846_v2 }
  0x7f   : > { %v1130_v34 = vadd.f32 %v3837_v14, %v1062_v0  ;;  %v3869_v35 = vsel %vm1218_vm4, 1.0, %v6846_v2  ;;  %vm1286_vm5 = vcmp.eq.s32.totalorder %v4663_v24, %v4636_v15  ;;  %2661 = vmatprep.subr.mxu0 %v1471_v27  ;;  %vm1354_vm6 = vcmp.eq.s32.totalorder %v4666_v25, %v4636_v15 }
  0x80   : > { %v774_v36 = vadd.f32 %v3758_v59, %v706_v28  ;;  %v3885_v37 = vsel %vm1286_vm5, 1.0, %v6846_v2  ;;  %vm1422_vm7 = vcmp.eq.s32.totalorder %v4669_v26, %v4636_v15  ;;  %vm385_vm8 = vcmp.eq.s32.totalorder %v4701_v38, %v4636_v15 }
  0x81   : > { %v1198_v44 = vadd.f32 %v3853_v30, %v1130_v34  ;;  %vm453_vm9 = vcmp.eq.s32.totalorder %v4704_v39, %v4636_v15  ;;  %vm521_vm10 = vcmp.eq.s32.totalorder %v4707_v40, %v4636_v15  ;;  %v3677_v47 = vsel %vm385_vm8, 1.0, %v6846_v2 }
  0x82   : > { %v842_v46 = vadd.f32 %v3774_v29, %v774_v36  ;;  %v3693_v48 = vsel %vm453_vm9, 1.0, %v6846_v2  ;;  %v3709_v49 = vsel %vm521_vm10, 1.0, %v6846_v2  ;;  %vm589_vm11 = vcmp.eq.s32.totalorder %v4710_v41, %v4636_v15 }
  0x83   : > { %v1266_v50 = vadd.f32 %v3869_v35, %v1198_v44  ;;  %v501_v51 = vadd.f32 %v3693_v48, %v3677_v47  ;;  %vm657_vm12 = vcmp.eq.s32.totalorder %v4713_v42, %v4636_v15  ;;  %v3901_v54 = vsel %vm1354_vm6, 1.0, %v6846_v2 }
  0x84   : > { %v910_v52 = vadd.f32 %v3790_v32, %v842_v46  ;;  %v3725_v55 = vsel %vm589_vm11, 1.0, %v6846_v2  ;;  %vm725_vm13 = vcmp.eq.s32.totalorder %v4716_v43, %v4636_v15  ;;  %v3917_v57 = vsel %vm1422_vm7, 1.0, %v6846_v2 }
  0x85   : > { %v1334_v56 = vadd.f32 %v3885_v37, %v1266_v50  ;;  %v569_v58 = vadd.f32 %v3709_v49, %v501_v51  ;;  %v3741_v59 = vsel %vm657_vm12, 1.0, %v6846_v2  ;;  %v3757_v60 = vsel %vm725_vm13, 1.0, %v6846_v2 }
  0x86   : > { %2662 = vmatpush1.msra.mxu0 %v910_v52  ;;  %vm793_vm14 = vcmp.eq.s32.totalorder %v4723_v45, %v4636_v15  ;;  %vm945_vm15 = vcmp.eq.s32.totalorder %v4648_v19, %v4639_v16  ;;  %vm1013_vm0 = vcmp.eq.s32.totalorder %v4651_v20, %v4639_v16  ;;  %vm861_vm1 = vcmp.eq.s32.totalorder %v4742_v53, %v4636_v15 }
  0x87   : > { %v1402_v61 = vadd.f32 %v3901_v54, %v1334_v56  ;;  %v637_v62 = vadd.f32 %v3725_v55, %v569_v58  ;;  %v3804_v63 = vsel %vm945_vm15, 1.0, %v6846_v2  ;;  %v3820_v0 = vsel %vm1013_vm0, 1.0, %v6846_v2 }
  0x88   : > { %vm1081_vm2 = vcmp.eq.s32.totalorder %v4654_v21, %v4639_v16  ;;  %vm1149_vm3 = vcmp.eq.s32.totalorder %v4657_v22, %v4639_v16  ;;  %vm1217_vm4 = vcmp.eq.s32.totalorder %v4660_v23, %v4639_v16  ;;  %v1061_v28 = vadd.f32 %v3820_v0, %v3804_v63 }
  0x89   : > { %v1470_v14 = vadd.f32 %v3917_v57, %v1402_v61  ;;  %v705_v27 = vadd.f32 %v3741_v59, %v637_v62  ;;  %v3836_v29 = vsel %vm1081_vm2, 1.0, %v6846_v2  ;;  %v3773_v30 = vsel %vm793_vm14, 1.0, %v6846_v2 }
  0x8a   : > { %v3789_v32 = vsel %vm861_vm1, 1.0, %v6846_v2  ;;  %v3852_v34 = vsel %vm1149_vm3, 1.0, %v6846_v2  ;;  %vm1285_vm5 = vcmp.eq.s32.totalorder %v4663_v24, %v4639_v16  ;;  %v1129_v36 = vadd.f32 %v3836_v29, %v1061_v28 }
  0x8b   : > { %2663 = vmatprep.subr.mxu0 %v1470_v14  ;;  %v773_v35 = vadd.f32 %v3757_v60, %v705_v27  ;;  %v3868_v37 = vsel %vm1217_vm4, 1.0, %v6846_v2  ;;  %vm1353_vm6 = vcmp.eq.s32.totalorder %v4666_v25, %v4639_v16  ;;  %v3884_v44 = vsel %vm1285_vm5, 1.0, %v6846_v2 }
  0x8c   : > { %vm384_vm7 = vcmp.eq.s32.totalorder %v4701_v38, %v4639_v16  ;;  %vm452_vm8 = vcmp.eq.s32.totalorder %v4704_v39, %v4639_v16  ;;  %vm520_vm9 = vcmp.eq.s32.totalorder %v4707_v40, %v4639_v16  ;;  %v1197_v47 = vadd.f32 %v3852_v34, %v1129_v36 }
  0x8d   : > { %v841_v46 = vadd.f32 %v3773_v30, %v773_v35  ;;  %vm1421_vm10 = vcmp.eq.s32.totalorder %v4669_v26, %v4639_v16  ;;  %v3676_v48 = vsel %vm384_vm7, 1.0, %v6846_v2  ;;  %v3692_v49 = vsel %vm452_vm8, 1.0, %v6846_v2 }
  0x8e   : > { %v3708_v50 = vsel %vm520_vm9, 1.0, %v6846_v2  ;;  %vm588_vm11 = vcmp.eq.s32.totalorder %v4710_v41, %v4639_v16  ;;  %vm656_vm12 = vcmp.eq.s32.totalorder %v4713_v42, %v4639_v16  ;;  %v1265_v52 = vadd.f32 %v3868_v37, %v1197_v47 }
  0x8f   : > { %v909_v51 = vadd.f32 %v3789_v32, %v841_v46  ;;  %v3900_v54 = vsel %vm1353_vm6, 1.0, %v6846_v2  ;;  %v500_v55 = vadd.f32 %v3692_v49, %v3676_v48  ;;  %v3916_v56 = vsel %vm1421_vm10, 1.0, %v6846_v2 }
  0x90   : > { %v3724_v57 = vsel %vm588_vm11, 1.0, %v6846_v2  ;;  %v3740_v58 = vsel %vm656_vm12, 1.0, %v6846_v2  ;;  %vm724_vm13 = vcmp.eq.s32.totalorder %v4716_v43, %v4639_v16  ;;  %v1333_v59 = vadd.f32 %v3884_v44, %v1265_v52 }
  0x91   : > { %2664 = vmatpush1.msra.mxu0 %v909_v51  ;;  %v568_v60 = vadd.f32 %v3708_v50, %v500_v55  ;;  %vm792_vm14 = vcmp.eq.s32.totalorder %v4723_v45, %v4639_v16  ;;  %vm860_vm15 = vcmp.eq.s32.totalorder %v4742_v53, %v4639_v16  ;;  %v3756_v61 = vsel %vm724_vm13, 1.0, %v6846_v2 }
  0x92   : > { %vm944_vm0 = vcmp.eq.s32.totalorder %v4648_v19, %v4642_v17  ;;  %vm1012_vm1 = vcmp.eq.s32.totalorder %v4651_v20, %v4642_v17  ;;  %vm1080_vm2 = vcmp.eq.s32.totalorder %v4654_v21, %v4642_v17  ;;  %v1401_v62 = vadd.f32 %v3900_v54, %v1333_v59 }
  0x93   : > { %v636_v63 = vadd.f32 %v3724_v57, %v568_v60  ;;  %v3803_v0 = vsel %vm944_vm0, 1.0, %v6846_v2  ;;  %v3819_v14 = vsel %vm1012_vm1, 1.0, %v6846_v2  ;;  %v3835_v28 = vsel %vm1080_vm2, 1.0, %v6846_v2 }
  0x94   : > { %v1060_v27 = vadd.f32 %v3819_v14, %v3803_v0  ;;  %vm1148_vm3 = vcmp.eq.s32.totalorder %v4657_v22, %v4642_v17  ;;  %vm1216_vm4 = vcmp.eq.s32.totalorder %v4660_v23, %v4642_v17  ;;  %v1469_v29 = vadd.f32 %v3916_v56, %v1401_v62 }
  0x95   : > { %v704_v30 = vadd.f32 %v3740_v58, %v636_v63  ;;  %v3772_v32 = vsel %vm792_vm14, 1.0, %v6846_v2  ;;  %v3851_v34 = vsel %vm1148_vm3, 1.0, %v6846_v2  ;;  %v3788_v35 = vsel %vm860_vm15, 1.0, %v6846_v2 }
  0x96   : > { %v1128_v36 = vadd.f32 %v3835_v28, %v1060_v27  ;;  %v3867_v37 = vsel %vm1216_vm4, 1.0, %v6846_v2  ;;  %vm1284_vm5 = vcmp.eq.s32.totalorder %v4663_v24, %v4642_v17  ;;  %2665 = vmatprep.subr.mxu0 %v1469_v29  ;;  %vm1352_vm6 = vcmp.eq.s32.totalorder %v4666_v25, %v4642_v17 }
  0x97   : > { %v772_v44 = vadd.f32 %v3756_v61, %v704_v30  ;;  %v3883_v46 = vsel %vm1284_vm5, 1.0, %v6846_v2  ;;  %vm1420_vm7 = vcmp.eq.s32.totalorder %v4669_v26, %v4642_v17  ;;  %vm383_vm8 = vcmp.eq.s32.totalorder %v4701_v38, %v4642_v17 }
  0x98   : > { %v1196_v47 = vadd.f32 %v3851_v34, %v1128_v36  ;;  %vm451_vm9 = vcmp.eq.s32.totalorder %v4704_v39, %v4642_v17  ;;  %vm519_vm10 = vcmp.eq.s32.totalorder %v4707_v40, %v4642_v17  ;;  %v3675_v49 = vsel %vm383_vm8, 1.0, %v6846_v2 }
  0x99   : > { %v840_v48 = vadd.f32 %v3772_v32, %v772_v44  ;;  %v3691_v50 = vsel %vm451_vm9, 1.0, %v6846_v2  ;;  %v3707_v51 = vsel %vm519_vm10, 1.0, %v6846_v2  ;;  %vm587_vm11 = vcmp.eq.s32.totalorder %v4710_v41, %v4642_v17 }
  0x9a   : > { %v1264_v52 = vadd.f32 %v3867_v37, %v1196_v47  ;;  %v499_v54 = vadd.f32 %v3691_v50, %v3675_v49  ;;  %vm655_vm12 = vcmp.eq.s32.totalorder %v4713_v42, %v4642_v17  ;;  %v3899_v56 = vsel %vm1352_vm6, 1.0, %v6846_v2 }
  0x9b   : > { %v908_v55 = vadd.f32 %v3788_v35, %v840_v48  ;;  %v3723_v57 = vsel %vm587_vm11, 1.0, %v6846_v2  ;;  %vm723_vm13 = vcmp.eq.s32.totalorder %v4716_v43, %v4642_v17  ;;  %v3915_v59 = vsel %vm1420_vm7, 1.0, %v6846_v2 }
  0x9c   : > { %v1332_v58 = vadd.f32 %v3883_v46, %v1264_v52  ;;  %v567_v60 = vadd.f32 %v3707_v51, %v499_v54  ;;  %v3739_v61 = vsel %vm655_vm12, 1.0, %v6846_v2  ;;  %v3755_v62 = vsel %vm723_vm13, 1.0, %v6846_v2 }
  0x9d   : > { %2666 = vmatpush1.msra.mxu0 %v908_v55  ;;  %vm791_vm14 = vcmp.eq.s32.totalorder %v4723_v45, %v4642_v17  ;;  %vm943_vm15 = vcmp.eq.s32.totalorder %v4648_v19, %v4645_v18  ;;  %vm1011_vm0 = vcmp.eq.s32.totalorder %v4651_v20, %v4645_v18  ;;  %vm859_vm1 = vcmp.eq.s32.totalorder %v4742_v53, %v4642_v17 }
  0x9e   : > { %v1400_v63 = vadd.f32 %v3899_v56, %v1332_v58  ;;  %v635_v0 = vadd.f32 %v3723_v57, %v567_v60  ;;  %v3802_v14 = vsel %vm943_vm15, 1.0, %v6846_v2  ;;  %v3818_v27 = vsel %vm1011_vm0, 1.0, %v6846_v2 }
  0x9f   : > { %vm1079_vm2 = vcmp.eq.s32.totalorder %v4654_v21, %v4645_v18  ;;  %vm1147_vm3 = vcmp.eq.s32.totalorder %v4657_v22, %v4645_v18  ;;  %vm1215_vm4 = vcmp.eq.s32.totalorder %v4660_v23, %v4645_v18  ;;  %v1059_v30 = vadd.f32 %v3818_v27, %v3802_v14 }
  0xa0   : > { %v1468_v28 = vadd.f32 %v3915_v59, %v1400_v63  ;;  %v703_v29 = vadd.f32 %v3739_v61, %v635_v0  ;;  %v3834_v32 = vsel %vm1079_vm2, 1.0, %v6846_v2  ;;  %v3771_v34 = vsel %vm791_vm14, 1.0, %v6846_v2 }
  0xa1   : > { %v3787_v35 = vsel %vm859_vm1, 1.0, %v6846_v2  ;;  %v3850_v36 = vsel %vm1147_vm3, 1.0, %v6846_v2  ;;  %vm1283_vm5 = vcmp.eq.s32.totalorder %v4663_v24, %v4645_v18  ;;  %v1127_v44 = vadd.f32 %v3834_v32, %v1059_v30 }
  0xa2   : > { %2667 = vmatprep.subr.mxu0 %v1468_v28  ;;  %v771_v37 = vadd.f32 %v3755_v62, %v703_v29  ;;  %v3866_v46 = vsel %vm1215_vm4, 1.0, %v6846_v2  ;;  %vm1351_vm6 = vcmp.eq.s32.totalorder %v4666_v25, %v4645_v18  ;;  %v3882_v47 = vsel %vm1283_vm5, 1.0, %v6846_v2 }
  0xa3   : > { %vm382_vm7 = vcmp.eq.s32.totalorder %v4701_v38, %v4645_v18  ;;  %vm450_vm8 = vcmp.eq.s32.totalorder %v4704_v39, %v4645_v18  ;;  %vm518_vm9 = vcmp.eq.s32.totalorder %v4707_v40, %v4645_v18  ;;  %v1195_v49 = vadd.f32 %v3850_v36, %v1127_v44 }
  0xa4   : > { %v839_v48 = vadd.f32 %v3771_v34, %v771_v37  ;;  %vm1419_vm10 = vcmp.eq.s32.totalorder %v4669_v26, %v4645_v18  ;;  %v3674_v50 = vsel %vm382_vm7, 1.0, %v6846_v2  ;;  %v3690_v51 = vsel %vm450_vm8, 1.0, %v6846_v2 }
  0xa5   : > { %v3706_v52 = vsel %vm518_vm9, 1.0, %v6846_v2  ;;  %vm586_vm11 = vcmp.eq.s32.totalorder %v4710_v41, %v4645_v18  ;;  %vm654_vm12 = vcmp.eq.s32.totalorder %v4713_v42, %v4645_v18  ;;  %v1263_v55 = vadd.f32 %v3866_v46, %v1195_v49 }
  0xa6   : > { %v907_v54 = vadd.f32 %v3787_v35, %v839_v48  ;;  %v3898_v56 = vsel %vm1351_vm6, 1.0, %v6846_v2  ;;  %v498_v57 = vadd.f32 %v3690_v51, %v3674_v50  ;;  %v3914_v58 = vsel %vm1419_vm10, 1.0, %v6846_v2 }
  0xa7   : > { %v3722_v59 = vsel %vm586_vm11, 1.0, %v6846_v2  ;;  %v3738_v60 = vsel %vm654_vm12, 1.0, %v6846_v2  ;;  %vm722_vm13 = vcmp.eq.s32.totalorder %v4716_v43, %v4645_v18  ;;  %v1331_v61 = vadd.f32 %v3882_v47, %v1263_v55 }
  0xa8   : > { %2668 = vmatpush1.msra.mxu0 %v907_v54  ;;  %v566_v62 = vadd.f32 %v3706_v52, %v498_v57  ;;  %vm790_vm14 = vcmp.eq.s32.totalorder %v4723_v45, %v4645_v18  ;;  %vm858_vm15 = vcmp.eq.s32.totalorder %v4742_v53, %v4645_v18  ;;  %v3754_v63 = vsel %vm722_vm13, 1.0, %v6846_v2 }
  0xa9   : > { %vm942_vm0 = vcmp.eq.s32.totalorder %v4648_v19, %v4684_v31  ;;  %vm1010_vm1 = vcmp.eq.s32.totalorder %v4651_v20, %v4684_v31  ;;  %vm1078_vm2 = vcmp.eq.s32.totalorder %v4654_v21, %v4684_v31  ;;  %v1399_v0 = vadd.f32 %v3898_v56, %v1331_v61 }
  0xaa   : > { %v634_v14 = vadd.f32 %v3722_v59, %v566_v62  ;;  %v3801_v27 = vsel %vm942_vm0, 1.0, %v6846_v2  ;;  %v3817_v28 = vsel %vm1010_vm1, 1.0, %v6846_v2  ;;  %v3833_v30 = vsel %vm1078_vm2, 1.0, %v6846_v2 }
  0xab   : > { %v1058_v29 = vadd.f32 %v3817_v28, %v3801_v27  ;;  %vm1146_vm3 = vcmp.eq.s32.totalorder %v4657_v22, %v4684_v31  ;;  %vm1214_vm4 = vcmp.eq.s32.totalorder %v4660_v23, %v4684_v31  ;;  %v1467_v32 = vadd.f32 %v3914_v58, %v1399_v0 }
  0xac   : > { %v702_v34 = vadd.f32 %v3738_v60, %v634_v14  ;;  %v3770_v35 = vsel %vm790_vm14, 1.0, %v6846_v2  ;;  %v3849_v36 = vsel %vm1146_vm3, 1.0, %v6846_v2  ;;  %v3786_v37 = vsel %vm858_vm15, 1.0, %v6846_v2 }
  0xad   : > { %v1126_v44 = vadd.f32 %v3833_v30, %v1058_v29  ;;  %v3865_v46 = vsel %vm1214_vm4, 1.0, %v6846_v2  ;;  %vm1282_vm5 = vcmp.eq.s32.totalorder %v4663_v24, %v4684_v31  ;;  %2669 = vmatprep.subr.mxu0 %v1467_v32  ;;  %vm1350_vm6 = vcmp.eq.s32.totalorder %v4666_v25, %v4684_v31 }
  0xae   : > { %v770_v47 = vadd.f32 %v3754_v63, %v702_v34  ;;  %v3881_v48 = vsel %vm1282_vm5, 1.0, %v6846_v2  ;;  %vm1418_vm7 = vcmp.eq.s32.totalorder %v4669_v26, %v4684_v31  ;;  %vm381_vm8 = vcmp.eq.s32.totalorder %v4701_v38, %v4684_v31 }
  0xaf   : > { %v1194_v49 = vadd.f32 %v3849_v36, %v1126_v44  ;;  %vm449_vm9 = vcmp.eq.s32.totalorder %v4704_v39, %v4684_v31  ;;  %vm517_vm10 = vcmp.eq.s32.totalorder %v4707_v40, %v4684_v31  ;;  %v3673_v51 = vsel %vm381_vm8, 1.0, %v6846_v2 }
  0xb0   : > { %v838_v50 = vadd.f32 %v3770_v35, %v770_v47  ;;  %v3689_v52 = vsel %vm449_vm9, 1.0, %v6846_v2  ;;  %v3705_v54 = vsel %vm517_vm10, 1.0, %v6846_v2  ;;  %vm585_vm11 = vcmp.eq.s32.totalorder %v4710_v41, %v4684_v31 }
  0xb1   : > { %v1262_v55 = vadd.f32 %v3865_v46, %v1194_v49  ;;  %v497_v56 = vadd.f32 %v3689_v52, %v3673_v51  ;;  %vm653_vm12 = vcmp.eq.s32.totalorder %v4713_v42, %v4684_v31  ;;  %v3897_v58 = vsel %vm1350_vm6, 1.0, %v6846_v2 }
  0xb2   : > { %v906_v57 = vadd.f32 %v3786_v37, %v838_v50  ;;  %v3721_v59 = vsel %vm585_vm11, 1.0, %v6846_v2  ;;  %vm721_vm13 = vcmp.eq.s32.totalorder %v4716_v43, %v4684_v31  ;;  %v3913_v61 = vsel %vm1418_vm7, 1.0, %v6846_v2 }
  0xb3   : > { %v1330_v60 = vadd.f32 %v3881_v48, %v1262_v55  ;;  %v565_v62 = vadd.f32 %v3705_v54, %v497_v56  ;;  %v3737_v63 = vsel %vm653_vm12, 1.0, %v6846_v2  ;;  %v3753_v0 = vsel %vm721_vm13, 1.0, %v6846_v2 }
  0xb4   : > { %2670 = vmatpush1.msra.mxu0 %v906_v57  ;;  %vm789_vm14 = vcmp.eq.s32.totalorder %v4723_v45, %v4684_v31  ;;  %vm941_vm15 = vcmp.eq.s32.totalorder %v4648_v19, %v4691_v33  ;;  %vm1009_vm0 = vcmp.eq.s32.totalorder %v4651_v20, %v4691_v33  ;;  %vm857_vm1 = vcmp.eq.s32.totalorder %v4742_v53, %v4684_v31 }
  0xb5   : > { %v1398_v14 = vadd.f32 %v3897_v58, %v1330_v60  ;;  %v633_v27 = vadd.f32 %v3721_v59, %v565_v62  ;;  %v3800_v28 = vsel %vm941_vm15, 1.0, %v6846_v2  ;;  %v3816_v29 = vsel %vm1009_vm0, 1.0, %v6846_v2 }
  0xb6   : > { %vm1077_vm2 = vcmp.eq.s32.totalorder %v4654_v21, %v4691_v33  ;;  %vm1145_vm3 = vcmp.eq.s32.totalorder %v4657_v22, %v4691_v33  ;;  %vm1213_vm4 = vcmp.eq.s32.totalorder %v4660_v23, %v4691_v33  ;;  %v1057_v34 = vadd.f32 %v3816_v29, %v3800_v28 }
  0xb7   : > { %v1466_v30 = vadd.f32 %v3913_v61, %v1398_v14  ;;  %v701_v32 = vadd.f32 %v3737_v63, %v633_v27  ;;  %v3832_v35 = vsel %vm1077_vm2, 1.0, %v6846_v2  ;;  %v3769_v36 = vsel %vm789_vm14, 1.0, %v6846_v2 }
  0xb8   : > { %v3785_v37 = vsel %vm857_vm1, 1.0, %v6846_v2  ;;  %v3848_v44 = vsel %vm1145_vm3, 1.0, %v6846_v2  ;;  %vm1281_vm5 = vcmp.eq.s32.totalorder %v4663_v24, %v4691_v33  ;;  %v1125_v47 = vadd.f32 %v3832_v35, %v1057_v34 }
  0xb9   : > { %2671 = vmatprep.subr.mxu0 %v1466_v30  ;;  %v769_v46 = vadd.f32 %v3753_v0, %v701_v32  ;;  %v3864_v48 = vsel %vm1213_vm4, 1.0, %v6846_v2  ;;  %vm1349_vm6 = vcmp.eq.s32.totalorder %v4666_v25, %v4691_v33  ;;  %v3880_v49 = vsel %vm1281_vm5, 1.0, %v6846_v2 }
  0xba   : > { %vm380_vm7 = vcmp.eq.s32.totalorder %v4701_v38, %v4691_v33  ;;  %vm448_vm8 = vcmp.eq.s32.totalorder %v4704_v39, %v4691_v33  ;;  %vm516_vm9 = vcmp.eq.s32.totalorder %v4707_v40, %v4691_v33  ;;  %v1193_v51 = vadd.f32 %v3848_v44, %v1125_v47 }
  0xbb   : > { %v837_v50 = vadd.f32 %v3769_v36, %v769_v46  ;;  %vm1417_vm10 = vcmp.eq.s32.totalorder %v4669_v26, %v4691_v33  ;;  %v3672_v52 = vsel %vm380_vm7, 1.0, %v6846_v2  ;;  %v3688_v54 = vsel %vm448_vm8, 1.0, %v6846_v2 }
  0xbc   : > { %v3704_v55 = vsel %vm516_vm9, 1.0, %v6846_v2  ;;  %vm584_vm11 = vcmp.eq.s32.totalorder %v4710_v41, %v4691_v33  ;;  %vm652_vm12 = vcmp.eq.s32.totalorder %v4713_v42, %v4691_v33  ;;  %v1261_v57 = vadd.f32 %v3864_v48, %v1193_v51 }
  0xbd   : > { %v905_v56 = vadd.f32 %v3785_v37, %v837_v50  ;;  %v3896_v58 = vsel %vm1349_vm6, 1.0, %v6846_v2  ;;  %v496_v59 = vadd.f32 %v3688_v54, %v3672_v52  ;;  %v3720_v60 = vsel %vm584_vm11, 1.0, %v6846_v2 }
  0xbe   : > { %vm720_vm13 = vcmp.eq.s32.totalorder %v4716_v43, %v4691_v33  ;;  %vm788_vm14 = vcmp.eq.s32.totalorder %v4723_v45, %v4691_v33  ;;  %vm856_vm15 = vcmp.eq.s32.totalorder %v4742_v53, %v4691_v33  ;;  %v1329_v61 = vadd.f32 %v3880_v49, %v1261_v57 }
  0xbf   : > { %2672 = vmatpush1.msra.mxu0 %v905_v56  ;;  %v3912_v62 = vsel %vm1417_vm10, 1.0, %v6846_v2  ;;  %v564_v63 = vadd.f32 %v3704_v55, %v496_v59  ;;  %v3736_v0 = vsel %vm652_vm12, 1.0, %v6846_v2  ;;  %v3752_v14 = vsel %vm720_vm13, 1.0, %v6846_v2 }
  0xc0   : > { %v3768_v27 = vsel %vm788_vm14, 1.0, %v6846_v2  ;;  %v3784_v28 = vsel %vm856_vm15, 1.0, %v6846_v2  ;;  %v5126_v29 = vadd.s32 56, %v4597_v3  ;;  %v1397_v30 = vadd.f32 %v3896_v58, %v1329_v61 }
  0xc1   : > { %v632_v32 = vadd.f32 %v3720_v60, %v564_v63  ;;  %v5129_v34 = vadd.s32 48, %v4597_v3  ;;  %v5132_v35 = vadd.s32 40, %v4597_v3  ;;  %v5148_v49 = vadd.s32 32, %v4597_v3 }
  0xc2   : > { %vm940_vm0 = vcmp.eq.s32.totalorder %v4648_v19, %v5126_v29  ;;  %vm1008_vm1 = vcmp.eq.s32.totalorder %v4651_v20, %v5126_v29  ;;  %vm1076_vm2 = vcmp.eq.s32.totalorder %v4654_v21, %v5126_v29  ;;  %vm1144_vm3 = vcmp.eq.s32.totalorder %v4657_v22, %v5126_v29 }
  0xc3   : > { %v1465_v36 = vadd.f32 %v3912_v62, %v1397_v30  ;;  %v700_v37 = vadd.f32 %v3736_v0, %v632_v32  ;;  %v3799_v44 = vsel %vm940_vm0, 1.0, %v6846_v2  ;;  %v3815_v46 = vsel %vm1008_vm1, 1.0, %v6846_v2 }
  0xc4   : > { %v1056_v47 = vadd.f32 %v3815_v46, %v3799_v44  ;;  %v3831_v48 = vsel %vm1076_vm2, 1.0, %v6846_v2  ;;  %vm1212_vm4 = vcmp.eq.s32.totalorder %v4660_v23, %v5126_v29  ;;  %v3847_v51 = vsel %vm1144_vm3, 1.0, %v6846_v2 }
  0xc5   : > { %2673 = vmatprep.subr.mxu0 %v1465_v36  ;;  %v768_v50 = vadd.f32 %v3752_v14, %v700_v37  ;;  %vm1280_vm5 = vcmp.eq.s32.totalorder %v4663_v24, %v5126_v29  ;;  %v5154_v52 = vadd.s32 24, %v4597_v3  ;;  %v3863_v55 = vsel %vm1212_vm4, 1.0, %v6846_v2 }
  0xc6   : > { %v1124_v54 = vadd.f32 %v3831_v48, %v1056_v47  ;;  %v3879_v56 = vsel %vm1280_vm5, 1.0, %v6846_v2  ;;  %vm1348_vm6 = vcmp.eq.s32.totalorder %v4666_v25, %v5126_v29  ;;  %vm1416_vm7 = vcmp.eq.s32.totalorder %v4669_v26, %v5126_v29 }
  0xc7   : > { %6864 = vst [vmem:[#allocation17_spill] sm:$0xff] %v5154_v52  ;;  %v836_v57 = vadd.f32 %v3768_v27, %v768_v50  ;;  %vm379_vm8 = vcmp.eq.s32.totalorder %v4701_v38, %v5126_v29  ;;  %vm447_vm9 = vcmp.eq.s32.totalorder %v4704_v39, %v5126_v29  ;;  %vm515_vm10 = vcmp.eq.s32.totalorder %v4707_v40, %v5126_v29 }
  0xc8   : > { %v1192_v58 = vadd.f32 %v3847_v51, %v1124_v54  ;;  %v3671_v59 = vsel %vm379_vm8, 1.0, %v6846_v2  ;;  %v3687_v60 = vsel %vm447_vm9, 1.0, %v6846_v2  ;;  %v3703_v63 = vsel %vm515_vm10, 1.0, %v6846_v2 }
  0xc9   : > { %v904_v61 = vadd.f32 %v3784_v28, %v836_v57  ;;  %v495_v62 = vadd.f32 %v3687_v60, %v3671_v59  ;;  %vm583_vm11 = vcmp.eq.s32.totalorder %v4710_v41, %v5126_v29  ;;  %vm651_vm12 = vcmp.eq.s32.totalorder %v4713_v42, %v5126_v29 }
  0xca   : > { %v1260_v0 = vadd.f32 %v3863_v55, %v1192_v58  ;;  %v3719_v14 = vsel %vm583_vm11, 1.0, %v6846_v2  ;;  %vm719_vm13 = vcmp.eq.s32.totalorder %v4716_v43, %v5126_v29  ;;  %v3895_v27 = vsel %vm1348_vm6, 1.0, %v6846_v2 }
  0xcb   : > { %2674 = vmatpush1.msra.mxu0 %v904_v61  ;;  %v3911_v28 = vsel %vm1416_vm7, 1.0, %v6846_v2  ;;  %v563_v30 = vadd.f32 %v3703_v63, %v495_v62  ;;  %v3735_v32 = vsel %vm651_vm12, 1.0, %v6846_v2  ;;  %v3751_v37 = vsel %vm719_vm13, 1.0, %v6846_v2 }
  0xcc   : > { %v1328_v36 = vadd.f32 %v3879_v56, %v1260_v0  ;;  %vm787_vm14 = vcmp.eq.s32.totalorder %v4723_v45, %v5126_v29  ;;  %vm939_vm15 = vcmp.eq.s32.totalorder %v4648_v19, %v5129_v34  ;;  %vm855_vm0 = vcmp.eq.s32.totalorder %v4742_v53, %v5126_v29 }
  0xcd   : > { %v631_v44 = vadd.f32 %v3719_v14, %v563_v30  ;;  %v3798_v46 = vsel %vm939_vm15, 1.0, %v6846_v2  ;;  %vm1007_vm1 = vcmp.eq.s32.totalorder %v4651_v20, %v5129_v34  ;;  %vm1075_vm2 = vcmp.eq.s32.totalorder %v4654_v21, %v5129_v34 }
  0xce   : > { %v1396_v47 = vadd.f32 %v3895_v27, %v1328_v36  ;;  %v3814_v48 = vsel %vm1007_vm1, 1.0, %v6846_v2  ;;  %vm1143_vm3 = vcmp.eq.s32.totalorder %v4657_v22, %v5129_v34  ;;  %v3767_v51 = vsel %vm787_vm14, 1.0, %v6846_v2 }
  0xcf   : > { %v699_v50 = vadd.f32 %v3735_v32, %v631_v44  ;;  %v1055_v54 = vadd.f32 %v3814_v48, %v3798_v46  ;;  %v3830_v55 = vsel %vm1075_vm2, 1.0, %v6846_v2  ;;  %v3846_v57 = vsel %vm1143_vm3, 1.0, %v6846_v2 }
  0xd0   : > { %v1464_v56 = vadd.f32 %v3911_v28, %v1396_v47  ;;  %vm1211_vm4 = vcmp.eq.s32.totalorder %v4660_v23, %v5129_v34  ;;  %vm1279_vm5 = vcmp.eq.s32.totalorder %v4663_v24, %v5129_v34  ;;  %v3783_v59 = vsel %vm855_vm0, 1.0, %v6846_v2 }
  0xd1   : > { %v767_v58 = vadd.f32 %v3751_v37, %v699_v50  ;;  %v1123_v60 = vadd.f32 %v3830_v55, %v1055_v54  ;;  %vm1347_vm6 = vcmp.eq.s32.totalorder %v4666_v25, %v5129_v34  ;;  %v3862_v61 = vsel %vm1211_vm4, 1.0, %v6846_v2 }
  0xd2   : > { %2675 = vmatprep.subr.mxu0 %v1464_v56  ;;  %v3878_v62 = vsel %vm1279_vm5, 1.0, %v6846_v2  ;;  %vm378_vm7 = vcmp.eq.s32.totalorder %v4701_v38, %v5129_v34  ;;  %vm446_vm8 = vcmp.eq.s32.totalorder %v4704_v39, %v5129_v34  ;;  %vm1415_vm9 = vcmp.eq.s32.totalorder %v4669_v26, %v5129_v34 }
  0xd3   : > { %v835_v63 = vadd.f32 %v3767_v51, %v767_v58  ;;  %v1191_v0 = vadd.f32 %v3846_v57, %v1123_v60  ;;  %v3670_v14 = vsel %vm378_vm7, 1.0, %v6846_v2  ;;  %v3686_v27 = vsel %vm446_vm8, 1.0, %v6846_v2 }
  0xd4   : > { %vm514_vm10 = vcmp.eq.s32.totalorder %v4707_v40, %v5129_v34  ;;  %vm582_vm11 = vcmp.eq.s32.totalorder %v4710_v41, %v5129_v34  ;;  %vm650_vm12 = vcmp.eq.s32.totalorder %v4713_v42, %v5129_v34  ;;  %v494_v32 = vadd.f32 %v3686_v27, %v3670_v14 }
  0xd5   : > { %v903_v28 = vadd.f32 %v3783_v59, %v835_v63  ;;  %v1259_v30 = vadd.f32 %v3862_v61, %v1191_v0  ;;  %v3702_v36 = vsel %vm514_vm10, 1.0, %v6846_v2  ;;  %v3894_v37 = vsel %vm1347_vm6, 1.0, %v6846_v2 }
  0xd6   : > { %v3910_v44 = vsel %vm1415_vm9, 1.0, %v6846_v2  ;;  %v3718_v46 = vsel %vm582_vm11, 1.0, %v6846_v2  ;;  %vm718_vm13 = vcmp.eq.s32.totalorder %v4716_v43, %v5129_v34  ;;  %v562_v48 = vadd.f32 %v3702_v36, %v494_v32 }
  0xd7   : > { %2676 = vmatpush1.msra.mxu0 %v903_v28  ;;  %v1327_v47 = vadd.f32 %v3878_v62, %v1259_v30  ;;  %v3734_v50 = vsel %vm650_vm12, 1.0, %v6846_v2  ;;  %vm786_vm14 = vcmp.eq.s32.totalorder %v4723_v45, %v5129_v34  ;;  %v3750_v51 = vsel %vm718_vm13, 1.0, %v6846_v2 }
  0xd8   : > { %vm938_vm15 = vcmp.eq.s32.totalorder %v4648_v19, %v5132_v35  ;;  %vm1006_vm0 = vcmp.eq.s32.totalorder %v4651_v20, %v5132_v35  ;;  %vm1074_vm1 = vcmp.eq.s32.totalorder %v4654_v21, %v5132_v35  ;;  %v630_v55 = vadd.f32 %v3718_v46, %v562_v48 }
  0xd9   : > { %v1395_v54 = vadd.f32 %v3894_v37, %v1327_v47  ;;  %vm854_vm2 = vcmp.eq.s32.totalorder %v4742_v53, %v5129_v34  ;;  %v3797_v56 = vsel %vm938_vm15, 1.0, %v6846_v2  ;;  %v3813_v57 = vsel %vm1006_vm0, 1.0, %v6846_v2 }
  0xda   : > { %v3829_v58 = vsel %vm1074_vm1, 1.0, %v6846_v2  ;;  %vm1142_vm3 = vcmp.eq.s32.totalorder %v4657_v22, %v5132_v35  ;;  %vm1210_vm4 = vcmp.eq.s32.totalorder %v4660_v23, %v5132_v35  ;;  %v698_v60 = vadd.f32 %v3734_v50, %v630_v55 }
  0xdb   : > { %v1463_v59 = vadd.f32 %v3910_v44, %v1395_v54  ;;  %v3766_v61 = vsel %vm786_vm14, 1.0, %v6846_v2  ;;  %v1054_v62 = vadd.f32 %v3813_v57, %v3797_v56  ;;  %v3782_v63 = vsel %vm854_vm2, 1.0, %v6846_v2 }
  0xdc   : > { %v3845_v0 = vsel %vm1142_vm3, 1.0, %v6846_v2  ;;  %v3861_v14 = vsel %vm1210_vm4, 1.0, %v6846_v2  ;;  %vm1278_vm5 = vcmp.eq.s32.totalorder %v4663_v24, %v5132_v35  ;;  %v766_v27 = vadd.f32 %v3750_v51, %v698_v60 }
  0xdd   : > { %2677 = vmatprep.subr.mxu0 %v1463_v59  ;;  %v1122_v28 = vadd.f32 %v3829_v58, %v1054_v62  ;;  %vm1346_vm6 = vcmp.eq.s32.totalorder %v4666_v25, %v5132_v35  ;;  %vm1414_vm7 = vcmp.eq.s32.totalorder %v4669_v26, %v5132_v35  ;;  %v3877_v30 = vsel %vm1278_vm5, 1.0, %v6846_v2 }
  0xde   : > { %vm377_vm8 = vcmp.eq.s32.totalorder %v4701_v38, %v5132_v35  ;;  %vm445_vm9 = vcmp.eq.s32.totalorder %v4704_v39, %v5132_v35  ;;  %vm513_vm10 = vcmp.eq.s32.totalorder %v4707_v40, %v5132_v35  ;;  %v834_v32 = vadd.f32 %v3766_v61, %v766_v27 }
  0xdf   : > { %v1190_v36 = vadd.f32 %v3845_v0, %v1122_v28  ;;  %v3669_v37 = vsel %vm377_vm8, 1.0, %v6846_v2  ;;  %v3685_v44 = vsel %vm445_vm9, 1.0, %v6846_v2  ;;  %v3701_v47 = vsel %vm513_vm10, 1.0, %v6846_v2 }
  0xe0   : > { %v493_v46 = vadd.f32 %v3685_v44, %v3669_v37  ;;  %vm581_vm11 = vcmp.eq.s32.totalorder %v4710_v41, %v5132_v35  ;;  %vm649_vm12 = vcmp.eq.s32.totalorder %v4713_v42, %v5132_v35  ;;  %v902_v48 = vadd.f32 %v3782_v63, %v834_v32 }
  0xe1   : > { %v1258_v50 = vadd.f32 %v3861_v14, %v1190_v36  ;;  %v3893_v51 = vsel %vm1346_vm6, 1.0, %v6846_v2  ;;  %v3717_v54 = vsel %vm581_vm11, 1.0, %v6846_v2  ;;  %v3909_v55 = vsel %vm1414_vm7, 1.0, %v6846_v2 }
  0xe2   : > { %v561_v56 = vadd.f32 %v3701_v47, %v493_v46  ;;  %v3733_v57 = vsel %vm649_vm12, 1.0, %v6846_v2  ;;  %vm717_vm13 = vcmp.eq.s32.totalorder %v4716_v43, %v5132_v35  ;;  %2678 = vmatpush1.msra.mxu0 %v902_v48  ;;  %vm785_vm14 = vcmp.eq.s32.totalorder %v4723_v45, %v5132_v35 }
  0xe3   : > { %v1326_v58 = vadd.f32 %v3877_v30, %v1258_v50  ;;  %v3749_v59 = vsel %vm717_vm13, 1.0, %v6846_v2  ;;  %vm853_vm15 = vcmp.eq.s32.totalorder %v4742_v53, %v5132_v35  ;;  %vm937_vm0 = vcmp.eq.s32.totalorder %v4648_v19, %v5148_v49 }
  0xe4   : > { %v629_v60 = vadd.f32 %v3717_v54, %v561_v56  ;;  %vm1005_vm1 = vcmp.eq.s32.totalorder %v4651_v20, %v5148_v49  ;;  %vm1073_vm2 = vcmp.eq.s32.totalorder %v4654_v21, %v5148_v49  ;;  %v3796_v62 = vsel %vm937_vm0, 1.0, %v6846_v2 }
  0xe5   : > { %v1394_v61 = vadd.f32 %v3893_v51, %v1326_v58  ;;  %v3812_v63 = vsel %vm1005_vm1, 1.0, %v6846_v2  ;;  %v3828_v0 = vsel %vm1073_vm2, 1.0, %v6846_v2  ;;  %vm1141_vm3 = vcmp.eq.s32.totalorder %v4657_v22, %v5148_v49 }
  0xe6   : > { %v697_v14 = vadd.f32 %v3733_v57, %v629_v60  ;;  %v1053_v27 = vadd.f32 %v3812_v63, %v3796_v62  ;;  %vm1209_vm4 = vcmp.eq.s32.totalorder %v4660_v23, %v5148_v49  ;;  %v3765_v30 = vsel %vm785_vm14, 1.0, %v6846_v2 }
  0xe7   : > { %v1462_v28 = vadd.f32 %v3909_v55, %v1394_v61  ;;  %v3844_v32 = vsel %vm1141_vm3, 1.0, %v6846_v2  ;;  %vm1277_vm5 = vcmp.eq.s32.totalorder %v4663_v24, %v5148_v49  ;;  %v3781_v37 = vsel %vm853_vm15, 1.0, %v6846_v2 }
  0xe8   : > { %v765_v36 = vadd.f32 %v3749_v59, %v697_v14  ;;  %v1121_v44 = vadd.f32 %v3828_v0, %v1053_v27  ;;  %v3860_v46 = vsel %vm1209_vm4, 1.0, %v6846_v2  ;;  %v3876_v47 = vsel %vm1277_vm5, 1.0, %v6846_v2 }
  0xe9   : > { %2679 = vmatprep.subr.mxu0 %v1462_v28  ;;  %vm1345_vm6 = vcmp.eq.s32.totalorder %v4666_v25, %v5148_v49  ;;  %vm376_vm7 = vcmp.eq.s32.totalorder %v4701_v38, %v5148_v49  ;;  %vm444_vm8 = vcmp.eq.s32.totalorder %v4704_v39, %v5148_v49  ;;  %vm1413_vm9 = vcmp.eq.s32.totalorder %v4669_v26, %v5148_v49 }
  0xea   : > { %v833_v48 = vadd.f32 %v3765_v30, %v765_v36  ;;  %v1189_v50 = vadd.f32 %v3844_v32, %v1121_v44  ;;  %v3668_v51 = vsel %vm376_vm7, 1.0, %v6846_v2  ;;  %v3684_v54 = vsel %vm444_vm8, 1.0, %v6846_v2 }
  0xeb   : > { %vm512_vm10 = vcmp.eq.s32.totalorder %v4707_v40, %v5148_v49  ;;  %vm580_vm11 = vcmp.eq.s32.totalorder %v4710_v41, %v5148_v49  ;;  %vm648_vm12 = vcmp.eq.s32.totalorder %v4713_v42, %v5148_v49  ;;  %v492_v57 = vadd.f32 %v3684_v54, %v3668_v51 }
  0xec   : > { %v901_v55 = vadd.f32 %v3781_v37, %v833_v48  ;;  %v1257_v56 = vadd.f32 %v3860_v46, %v1189_v50  ;;  %v3700_v58 = vsel %vm512_vm10, 1.0, %v6846_v2  ;;  %v3892_v59 = vsel %vm1345_vm6, 1.0, %v6846_v2 }
  0xed   : > { %v3908_v60 = vsel %vm1413_vm9, 1.0, %v6846_v2  ;;  %v3716_v61 = vsel %vm580_vm11, 1.0, %v6846_v2  ;;  %vm716_vm13 = vcmp.eq.s32.totalorder %v4716_v43, %v5148_v49  ;;  %v560_v63 = vadd.f32 %v3700_v58, %v492_v57 }
  0xee   : > { %2680 = vmatpush1.msra.mxu0 %v901_v55  ;;  %v1325_v62 = vadd.f32 %v3876_v47, %v1257_v56  ;;  %v3732_v0 = vsel %vm648_vm12, 1.0, %v6846_v2  ;;  %vm784_vm14 = vcmp.eq.s32.totalorder %v4723_v45, %v5148_v49  ;;  %v3748_v14 = vsel %vm716_vm13, 1.0, %v6846_v2 }
  0xef   : > { %vm936_vm15 = vcmp.eq.s32.totalorder %v4648_v19, %v5154_v52  ;;  %vm1004_vm0 = vcmp.eq.s32.totalorder %v4651_v20, %v5154_v52  ;;  %vm1072_vm1 = vcmp.eq.s32.totalorder %v4654_v21, %v5154_v52  ;;  %v628_v28 = vadd.f32 %v3716_v61, %v560_v63 }
  0xf0   : > { %v1393_v27 = vadd.f32 %v3892_v59, %v1325_v62  ;;  %vm852_vm2 = vcmp.eq.s32.totalorder %v4742_v53, %v5148_v49  ;;  %v3795_v30 = vsel %vm936_vm15, 1.0, %v6846_v2  ;;  %v3811_v32 = vsel %vm1004_vm0, 1.0, %v6846_v2 }
  0xf1   : > { %v3827_v36 = vsel %vm1072_vm1, 1.0, %v6846_v2  ;;  %vm1140_vm3 = vcmp.eq.s32.totalorder %v4657_v22, %v5154_v52  ;;  %vm1208_vm4 = vcmp.eq.s32.totalorder %v4660_v23, %v5154_v52  ;;  %v696_v44 = vadd.f32 %v3732_v0, %v628_v28 }
  0xf2   : > { %v1461_v37 = vadd.f32 %v3908_v60, %v1393_v27  ;;  %v3764_v46 = vsel %vm784_vm14, 1.0, %v6846_v2  ;;  %v1052_v47 = vadd.f32 %v3811_v32, %v3795_v30  ;;  %v3780_v48 = vsel %vm852_vm2, 1.0, %v6846_v2 }
  0xf3   : > { %v3843_v50 = vsel %vm1140_vm3, 1.0, %v6846_v2  ;;  %v3859_v51 = vsel %vm1208_vm4, 1.0, %v6846_v2  ;;  %vm1276_vm5 = vcmp.eq.s32.totalorder %v4663_v24, %v5154_v52  ;;  %v764_v54 = vadd.f32 %v3748_v14, %v696_v44 }
  0xf4   : > { %2681 = vmatprep.subr.mxu0 %v1461_v37  ;;  %v1120_v55 = vadd.f32 %v3827_v36, %v1052_v47  ;;  %vm1344_vm6 = vcmp.eq.s32.totalorder %v4666_v25, %v5154_v52  ;;  %vm1412_vm7 = vcmp.eq.s32.totalorder %v4669_v26, %v5154_v52  ;;  %v3875_v56 = vsel %vm1276_vm5, 1.0, %v6846_v2 }
  0xf5   : > { %vm375_vm8 = vcmp.eq.s32.totalorder %v4701_v38, %v5154_v52  ;;  %vm443_vm9 = vcmp.eq.s32.totalorder %v4704_v39, %v5154_v52  ;;  %vm511_vm10 = vcmp.eq.s32.totalorder %v4707_v40, %v5154_v52  ;;  %v832_v57 = vadd.f32 %v3764_v46, %v764_v54 }
  0xf6   : > { %v1188_v58 = vadd.f32 %v3843_v50, %v1120_v55  ;;  %v3667_v59 = vsel %vm375_vm8, 1.0, %v6846_v2  ;;  %v3683_v60 = vsel %vm443_vm9, 1.0, %v6846_v2  ;;  %v3699_v62 = vsel %vm511_vm10, 1.0, %v6846_v2 }
  0xf7   : > { %v491_v61 = vadd.f32 %v3683_v60, %v3667_v59  ;;  %vm579_vm11 = vcmp.eq.s32.totalorder %v4710_v41, %v5154_v52  ;;  %vm647_vm12 = vcmp.eq.s32.totalorder %v4713_v42, %v5154_v52  ;;  %v900_v63 = vadd.f32 %v3780_v48, %v832_v57 }
  0xf8   : > { %v1256_v0 = vadd.f32 %v3859_v51, %v1188_v58  ;;  %v3891_v14 = vsel %vm1344_vm6, 1.0, %v6846_v2  ;;  %v3715_v27 = vsel %vm579_vm11, 1.0, %v6846_v2  ;;  %vm715_vm13 = vcmp.eq.s32.totalorder %v4716_v43, %v5154_v52 }
  0xf9   : > { %v559_v28 = vadd.f32 %v3699_v62, %v491_v61  ;;  %vm783_vm14 = vcmp.eq.s32.totalorder %v4723_v45, %v5154_v52  ;;  %vm851_vm15 = vcmp.eq.s32.totalorder %v4742_v53, %v5154_v52  ;;  %2682 = vmatpush1.msra.mxu0 %v900_v63  ;;  %v3731_v32 = vsel %vm647_vm12, 1.0, %v6846_v2 }
  0xfa   : > { %v1324_v30 = vadd.f32 %v3875_v56, %v1256_v0  ;;  %v3907_v36 = vsel %vm1412_vm7, 1.0, %v6846_v2  ;;  %v3747_v44 = vsel %vm715_vm13, 1.0, %v6846_v2  ;;  %v5406_v46 = vadd.s32 16, %v4597_v3 }
  0xfb   : > { %v627_v37 = vadd.f32 %v3715_v27, %v559_v28  ;;  %v3763_v48 = vsel %vm783_vm14, 1.0, %v6846_v2  ;;  %v3779_v50 = vsel %vm851_vm15, 1.0, %v6846_v2  ;;  %vm933_vm0 = vcmp.eq.s32.totalorder %v4648_v19, %v4597_v3 }
  0xfc   : > { %6865 = vst [vmem:[#allocation18_spill] sm:$0xff] %v5406_v46  ;;  %v1392_v47 = vadd.f32 %v3891_v14, %v1324_v30  ;;  %vm935_vm1 = vcmp.eq.s32.totalorder %v4648_v19, %v5406_v46  ;;  %vm1003_vm2 = vcmp.eq.s32.totalorder %v4651_v20, %v5406_v46  ;;  %vm1071_vm3 = vcmp.eq.s32.totalorder %v4654_v21, %v5406_v46 }
  0xfd   : > { %v695_v51 = vadd.f32 %v3731_v32, %v627_v37  ;;  %v3794_v55 = vsel %vm935_vm1, 1.0, %v6846_v2  ;;  %v3810_v56 = vsel %vm1003_vm2, 1.0, %v6846_v2  ;;  %v3826_v57 = vsel %vm1071_vm3, 1.0, %v6846_v2 }
  0xfe   : > { %v1460_v54 = vadd.f32 %v3907_v36, %v1392_v47  ;;  %v1051_v59 = vadd.f32 %v3810_v56, %v3794_v55  ;;  %vm1139_vm4 = vcmp.eq.s32.totalorder %v4657_v22, %v5406_v46  ;;  %vm1207_vm5 = vcmp.eq.s32.totalorder %v4660_v23, %v5406_v46 }
  0xff   : > { %v763_v58 = vadd.f32 %v3747_v44, %v695_v51  ;;  %v3842_v60 = vsel %vm1139_vm4, 1.0, %v6846_v2  ;;  %vm1275_vm6 = vcmp.eq.s32.totalorder %v4663_v24, %v5406_v46  ;;  %v5429_v61 = vadd.s32 8, %v4597_v3 }
 0x100   : > { %2683 = vmatprep.subr.mxu0 %v1460_v54  ;;  %v5435_v62 = vsel %vm933_vm0, 1.0, %v6846_v2  ;;  %v1119_v0 = vadd.f32 %v3826_v57, %v1051_v59  ;;  %v3858_v14 = vsel %vm1207_vm5, 1.0, %v6846_v2  ;;  %vm1343_vm7 = vcmp.eq.s32.totalorder %v4666_v25, %v5406_v46 }
 0x101   : > { %6866 = vst [vmem:[#allocation19_spill] sm:$0xff] %v5429_v61  ;;  %v831_v63 = vadd.f32 %v3763_v48, %v763_v58  ;;  %vm1411_vm8 = vcmp.eq.s32.totalorder %v4669_v26, %v5406_v46  ;;  %vm374_vm9 = vcmp.eq.s32.totalorder %v4701_v38, %v5406_v46  ;;  %vm442_vm10 = vcmp.eq.s32.totalorder %v4704_v39, %v5406_v46 }
 0x102   : > { %vm510_vm11 = vcmp.eq.s32.totalorder %v4707_v40, %v5406_v46  ;;  %v1187_v28 = vadd.f32 %v3842_v60, %v1119_v0  ;;  %v3874_v30 = vsel %vm1275_vm6, 1.0, %v6846_v2  ;;  %v3666_v32 = vsel %vm374_vm9, 1.0, %v6846_v2 }
 0x103   : > { %v899_v27 = vadd.f32 %v3779_v50, %v831_v63  ;;  %v3682_v36 = vsel %vm442_vm10, 1.0, %v6846_v2  ;;  %v3698_v37 = vsel %vm510_vm11, 1.0, %v6846_v2  ;;  %vm578_vm12 = vcmp.eq.s32.totalorder %v4710_v41, %v5406_v46 }
 0x104   : > { %vm646_vm13 = vcmp.eq.s32.totalorder %v4713_v42, %v5406_v46  ;;  %v1255_v44 = vadd.f32 %v3858_v14, %v1187_v28  ;;  %v3890_v47 = vsel %vm1343_vm7, 1.0, %v6846_v2  ;;  %v3906_v48 = vsel %vm1411_vm8, 1.0, %v6846_v2 }
 0x105   : > { %2684 = vmatpush1.msra.mxu0 %v899_v27  ;;  %v490_v50 = vadd.f32 %v3682_v36, %v3666_v32  ;;  %v3714_v51 = vsel %vm578_vm12, 1.0, %v6846_v2  ;;  %v3730_v54 = vsel %vm646_vm13, 1.0, %v6846_v2  ;;  %vm714_vm14 = vcmp.eq.s32.totalorder %v4716_v43, %v5406_v46 }
 0x106   : > { %vm934_vm15 = vcmp.eq.s32.totalorder %v4648_v19, %v5429_v61  ;;  %v1323_v55 = vadd.f32 %v3874_v30, %v1255_v44  ;;  %vm782_vm0 = vcmp.eq.s32.totalorder %v4723_v45, %v5406_v46  ;;  %vm850_vm1 = vcmp.eq.s32.totalorder %v4742_v53, %v5406_v46 }
 0x107   : > { %v558_v56 = vadd.f32 %v3698_v37, %v490_v50  ;;  %v3746_v57 = vsel %vm714_vm14, 1.0, %v6846_v2  ;;  %v3793_v58 = vsel %vm934_vm15, 1.0, %v6846_v2  ;;  %vm1002_vm2 = vcmp.eq.s32.totalorder %v4651_v20, %v5429_v61 }
 0x108   : > { %vm1070_vm3 = vcmp.eq.s32.totalorder %v4654_v21, %v5429_v61  ;;  %vm1001_vm4 = vcmp.eq.s32.totalorder %v4651_v20, %v4597_v3  ;;  %v1391_v19 = vadd.f32 %v3890_v47, %v1323_v55  ;;  %v3809_v60 = vsel %vm1002_vm2, 1.0, %v6846_v2 }
 0x109   : > { %v626_v59 = vadd.f32 %v3714_v51, %v558_v56  ;;  %v3825_v63 = vsel %vm1070_vm3, 1.0, %v6846_v2  ;;  %v1050_v0 = vadd.f32 %v3809_v60, %v3793_v58  ;;  %vm1138_vm5 = vcmp.eq.s32.totalorder %v4657_v22, %v5429_v61 }
 0x10a   : > { %vm1206_vm6 = vcmp.eq.s32.totalorder %v4660_v23, %v5429_v61  ;;  %vm1274_vm7 = vcmp.eq.s32.totalorder %v4663_v24, %v5429_v61  ;;  %v1459_v14 = vadd.f32 %v3906_v48, %v1391_v19  ;;  %v3762_v28 = vsel %vm782_vm0, 1.0, %v6846_v2 }
 0x10b   : > { %v694_v27 = vadd.f32 %v3730_v54, %v626_v59  ;;  %v3841_v30 = vsel %vm1138_vm5, 1.0, %v6846_v2  ;;  %v3778_v32 = vsel %vm850_vm1, 1.0, %v6846_v2  ;;  %v1118_v36 = vadd.f32 %v3825_v63, %v1050_v0 }
 0x10c   : > { %v3857_v37 = vsel %vm1206_vm6, 1.0, %v6846_v2  ;;  %v3873_v44 = vsel %vm1274_vm7, 1.0, %v6846_v2  ;;  %2685 = vmatprep.subr.mxu0 %v1459_v14  ;;  %vm1342_vm8 = vcmp.eq.s32.totalorder %v4666_v25, %v5429_v61  ;;  %vm1410_vm9 = vcmp.eq.s32.totalorder %v4669_v26, %v5429_v61 }
 0x10d   : > { %v762_v47 = vadd.f32 %v3746_v57, %v694_v27  ;;  %vm373_vm10 = vcmp.eq.s32.totalorder %v4701_v38, %v5429_v61  ;;  %v1186_v48 = vadd.f32 %v3841_v30, %v1118_v36  ;;  %vm441_vm11 = vcmp.eq.s32.totalorder %v4704_v39, %v5429_v61 }
 0x10e   : > { %v3665_v50 = vsel %vm373_vm10, 1.0, %v6846_v2  ;;  %vm509_vm12 = vcmp.eq.s32.totalorder %v4707_v40, %v5429_v61  ;;  %v3681_v54 = vsel %vm441_vm11, 1.0, %v6846_v2  ;;  %vm577_vm13 = vcmp.eq.s32.totalorder %v4710_v41, %v5429_v61 }
 0x10f   : > { %v830_v51 = vadd.f32 %v3762_v28, %v762_v47  ;;  %v3697_v55 = vsel %vm509_vm12, 1.0, %v6846_v2  ;;  %v1254_v56 = vadd.f32 %v3857_v37, %v1186_v48  ;;  %v489_v57 = vadd.f32 %v3681_v54, %v3665_v50 }
 0x110   : > { %vm645_vm14 = vcmp.eq.s32.totalorder %v4713_v42, %v5429_v61  ;;  %vm1069_vm15 = vcmp.eq.s32.totalorder %v4654_v21, %v4597_v3  ;;  %v3889_v19 = vsel %vm1342_vm8, 1.0, %v6846_v2  ;;  %v3905_v59 = vsel %vm1410_vm9, 1.0, %v6846_v2 }
 0x111   : > { %v898_v58 = vadd.f32 %v3778_v32, %v830_v51  ;;  %v3713_v60 = vsel %vm577_vm13, 1.0, %v6846_v2  ;;  %v1322_v63 = vadd.f32 %v3873_v44, %v1254_v56  ;;  %v557_v0 = vadd.f32 %v3697_v55, %v489_v57 }
 0x112   : > { %v3729_v14 = vsel %vm645_vm14, 1.0, %v6846_v2  ;;  %vm713_vm0 = vcmp.eq.s32.totalorder %v4716_v43, %v5429_v61  ;;  %vm781_vm1 = vcmp.eq.s32.totalorder %v4723_v45, %v5429_v61  ;;  %v3808_v21 = vsel %vm1001_vm4, 1.0, %v6846_v2 }
 0x113   : > { %2686 = vmatpush1.msra.mxu0 %v898_v58  ;;  %v3824_v27 = vsel %vm1069_vm15, 1.0, %v6846_v2  ;;  %vm1137_vm2 = vcmp.eq.s32.totalorder %v4657_v22, %v4597_v3  ;;  %v1390_v28 = vadd.f32 %v3889_v19, %v1322_v63  ;;  %v625_v30 = vadd.f32 %v3713_v60, %v557_v0 }
 0x114   : > { %vm849_vm3 = vcmp.eq.s32.totalorder %v4742_v53, %v5429_v61  ;;  %v1049_v32 = vadd.f32 %v3808_v21, %v5435_v62  ;;  %v3745_v36 = vsel %vm713_vm0, 1.0, %v6846_v2  ;;  %v3840_v37 = vsel %vm1137_vm2, 1.0, %v6846_v2 }
 0x115   : > { %vm1205_vm5 = vcmp.eq.s32.totalorder %v4660_v23, %v4597_v3  ;;  %vm1273_vm4 = vcmp.eq.s32.totalorder %v4663_v24, %v4597_v3  ;;  %v1458_v20 = vadd.f32 %v3905_v59, %v1390_v28  ;;  %v693_v44 = vadd.f32 %v3729_v14, %v625_v30  ;;  %v2611_v30 = vld [vmem:[#allocation7] sm:$0xff] }
 0x116   : > { %v3761_v22 = vsel %vm781_vm1, 1.0, %v6846_v2  ;;  %v1117_v47 = vadd.f32 %v3824_v27, %v1049_v32  ;;  %v3777_v48 = vsel %vm849_vm3, 1.0, %v6846_v2  ;;  %v3856_v50 = vsel %vm1205_vm5, 1.0, %v6846_v2  ;;  %v2613_v32 = vld [vmem:[#allocation7 + $0x10] sm:$0xff] }
 0x117   : > { %vm1341_vm6 = vcmp.eq.s32.totalorder %v4666_v25, %v4597_v3  ;;  %vm372_vm7 = vcmp.eq.s32.totalorder %v4701_v38, %v4597_v3  ;;  %2687 = vmatprep.subr.mxu0 %v1458_v20  ;;  %v761_v23 = vadd.f32 %v3745_v36, %v693_v44  ;;  %v3872_v24 = vsel %vm1273_vm4, 1.0, %v6846_v2  ;;  %v2615_v36 = vld [vmem:[#allocation7 + $0x20] sm:$0xff]  ;;  %v2617_v20 = vld [vmem:[#allocation7 + $0x30] sm:$0xff]  ;;  %v2618_v44 = vld [vmem:[#allocation7 + $0x38] sm:$0xff] }
 0x118   : > { %v1185_v62 = vadd.f32 %v3840_v37, %v1117_v47  ;;  %v3664_v51 = vsel %vm372_vm7, 1.0, %v6846_v2  ;;  %vm1409_vm8 = vcmp.eq.s32.totalorder %v4669_v26, %v4597_v3  ;;  %vm440_vm9 = vcmp.eq.s32.totalorder %v4704_v39, %v4597_v3  ;;  %v2616_v37 = vld [vmem:[#allocation7 + $0x28] sm:$0xff] }
 0x119   : > { %vm508_vm10 = vcmp.eq.s32.totalorder %v4707_v40, %v4597_v3  ;;  %vm576_vm11 = vcmp.eq.s32.totalorder %v4710_v41, %v4597_v3  ;;  %v829_v25 = vadd.f32 %v3761_v22, %v761_v23  ;;  %v3680_v54 = vsel %vm440_vm9, 1.0, %v6846_v2  ;;  %v2619_v22 = vld [vmem:[#allocation7 + $0x40] sm:$0xff]  ;;  %v2620_v47 = vld [vmem:[#allocation7 + $0x48] sm:$0xff] }
 0x11a   : > { %v1253_v38 = vadd.f32 %v3856_v50, %v1185_v62  ;;  %v3696_v55 = vsel %vm508_vm10, 1.0, %v6846_v2  ;;  %v3888_v56 = vsel %vm1341_vm6, 1.0, %v6846_v2  ;;  %v488_v57 = vadd.f32 %v3680_v54, %v3664_v51  ;;  %v2622_v50 = vld [vmem:[#allocation7 + $0x58] sm:$0xff]  ;;  %v2623_v23 = vld [vmem:[#allocation7 + $0x60] sm:$0xff]  ;;  %v2624_v62 = vld [vmem:[#allocation7 + $0x68] sm:$0xff] }
 0x11b   : > { %vm644_vm12 = vcmp.eq.s32.totalorder %v4713_v42, %v4597_v3  ;;  %v897_v26 = vadd.f32 %v3777_v48, %v829_v25  ;;  %v3712_v58 = vsel %vm576_vm11, 1.0, %v6846_v2  ;;  %v3904_v40 = vsel %vm1409_vm8, 1.0, %v6846_v2  ;;  %v2621_v48 = vld [vmem:[#allocation7 + $0x50] sm:$0xff]  ;;  %v2626_v51 = vld [vmem:[#allocation7 + $0x78] sm:$0xff] }
 0x11c   : > { %v1321_v39 = vadd.f32 %v3872_v24, %v1253_v38  ;;  %v556_v19 = vadd.f32 %v3696_v55, %v488_v57  ;;  %vm712_vm13 = vcmp.eq.s32.totalorder %v4716_v43, %v4597_v3  ;;  %v3728_v59 = vsel %vm644_vm12, 1.0, %v6846_v2  ;;  %v2625_v24 = vld [vmem:[#allocation7 + $0x70] sm:$0xff]  ;;  %v1489_v55 = vld [vmem:[%s4623_s21 + $0x10] sm:$0xff] }
 0x11d   : > { %2688 = vmatpush1.msra.mxu0 %v897_v26  ;;  %vm780_vm14 = vcmp.eq.s32.totalorder %v4723_v45, %v4597_v3  ;;  %v3744_v42 = vsel %vm712_vm13, 1.0, %v6846_v2  ;;  %vm848_vm15 = vcmp.eq.s32.totalorder %v4742_v53, %v4597_v3  ;;  %v2612_v45 = vld [vmem:[#allocation7 + $0x8] sm:$0xff]  ;;  %v2614_v53 = vld [vmem:[#allocation7 + $0x18] sm:$0xff]  ;;  %v5606_v57 = vrot.slane %v1489_v55, %v4603_v5 }
 0x11e   : > { %v1389_v41 = vadd.f32 %v3888_v56, %v1321_v39  ;;  %v624_v60 = vadd.f32 %v3712_v58, %v556_v19  ;;  %v3760_v14 = vsel %vm780_vm14, 1.0, %v6846_v2  ;;  %v3776_v43 = vsel %vm848_vm15, 1.0, %v6846_v2  ;;  %v2050_v25 = vld [vmem:[%s4623_s21 + $0x18] sm:$0xff] }
 0x11f   : > { %v5596_v38 = vrot.slane %v2050_v25, %v4600_v4  ;;  %v5599_v54 = vrot.slane %v2050_v25, %v4603_v5  ;;  %v5603_v56 = vrot.slane %v1489_v55, %v4600_v4  ;;  %v5613_v26 = vrot.slane %v2050_v25, %v4606_v6 }
 0x120   : > { %v1457_v63 = vadd.f32 %v3904_v40, %v1389_v41  ;;  %v692_v0 = vadd.f32 %v3728_v59, %v624_v60  ;;  %vm1577_vm3 = vcmp.eq.s32.totalorder %v5606_v57, %v4626_v11  ;;  %v5624_v19 = vrot.slane %v2050_v25, %v4609_v7 }
 0x121   : > { %vm2070_vm0 = vcmp.eq.s32.totalorder %v5596_v38, %v4626_v11  ;;  %vm2138_vm1 = vcmp.eq.s32.totalorder %v5599_v54, %v4626_v11  ;;  %vm1509_vm2 = vcmp.eq.s32.totalorder %v5603_v56, %v4626_v11  ;;  %vm2206_vm5 = vcmp.eq.s32.totalorder %v5613_v26, %v4626_v11 }
 0x122   : > { %2689 = vmatprep.subr.mxu0 %v1457_v63  ;;  %v760_v21 = vadd.f32 %v3744_v42, %v692_v0  ;;  %v4063_v39 = vsel %vm2070_vm0, 1.0, %v6846_v2  ;;  %v4079_v58 = vsel %vm2138_vm1, 1.0, %v6846_v2  ;;  %v3935_v41 = vsel %vm1509_vm2, 1.0, %v6846_v2 }
 0x123   : > { %v2186_v40 = vadd.f32 %v4079_v58, %v4063_v39  ;;  %v4095_v59 = vsel %vm2206_vm5, 1.0, %v6846_v2  ;;  %v3951_v60 = vsel %vm1577_vm3, 1.0, %v6846_v2  ;;  %v5630_v63 = vrot.slane %v1489_v55, %v4606_v6 }
 0x124   : > { %v828_v27 = vadd.f32 %v3760_v14, %v760_v21  ;;  %v5633_v42 = vrot.slane %v1489_v55, %v4609_v7  ;;  %vm2274_vm4 = vcmp.eq.s32.totalorder %v5624_v19, %v4626_v11  ;;  %v5638_v14 = vrot.slane %v2050_v25, %v4612_v8 }
 0x125   : > { %v2254_v0 = vadd.f32 %v4095_v59, %v2186_v40  ;;  %v1625_v21 = vadd.f32 %v3951_v60, %v3935_v41  ;;  %vm1645_vm6 = vcmp.eq.s32.totalorder %v5630_v63, %v4626_v11  ;;  %v5646_v6 = vrot.slane %v1489_v55, %v4612_v8 }
 0x126   : > { %v896_v28 = vadd.f32 %v3776_v43, %v828_v27  ;;  %v4111_v43 = vsel %vm2274_vm4, 1.0, %v6846_v2  ;;  %vm1713_vm7 = vcmp.eq.s32.totalorder %v5633_v42, %v4626_v11  ;;  %vm2342_vm8 = vcmp.eq.s32.totalorder %v5638_v14, %v4626_v11 }
 0x127   : > { %v2322_v7 = vadd.f32 %v4111_v43, %v2254_v0  ;;  %v5651_v27 = vrot.slane %v2050_v25, %v4615_v9  ;;  %vm1781_vm9 = vcmp.eq.s32.totalorder %v5646_v6, %v4626_v11  ;;  %v5661_v8 = vrot.slane %v2050_v25, %v4618_v10 }
 0x128   : > { %2690 = vmatpush1.msra.mxu0 %v896_v28  ;;  %v3967_v28 = vsel %vm1645_vm6, 1.0, %v6846_v2  ;;  %vm2069_vm12 = vcmp.eq.s32.totalorder %v5596_v38, %v4632_v13  ;;  %v5692_v39 = vrot.slane %v1489_v55, %v4629_v12  ;;  %vm2137_vm0 = vcmp.eq.s32.totalorder %v5599_v54, %v4632_v13 }
 0x129   : > { %2724 = vmatmul.mubr.f32.vlgmr.msra.gmra.mxu0 %v2611_v30  ;;  %v4127_v30 = vsel %vm2342_vm8, 1.0, %v6846_v2  ;;  %vm2410_vm10 = vcmp.eq.s32.totalorder %v5651_v27, %v4626_v11  ;;  %vm2478_vm11 = vcmp.eq.s32.totalorder %v5661_v8, %v4626_v11  ;;  %v4062_v58 = vsel %vm2069_vm12, 1.0, %v6846_v2 }
 0x12a   : > { %2729 = vmatprep.mubr.f32.mxu0 %v6846_v2  ;;  %vm2205_vm1 = vcmp.eq.s32.totalorder %v5613_v26, %v4632_v13  ;;  %vm2273_vm2 = vcmp.eq.s32.totalorder %v5624_v19, %v4632_v13  ;;  %vm1985_vm3 = vcmp.eq.s32.totalorder %v5692_v39, %v4626_v11  ;;  %vm2341_vm5 = vcmp.eq.s32.totalorder %v5638_v14, %v4632_v13 }
 0x12b   : > { %v4047_v60 = vsel %vm1985_vm3, 1.0, %v6846_v2  ;;  %vm2409_vm4 = vcmp.eq.s32.totalorder %v5651_v27, %v4632_v13  ;;  %vm2477_vm6 = vcmp.eq.s32.totalorder %v5661_v8, %v4632_v13  ;;  %vm1508_vm8 = vcmp.eq.s32.totalorder %v5603_v56, %v4632_v13 }
 0x12c   : > { %vm1780_vm12 = vcmp.eq.s32.totalorder %v5646_v6, %v4632_v13  ;;  %vm2272_vm3 = vcmp.eq.s32.totalorder %v5624_v19, %v4636_v15 }
 0x12d   : > { %2730 = vmatmul.mubr.f32.gmra.mxu0 %v2612_v45  ;;  %v1693_v45 = vadd.f32 %v3967_v28, %v1625_v21  ;;  %v4126_v28 = vsel %vm2341_vm5, 1.0, %v6846_v2  ;;  %vm2340_vm5 = vcmp.eq.s32.totalorder %v5638_v14, %v4636_v15 }
 0x12e   : > { %2735 = vmatprep.mubr.f32.mxu0 %v6846_v2 }
 0x131   : > { %2736 = vmatmul.mubr.f32.gmra.mxu0 %v2613_v32  ;;  %v3983_v32 = vsel %vm1713_vm7, 1.0, %v6846_v2 }
 0x132   : > { %2741 = vmatprep.mubr.f32.mxu0 %v6846_v2 }
 0x135   : > { %2742 = vmatmul.mubr.f32.gmra.mxu0 %v2614_v53  ;;  %v2390_v53 = vadd.f32 %v4127_v30, %v2322_v7  ;;  %v4110_v7 = vsel %vm2273_vm2, 1.0, %v6846_v2  ;;  %v4142_v30 = vsel %vm2409_vm4, 1.0, %v6846_v2  ;;  %vm2204_vm2 = vcmp.eq.s32.totalorder %v5613_v26, %v4636_v15 }
 0x136   : > { %2747 = vmatprep.mubr.f32.mxu0 %v6846_v2  ;;  %vm2408_vm4 = vcmp.eq.s32.totalorder %v5651_v27, %v4636_v15 }
 0x139   : > { %2748 = vmatmul.mubr.f32.gmra.mxu0 %v2615_v36  ;;  %v3999_v36 = vsel %vm1781_vm9, 1.0, %v6846_v2  ;;  %vm1576_vm9 = vcmp.eq.s32.totalorder %v5606_v57, %v4632_v13 }
 0x13a   : > { %2753 = vmatprep.mubr.f32.mxu0 %v6846_v2 }
 0x13d   : > { %2754 = vmatmul.mubr.f32.gmra.mxu0 %v2616_v37  ;;  %v2820_v37 = vld [vmem:[%s4583_s2] sm:$0x3] }
 0x13e   : > { %2759 = vmatprep.mubr.f32.mxu0 %v6846_v2  ;;  %v5707_v59 = vrot.slane %v2820_v37, %v4603_v5 }
 0x141   : > { %2760 = vmatmul.mubr.f32.gmra.mxu0 %v2617_v20  ;;  %v4143_v20 = vsel %vm2410_vm10, 1.0, %v6846_v2  ;;  %vm1644_vm10 = vcmp.eq.s32.totalorder %v5630_v63, %v4632_v13 }
 0x142   : > { %2765 = vmatprep.mubr.f32.mxu0 %v6846_v2 }
 0x145   : > { %2766 = vmatmul.mubr.f32.gmra.mxu0 %v2618_v44  ;;  %v1761_v44 = vadd.f32 %v3983_v32, %v1693_v45  ;;  %v3934_v32 = vsel %vm1508_vm8, 1.0, %v6846_v2  ;;  %vm1507_vm8 = vcmp.eq.s32.totalorder %v5603_v56, %v4636_v15 }
 0x146   : > { %2771 = vmatprep.mubr.f32.mxu0 %v6846_v2 }
 0x149   : > { %2772 = vmatmul.mubr.f32.gmra.mxu0 %v2619_v22  ;;  %v5667_v22 = vrot.slane %v1489_v55, %v4615_v9  ;;  %v5685_v9 = vrot.slane %v2820_v37, %v4600_v4 }
 0x14a   : > { %2777 = vmatprep.mubr.f32.mxu0 %v6846_v2 }
 0x14b   : > { %vm1849_vm13 = vcmp.eq.s32.totalorder %v5667_v22, %v4626_v11 }
 0x14d   : > { %2778 = vmatmul.mubr.f32.gmra.mxu0 %v2620_v47  ;;  %v5670_v47 = vrot.slane %v1489_v55, %v4618_v10  ;;  %v4015_v10 = vsel %vm1849_vm13, 1.0, %v6846_v2  ;;  %v4094_v55 = vsel %vm2205_vm1, 1.0, %v6846_v2  ;;  %vm1848_vm13 = vcmp.eq.s32.totalorder %v5667_v22, %v4632_v13 }
 0x14e   : > { %2783 = vmatprep.mubr.f32.mxu0 %v6846_v2  ;;  %vm2136_vm1 = vcmp.eq.s32.totalorder %v5599_v54, %v4636_v15 }
 0x14f   : > { %vm1917_vm14 = vcmp.eq.s32.totalorder %v5670_v47, %v4626_v11 }
 0x151   : > { %2784 = vmatmul.mubr.f32.gmra.mxu0 %v2621_v48  ;;  %v2458_v48 = vadd.f32 %v4143_v20, %v2390_v53  ;;  %v3950_v53 = vsel %vm1576_vm9, 1.0, %v6846_v2  ;;  %vm1575_vm9 = vcmp.eq.s32.totalorder %v5606_v57, %v4636_v15 }
 0x152   : > { %2789 = vmatprep.mubr.f32.mxu0 %v6846_v2  ;;  %v1624_v37 = vadd.f32 %v3950_v53, %v3934_v32  ;;  %v4141_v32 = vsel %vm2408_vm4, 1.0, %v6846_v2  ;;  %vm2407_vm4 = vcmp.eq.s32.totalorder %v5651_v27, %v4639_v16 }
 0x155   : > { %2790 = vmatmul.mubr.f32.gmra.mxu0 %v2622_v50  ;;  %v5675_v50 = vrot.slane %v2050_v25, %v4629_v12  ;;  %v4078_v12 = vsel %vm2137_vm0, 1.0, %v6846_v2  ;;  %vm1984_vm0 = vcmp.eq.s32.totalorder %v5692_v39, %v4632_v13 }
 0x156   : > { %2795 = vmatprep.mubr.f32.mxu0 %v6846_v2  ;;  %v2185_v0 = vadd.f32 %v4078_v12, %v4062_v58  ;;  %v4077_v12 = vsel %vm2136_vm1, 1.0, %v6846_v2  ;;  %vm2135_vm1 = vcmp.eq.s32.totalorder %v5599_v54, %v4639_v16 }
 0x157   : > { %vm2546_vm15 = vcmp.eq.s32.totalorder %v5675_v50, %v4626_v11  ;;  %vm2545_vm7 = vcmp.eq.s32.totalorder %v5675_v50, %v4632_v13 }
 0x158   : > { %v4175_v40 = vsel %vm2546_vm15, 1.0, %v6846_v2  ;;  %v2253_v11 = vadd.f32 %v4094_v55, %v2185_v0  ;;  %vm2068_vm15 = vcmp.eq.s32.totalorder %v5596_v38, %v4636_v15  ;;  %v4093_v55 = vsel %vm2204_vm2, 1.0, %v6846_v2 }
 0x159   : > { %2796 = vmatmul.mubr.f32.gmra.mxu0 %v2623_v23  ;;  %v4159_v23 = vsel %vm2478_vm11, 1.0, %v6846_v2  ;;  %vm1712_vm11 = vcmp.eq.s32.totalorder %v5633_v42, %v4632_v13  ;;  %vm2203_vm2 = vcmp.eq.s32.totalorder %v5613_v26, %v4639_v16 }
 0x15a   : > { %2801 = vmatprep.mubr.f32.mxu0 %v6846_v2  ;;  %v2321_v45 = vadd.f32 %v4110_v7, %v2253_v11  ;;  %v4046_v7 = vsel %vm1984_vm0, 1.0, %v6846_v2  ;;  %v4109_v11 = vsel %vm2272_vm3, 1.0, %v6846_v2  ;;  %vm2067_vm0 = vcmp.eq.s32.totalorder %v5596_v38, %v4639_v16 }
 0x15b   : > { %vm2271_vm3 = vcmp.eq.s32.totalorder %v5624_v19, %v4639_v16 }
 0x15c   : > { %v2389_v20 = vadd.f32 %v4126_v28, %v2321_v45  ;;  %v4125_v28 = vsel %vm2340_vm5, 1.0, %v6846_v2  ;;  %vm2339_vm5 = vcmp.eq.s32.totalorder %v5638_v14, %v4639_v16 }
 0x15d   : > { %2802 = vmatmul.mubr.f32.gmra.mxu0 %v2624_v62  ;;  %v1829_v62 = vadd.f32 %v3999_v36, %v1761_v44  ;;  %v3966_v36 = vsel %vm1644_vm10, 1.0, %v6846_v2  ;;  %v4158_v44 = vsel %vm2477_vm6, 1.0, %v6846_v2  ;;  %vm2476_vm6 = vcmp.eq.s32.totalorder %v5661_v8, %v4636_v15 }
 0x15e   : > { %2807 = vmatprep.mubr.f32.mxu0 %v6846_v2  ;;  %vm1643_vm10 = vcmp.eq.s32.totalorder %v5630_v63, %v4636_v15 }
 0x15f   : > { %v1897_v25 = vadd.f32 %v4015_v10, %v1829_v62  ;;  %v1692_v62 = vadd.f32 %v3966_v36, %v1624_v37  ;;  %v3998_v10 = vsel %vm1780_vm12, 1.0, %v6846_v2  ;;  %v3933_v37 = vsel %vm1507_vm8, 1.0, %v6846_v2 }
 0x160   : > { %vm1779_vm12 = vcmp.eq.s32.totalorder %v5646_v6, %v4636_v15  ;;  %vm1574_vm8 = vcmp.eq.s32.totalorder %v5606_v57, %v4639_v16 }
 0x161   : > { %2808 = vmatmul.mubr.f32.gmra.mxu0 %v2625_v24  ;;  %v4031_v24 = vsel %vm1917_vm14, 1.0, %v6846_v2  ;;  %vm1916_vm14 = vcmp.eq.s32.totalorder %v5670_v47, %v4632_v13 }
 0x162   : > { %2813 = vmatprep.mubr.f32.mxu0 %v6846_v2  ;;  %v1965_v41 = vadd.f32 %v4031_v24, %v1897_v25  ;;  %v2457_v24 = vadd.f32 %v4142_v30, %v2389_v20  ;;  %v4061_v25 = vsel %vm2068_vm15, 1.0, %v6846_v2  ;;  %v3949_v20 = vsel %vm1575_vm9, 1.0, %v6846_v2 }
 0x163   : > { %vm1983_vm15 = vcmp.eq.s32.totalorder %v5692_v39, %v4636_v15  ;;  %vm2543_vm9 = vcmp.eq.s32.totalorder %v5675_v50, %v4639_v16 }
 0x164   : > { %v5714_v43 = vadd.f32 %v4047_v60, %v1965_v41  ;;  %v4030_v41 = vsel %vm1916_vm14, 1.0, %v6846_v2  ;;  %v2184_v60 = vadd.f32 %v4077_v12, %v4061_v25  ;;  %vm1915_vm14 = vcmp.eq.s32.totalorder %v5670_v47, %v4636_v15 }
 0x165   : > { %2814 = vmatmul.mubr.f32.gmra.mxu0 %v2626_v51  ;;  %v2526_v51 = vadd.f32 %v4159_v23, %v2458_v48  ;;  %v4174_v48 = vsel %vm2545_vm7, 1.0, %v6846_v2  ;;  %v3982_v23 = vsel %vm1712_vm11, 1.0, %v6846_v2  ;;  %vm2544_vm7 = vcmp.eq.s32.totalorder %v5675_v50, %v4636_v15 }
 0x166   : > { %3419 = vmatprep.mubr.f32.mxu0 %v6846_v2  ;;  %6868 = vst [vmem:[#allocation21_spill] sm:$0xff] %v5714_v43  ;;  %v1760_v58 = vadd.f32 %v3982_v23, %v1692_v62  ;;  %v2252_v45 = vadd.f32 %v4093_v55, %v2184_v60  ;;  %vm1711_vm11 = vcmp.eq.s32.totalorder %v5633_v42, %v4636_v15  ;;  %v4157_v62 = vsel %vm2476_vm6, 1.0, %v6846_v2 }
 0x167   : > { %v5712_v21 = vadd.f32 %v4175_v40, %v2526_v51  ;;  %v4014_v51 = vsel %vm1848_vm13, 1.0, %v6846_v2  ;;  %v2525_v40 = vadd.f32 %v4158_v44, %v2457_v24  ;;  %v1623_v44 = vadd.f32 %v3949_v20, %v3933_v37 }
 0x168   : > { %v1828_v13 = vadd.f32 %v3998_v10, %v1760_v58  ;;  %v2320_v36 = vadd.f32 %v4109_v11, %v2252_v45  ;;  %v4173_v10 = vsel %vm2544_vm7, 1.0, %v6846_v2  ;;  %v3981_v24 = vsel %vm1711_vm11, 1.0, %v6846_v2 }
 0x169   : > { %6867 = vst [vmem:[#allocation20_spill] sm:$0xff] %v5712_v21  ;;  %v5765_v0 = vadd.f32 %v4174_v48, %v2525_v40  ;;  %v3965_v48 = vsel %vm1643_vm10, 1.0, %v6846_v2  ;;  %v3997_v58 = vsel %vm1779_vm12, 1.0, %v6846_v2  ;;  %vm1847_vm13 = vcmp.eq.s32.totalorder %v5667_v22, %v4636_v15 }
 0x16a   : > { %v1896_v30 = vadd.f32 %v4014_v51, %v1828_v13  ;;  %v2388_v23 = vadd.f32 %v4125_v28, %v2320_v36  ;;  %v1691_v25 = vadd.f32 %v3965_v48, %v1623_v44  ;;  %v4060_v13 = vsel %vm2067_vm0, 1.0, %v6846_v2 }
 0x16b   : > { %6869 = vst [vmem:[#allocation22_spill] sm:$0xff] %v5765_v0  ;;  %v4076_v60 = vsel %vm2135_vm1, 1.0, %v6846_v2  ;;  %v4029_v15 = vsel %vm1915_vm14, 1.0, %v6846_v2  ;;  %v4108_v45 = vsel %vm2271_vm3, 1.0, %v6846_v2  ;;  %v4124_v37 = vsel %vm2339_vm5, 1.0, %v6846_v2 }
 0x16c   : > { %v1964_v53 = vadd.f32 %v4030_v41, %v1896_v30  ;;  %v2456_v40 = vadd.f32 %v4141_v32, %v2388_v23  ;;  %v4013_v41 = vsel %vm1847_vm13, 1.0, %v6846_v2  ;;  %v1759_v12 = vadd.f32 %v3981_v24, %v1691_v25 }
 0x16d   : > { %v2183_v28 = vadd.f32 %v4076_v60, %v4060_v13  ;;  %v4045_v30 = vsel %vm1983_vm15, 1.0, %v6846_v2  ;;  %v4140_v20 = vsel %vm2407_vm4, 1.0, %v6846_v2  ;;  %vm2475_vm6 = vcmp.eq.s32.totalorder %v5661_v8, %v4639_v16 }
 0x16e   : > { %v5791_v51 = vadd.f32 %v4046_v7, %v1964_v53  ;;  %v2524_v55 = vadd.f32 %v4157_v62, %v2456_v40  ;;  %v4092_v7 = vsel %vm2203_vm2, 1.0, %v6846_v2  ;;  %v1827_v11 = vadd.f32 %v3997_v58, %v1759_v12 }
 0x16f   : > { %v2251_v36 = vadd.f32 %v4092_v7, %v2183_v28  ;;  %vm1506_vm7 = vcmp.eq.s32.totalorder %v5603_v56, %v4639_v16  ;;  %v3948_v62 = vsel %vm1574_vm8, 1.0, %v6846_v2  ;;  %vm1642_vm10 = vcmp.eq.s32.totalorder %v5630_v63, %v4639_v16 }
 0x170   : > { %6870 = vst [vmem:[#allocation23_spill] sm:$0xff] %v5791_v51  ;;  %v5819_v32 = vadd.f32 %v4173_v10, %v2524_v55  ;;  %v1895_v53 = vadd.f32 %v4013_v41, %v1827_v11  ;;  %v3932_v23 = vsel %vm1506_vm7, 1.0, %v6846_v2  ;;  %vm1710_vm11 = vcmp.eq.s32.totalorder %v5633_v42, %v4639_v16 }
 0x171   : > { %v2319_v48 = vadd.f32 %v4108_v45, %v2251_v36  ;;  %vm1778_vm12 = vcmp.eq.s32.totalorder %v5646_v6, %v4639_v16  ;;  %v4156_v24 = vsel %vm2475_vm6, 1.0, %v6846_v2  ;;  %v1622_v25 = vadd.f32 %v3948_v62, %v3932_v23 }
 0x172   : > { %6871 = vst [vmem:[#allocation24_spill] sm:$0xff] %v5819_v32  ;;  %v1963_v44 = vadd.f32 %v4029_v15, %v1895_v53  ;;  %v3964_v58 = vsel %vm1642_vm10, 1.0, %v6846_v2  ;;  %v4172_v40 = vsel %vm2543_vm9, 1.0, %v6846_v2  ;;  %v3980_v41 = vsel %vm1710_vm11, 1.0, %v6846_v2 }
 0x173   : > { %v2387_v10 = vadd.f32 %v4124_v37, %v2319_v48  ;;  %vm1846_vm13 = vcmp.eq.s32.totalorder %v5667_v22, %v4639_v16  ;;  %vm1914_vm14 = vcmp.eq.s32.totalorder %v5670_v47, %v4639_v16  ;;  %v1690_v13 = vadd.f32 %v3964_v58, %v1622_v25 }
 0x174   : > { %v5847_v12 = vadd.f32 %v4045_v30, %v1963_v44  ;;  %v3996_v60 = vsel %vm1778_vm12, 1.0, %v6846_v2  ;;  %vm1982_vm15 = vcmp.eq.s32.totalorder %v5692_v39, %v4639_v16  ;;  %vm2066_vm0 = vcmp.eq.s32.totalorder %v5596_v38, %v4642_v17 }
 0x175   : > { %v2455_v55 = vadd.f32 %v4140_v20, %v2387_v10  ;;  %vm2134_vm1 = vcmp.eq.s32.totalorder %v5599_v54, %v4642_v17  ;;  %vm2202_vm2 = vcmp.eq.s32.totalorder %v5613_v26, %v4642_v17  ;;  %v1758_v28 = vadd.f32 %v3980_v41, %v1690_v13 }
 0x176   : > { %6872 = vst [vmem:[#allocation25_spill] sm:$0xff] %v5847_v12  ;;  %v4012_v15 = vsel %vm1846_vm13, 1.0, %v6846_v2  ;;  %v4028_v30 = vsel %vm1914_vm14, 1.0, %v6846_v2  ;;  %v4059_v53 = vsel %vm2066_vm0, 1.0, %v6846_v2  ;;  %v4075_v16 = vsel %vm2134_vm1, 1.0, %v6846_v2 }
 0x177   : > { %v2523_v11 = vadd.f32 %v4156_v24, %v2455_v55  ;;  %v4091_v36 = vsel %vm2202_vm2, 1.0, %v6846_v2  ;;  %vm2270_vm3 = vcmp.eq.s32.totalorder %v5624_v19, %v4642_v17  ;;  %v1826_v20 = vadd.f32 %v3996_v60, %v1758_v28 }
 0x178   : > { %v4044_v44 = vsel %vm1982_vm15, 1.0, %v6846_v2  ;;  %v2182_v48 = vadd.f32 %v4075_v16, %v4059_v53  ;;  %v4107_v62 = vsel %vm2270_vm3, 1.0, %v6846_v2  ;;  %vm2338_vm5 = vcmp.eq.s32.totalorder %v5638_v14, %v4642_v17 }
 0x179   : > { %vm2406_vm4 = vcmp.eq.s32.totalorder %v5651_v27, %v4642_v17  ;;  %vm2474_vm6 = vcmp.eq.s32.totalorder %v5661_v8, %v4642_v17  ;;  %v5879_v24 = vadd.f32 %v4172_v40, %v2523_v11  ;;  %v1894_v25 = vadd.f32 %v4012_v15, %v1826_v20 }
 0x17a   : > { %v2250_v58 = vadd.f32 %v4091_v36, %v2182_v48  ;;  %v4123_v13 = vsel %vm2338_vm5, 1.0, %v6846_v2  ;;  %vm2542_vm7 = vcmp.eq.s32.totalorder %v5675_v50, %v4642_v17  ;;  %vm1505_vm8 = vcmp.eq.s32.totalorder %v5603_v56, %v4642_v17 }
 0x17b   : > { %6875 = vst [vmem:[#allocation28_spill] sm:$0xff] %v5879_v24  ;;  %v1962_v60 = vadd.f32 %v4028_v30, %v1894_v25  ;;  %v4139_v28 = vsel %vm2406_vm4, 1.0, %v6846_v2  ;;  %v4155_v40 = vsel %vm2474_vm6, 1.0, %v6846_v2  ;;  %v3931_v15 = vsel %vm1505_vm8, 1.0, %v6846_v2 }
 0x17c   : > { %vm1573_vm9 = vcmp.eq.s32.totalorder %v5606_v57, %v4642_v17  ;;  %vm1641_vm10 = vcmp.eq.s32.totalorder %v5630_v63, %v4642_v17  ;;  %vm1709_vm11 = vcmp.eq.s32.totalorder %v5633_v42, %v4642_v17  ;;  %v4171_v53 = vsel %vm2542_vm7, 1.0, %v6846_v2 }
 0x17d   : > { %v3947_v16 = vsel %vm1573_vm9, 1.0, %v6846_v2  ;;  %vm1777_vm12 = vcmp.eq.s32.totalorder %v5646_v6, %v4642_v17  ;;  %vm1845_vm13 = vcmp.eq.s32.totalorder %v5667_v22, %v4642_v17  ;;  %vm1913_vm14 = vcmp.eq.s32.totalorder %v5670_v47, %v4642_v17 }
 0x17e   : > { %v1621_v48 = vadd.f32 %v3947_v16, %v3931_v15  ;;  %vm1981_vm15 = vcmp.eq.s32.totalorder %v5692_v39, %v4642_v17  ;;  %vm2065_vm0 = vcmp.eq.s32.totalorder %v5596_v38, %v4645_v18  ;;  %vm2133_vm1 = vcmp.eq.s32.totalorder %v5599_v54, %v4645_v18 }
 0x17f   : > { %vm2201_vm2 = vcmp.eq.s32.totalorder %v5613_v26, %v4645_v18  ;;  %v4027_v17 = vsel %vm1913_vm14, 1.0, %v6846_v2  ;;  %v4043_v16 = vsel %vm1981_vm15, 1.0, %v6846_v2  ;;  %vm2269_vm3 = vcmp.eq.s32.totalorder %v5624_v19, %v4645_v18 }
 0x180   : > { %vm2337_vm5 = vcmp.eq.s32.totalorder %v5638_v14, %v4645_v18  ;;  %vm2405_vm4 = vcmp.eq.s32.totalorder %v5651_v27, %v4645_v18  ;;  %vm2473_vm6 = vcmp.eq.s32.totalorder %v5661_v8, %v4645_v18  ;;  %vm2541_vm7 = vcmp.eq.s32.totalorder %v5675_v50, %v4645_v18 }
 0x181   : > { %v4122_v5 = vsel %vm2337_vm5, 1.0, %v6846_v2  ;;  %vm1504_vm8 = vcmp.eq.s32.totalorder %v5603_v56, %v4645_v18  ;;  %vm1572_vm9 = vcmp.eq.s32.totalorder %v5606_v57, %v4645_v18  ;;  %vm1912_vm14 = vcmp.eq.s32.totalorder %v5670_v47, %v4645_v18 }
 0x182   : > { %v3946_v3 = vsel %vm1572_vm9, 1.0, %v6846_v2  ;;  %vm1980_vm15 = vcmp.eq.s32.totalorder %v5692_v39, %v4645_v18  ;;  %vm2336_vm5 = vcmp.eq.s32.totalorder %v5638_v14, %v4684_v31  ;;  %vm1571_vm9 = vcmp.eq.s32.totalorder %v5606_v57, %v4684_v31 }
 0x1e9   : > { %v2725_v7 = vpop.f32.mrf.mxu0 }
 0x1ea   : > { %v5866_v37 = vmul.f32 %v5685_v9, %v2725_v7  ;;  %v2318_v7 = vadd.f32 %v4107_v62, %v2250_v58  ;;  %v5909_v62 = vadd.f32 %v4044_v44, %v1962_v60  ;;  %v3979_v58 = vsel %vm1709_vm11, 1.0, %v6846_v2 }
 0x1eb   : > { %v2727_v45 = vpop.f32.mrf.mxu0  ;;  %vm1708_vm11 = vcmp.eq.s32.totalorder %v5633_v42, %v4645_v18 }
 0x1ec   : > { %6873 = vst [vmem:[#allocation26_spill] sm:$0xff] %v5866_v37  ;;  %v5877_v10 = vmul.f32 %v5707_v59, %v2727_v45  ;;  %v2386_v30 = vadd.f32 %v4123_v13, %v2318_v7  ;;  %6879 = vst [vmem:[#allocation32_spill] sm:$0xff] %v5909_v62  ;;  %v6888_v37 = vmov 0.0  }
 0x1ed   : > { %v2731_v23 = vpop.f32.mrf.mxu0 }
 0x1ee   : > { %6874 = vst [vmem:[#allocation27_spill] sm:$0xff] %v5877_v10  ;;  %v5882_v41 = vmul.f32 %v5685_v9, %v2731_v23  ;;  %v3963_v23 = vsel %vm1641_vm10, 1.0, %v6846_v2  ;;  %v2454_v25 = vadd.f32 %v4139_v28, %v2386_v30  ;;  %v3995_v28 = vsel %vm1777_vm12, 1.0, %v6846_v2 }
 0x1ef   : > { %v2733_v55 = vpop.f32.mrf.mxu0  ;;  %v1689_v7 = vadd.f32 %v3963_v23, %v1621_v48  ;;  %vm1640_vm10 = vcmp.eq.s32.totalorder %v5630_v63, %v4645_v18  ;;  %vm1776_vm12 = vcmp.eq.s32.totalorder %v5646_v6, %v4645_v18 }
 0x1f0   : > { %6876 = vst [vmem:[#allocation29_spill] sm:$0xff] %v5882_v41  ;;  %v5899_v45 = vmul.f32 %v5707_v59, %v2733_v55  ;;  %v2522_v60 = vadd.f32 %v4155_v40, %v2454_v25  ;;  %v4058_v40 = vsel %vm2065_vm0, 1.0, %v6846_v2  ;;  %vm2064_vm0 = vcmp.eq.s32.totalorder %v5596_v38, %v4684_v31 }
 0x1f1   : > { %v2737_v11 = vpop.f32.mrf.mxu0  ;;  %v1757_v30 = vadd.f32 %v3979_v58, %v1689_v7  ;;  %v4090_v58 = vsel %vm2201_vm2, 1.0, %v6846_v2  ;;  %v4106_v7 = vsel %vm2269_vm3, 1.0, %v6846_v2  ;;  %vm2200_vm2 = vcmp.eq.s32.totalorder %v5613_v26, %v4684_v31 }
 0x1f2   : > { %6877 = vst [vmem:[#allocation30_spill] sm:$0xff] %v5899_v45  ;;  %v5904_v36 = vmul.f32 %v5685_v9, %v2737_v11  ;;  %v4011_v11 = vsel %vm1845_vm13, 1.0, %v6846_v2  ;;  %vm1844_vm13 = vcmp.eq.s32.totalorder %v5667_v22, %v4645_v18  ;;  %vm2268_vm3 = vcmp.eq.s32.totalorder %v5624_v19, %v4684_v31 }
 0x1f3   : > { %v2739_v20 = vpop.f32.mrf.mxu0  ;;  %v1825_v23 = vadd.f32 %v3995_v28, %v1757_v30  ;;  %v5950_v30 = vadd.f32 %v4171_v53, %v2522_v60  ;;  %v4138_v60 = vsel %vm2405_vm4, 1.0, %v6846_v2  ;;  %vm2404_vm4 = vcmp.eq.s32.totalorder %v5651_v27, %v4684_v31 }
 0x1f4   : > { %6878 = vst [vmem:[#allocation31_spill] sm:$0xff] %v5904_v36  ;;  %v5915_v55 = vmul.f32 %v5707_v59, %v2739_v20  ;;  %v4074_v20 = vsel %vm2133_vm1, 1.0, %v6846_v2  ;;  %vm2132_vm1 = vcmp.eq.s32.totalorder %v5599_v54, %v4684_v31  ;;  %v4105_v62 = vsel %vm2268_vm3, 1.0, %v6846_v2 }
 0x1f5   : > { %v2743_v13 = vpop.f32.mrf.mxu0  ;;  %v2181_v25 = vadd.f32 %v4074_v20, %v4058_v40  ;;  %6882 = vst [vmem:[#allocation35_spill] sm:$0xff] %v5950_v30  ;;  %v1893_v40 = vadd.f32 %v4011_v11, %v1825_v23  ;;  %v4154_v11 = vsel %vm2473_vm6, 1.0, %v6846_v2  ;;  %v3930_v23 = vsel %vm1504_vm8, 1.0, %v6846_v2 }
 0x1f6   : > { %6880 = vst [vmem:[#allocation33_spill] sm:$0xff] %v5915_v55  ;;  %v5922_v44 = vmul.f32 %v5685_v9, %v2743_v13  ;;  %vm2472_vm6 = vcmp.eq.s32.totalorder %v5661_v8, %v4684_v31  ;;  %vm1503_vm8 = vcmp.eq.s32.totalorder %v5603_v56, %v4684_v31  ;;  %vm2267_vm3 = vcmp.eq.s32.totalorder %v5624_v19, %v4691_v33 }
 0x1f7   : > { %v2745_v15 = vpop.f32.mrf.mxu0  ;;  %v2249_v20 = vadd.f32 %v4090_v58, %v2181_v25  ;;  %v1961_v4 = vadd.f32 %v4027_v17, %v1893_v40  ;;  %v3962_v17 = vsel %vm1640_vm10, 1.0, %v6846_v2  ;;  %v1620_v40 = vadd.f32 %v3946_v3, %v3930_v23 }
 0x1f8   : > { %6881 = vst [vmem:[#allocation34_spill] sm:$0xff] %v5922_v44  ;;  %v5940_v13 = vmul.f32 %v5707_v59, %v2745_v15  ;;  %v3994_v3 = vsel %vm1776_vm12, 1.0, %v6846_v2  ;;  %vm1639_vm10 = vcmp.eq.s32.totalorder %v5630_v63, %v4684_v31  ;;  %vm1775_vm12 = vcmp.eq.s32.totalorder %v5646_v6, %v4684_v31 }
 0x1f9   : > { %v2749_v48 = vpop.f32.mrf.mxu0  ;;  %v2317_v53 = vadd.f32 %v4106_v7, %v2249_v20  ;;  %v5979_v61 = vadd.f32 %v4043_v16, %v1961_v4  ;;  %v4104_v43 = vsel %vm2267_vm3, 1.0, %v6846_v2  ;;  %vm2266_vm3 = vcmp.eq.s32.totalorder %v5624_v19, %v5126_v29 }
 0x1fa   : > { %v5948_v1 = vmul.f32 %v5685_v9, %v2749_v48 }
 0x1fb   : > { %v2751_v28 = vpop.f32.mrf.mxu0  ;;  %v2385_v58 = vadd.f32 %v4122_v5, %v2317_v53  ;;  %6883 = vst [vmem:[#allocation36_spill] sm:$0xff] %v5979_v61  ;;  %v3978_v53 = vsel %vm1708_vm11, 1.0, %v6846_v2  ;;  %vm1707_vm11 = vcmp.eq.s32.totalorder %v5633_v42, %v4684_v31 }
 0x1fc   : > { %v5960_v15 = vmul.f32 %v5707_v59, %v2751_v28  ;;  %v4170_v28 = vsel %vm2541_vm7, 1.0, %v6846_v2  ;;  %vm2540_vm7 = vcmp.eq.s32.totalorder %v5675_v50, %v4684_v31  ;;  %v3977_v32 = vsel %vm1707_vm11, 1.0, %v6846_v2 }
 0x1fd   : > { %v2755_v48 = vpop.f32.mrf.mxu0  ;;  %v2453_v5 = vadd.f32 %v4138_v60, %v2385_v58  ;;  %v4026_v58 = vsel %vm1912_vm14, 1.0, %v6846_v2  ;;  %vm1911_vm14 = vcmp.eq.s32.totalorder %v5670_v47, %v4684_v31  ;;  %vm1706_vm11 = vcmp.eq.s32.totalorder %v5633_v42, %v4691_v33 }
 0x1fe   : > { %v5973_v7 = vmul.f32 %v5685_v9, %v2755_v48  ;;  %v1688_v48 = vadd.f32 %v3962_v17, %v1620_v40  ;;  %v4057_v17 = vsel %vm2064_vm0, 1.0, %v6846_v2  ;;  %vm2063_vm0 = vcmp.eq.s32.totalorder %v5596_v38, %v4691_v33 }
 0x1ff   : > { %v2757_v25 = vpop.f32.mrf.mxu0  ;;  %v2521_v16 = vadd.f32 %v4154_v11, %v2453_v5  ;;  %v4042_v11 = vsel %vm1980_vm15, 1.0, %v6846_v2  ;;  %v4073_v5 = vsel %vm2132_vm1, 1.0, %v6846_v2  ;;  %vm1979_vm15 = vcmp.eq.s32.totalorder %v5692_v39, %v4684_v31 }
 0x200   : > { %v5985_v46 = vmul.f32 %v5707_v59, %v2757_v25  ;;  %v1756_v60 = vadd.f32 %v3978_v53, %v1688_v48  ;;  %v4010_v25 = vsel %vm1844_vm13, 1.0, %v6846_v2  ;;  %v4089_v53 = vsel %vm2200_vm2, 1.0, %v6846_v2 }
 0x201   : > { %v2761_v20 = vpop.f32.mrf.mxu0  ;;  %v2180_v61 = vadd.f32 %v4073_v5, %v4057_v17  ;;  %v4121_v17 = vsel %vm2336_vm5, 1.0, %v6846_v2  ;;  %v4153_v5 = vsel %vm2472_vm6, 1.0, %v6846_v2  ;;  %vm1843_vm13 = vcmp.eq.s32.totalorder %v5667_v22, %v4684_v31 }
 0x202   : > { %v5991_v23 = vmul.f32 %v5685_v9, %v2761_v20  ;;  %v1824_v18 = vadd.f32 %v3994_v3, %v1756_v60  ;;  %vm2131_vm1 = vcmp.eq.s32.totalorder %v5599_v54, %v4691_v33  ;;  %vm2199_vm2 = vcmp.eq.s32.totalorder %v5613_v26, %v4691_v33 }
 0x203   : > { %v2763_v4 = vpop.f32.mrf.mxu0  ;;  %v2248_v12 = vadd.f32 %v4089_v53, %v2180_v61  ;;  %v3929_v61 = vsel %vm1503_vm8, 1.0, %v6846_v2  ;;  %v3961_v53 = vsel %vm1639_vm10, 1.0, %v6846_v2  ;;  %vm2335_vm5 = vcmp.eq.s32.totalorder %v5638_v14, %v4691_v33 }
 0x204   : > { %v6001_v40 = vmul.f32 %v5707_v59, %v2763_v4  ;;  %v6012_v4 = vadd.f32 %v4170_v28, %v2521_v16  ;;  %v1892_v60 = vadd.f32 %v4010_v25, %v1824_v18  ;;  %v4137_v25 = vsel %vm2404_vm4, 1.0, %v6846_v2 }
 0x205   : > { %v2767_v20 = vpop.f32.mrf.mxu0  ;;  %v2316_v18 = vadd.f32 %v4105_v62, %v2248_v12  ;;  %vm2403_vm4 = vcmp.eq.s32.totalorder %v5651_v27, %v4691_v33  ;;  %vm2471_vm6 = vcmp.eq.s32.totalorder %v5661_v8, %v4691_v33  ;;  %vm1502_vm8 = vcmp.eq.s32.totalorder %v5603_v56, %v4691_v33 }
 0x206   : > { %6884 = vst [vmem:[#allocation37_spill] sm:$0xff] %v6012_v4  ;;  %v6019_v30 = vmul.f32 %v5685_v9, %v2767_v20  ;;  %v1960_v16 = vadd.f32 %v4026_v58, %v1892_v60  ;;  %v3945_v58 = vsel %vm1571_vm9, 1.0, %v6846_v2  ;;  %vm1570_vm9 = vcmp.eq.s32.totalorder %v5606_v57, %v4691_v33 }
 0x207   : > { %v2769_v48 = vpop.f32.mrf.mxu0  ;;  %v2384_v60 = vadd.f32 %v4121_v17, %v2316_v18  ;;  %v1619_v4 = vadd.f32 %v3945_v58, %v3929_v61  ;;  %v3993_v58 = vsel %vm1775_vm12, 1.0, %v6846_v2  ;;  %vm1638_vm10 = vcmp.eq.s32.totalorder %v5630_v63, %v4691_v33 }
 0x208   : > { %v6022_v3 = vmul.f32 %v5707_v59, %v2769_v48  ;;  %v6052_v62 = vadd.f32 %v4042_v11, %v1960_v16  ;;  %v3976_v21 = vsel %vm1706_vm11, 1.0, %v6846_v2  ;;  %vm1774_vm12 = vcmp.eq.s32.totalorder %v5646_v6, %v4691_v33 }
 0x209   : > { %v2773_v24 = vpop.f32.mrf.mxu0  ;;  %v2452_v18 = vadd.f32 %v4137_v25, %v2384_v60  ;;  %v1687_v61 = vadd.f32 %v3961_v53, %v1619_v4  ;;  %v4056_v4 = vsel %vm2063_vm0, 1.0, %v6846_v2  ;;  %v4025_v53 = vsel %vm1911_vm14, 1.0, %v6846_v2 }
 0x20a   : > { %v6032_v28 = vmul.f32 %v5685_v9, %v2773_v24  ;;  %v4169_v24 = vsel %vm2540_vm7, 1.0, %v6846_v2  ;;  %6885 = vst [vmem:[#allocation38_spill] sm:$0xff] %v6052_v62  ;;  %vm2539_vm7 = vcmp.eq.s32.totalorder %v5675_v50, %v4691_v33  ;;  %vm1910_vm14 = vcmp.eq.s32.totalorder %v5670_v47, %v4691_v33 }
 0x20b   : > { %v2775_v20 = vpop.f32.mrf.mxu0  ;;  %v1755_v25 = vadd.f32 %v3977_v32, %v1687_v61  ;;  %v4088_v32 = vsel %vm2199_vm2, 1.0, %v6846_v2  ;;  %v3992_v10 = vsel %vm1774_vm12, 1.0, %v6888_v37  ;;  %vm2062_vm0 = vcmp.eq.s32.totalorder %v5596_v38, %v5126_v29 }
 0x20c   : > { %v6050_v12 = vmul.f32 %v5707_v59, %v2775_v20  ;;  %v4009_v20 = vsel %vm1843_vm13, 1.0, %v6846_v2  ;;  %vm1842_vm13 = vcmp.eq.s32.totalorder %v5667_v22, %v4691_v33  ;;  %vm2198_vm2 = vcmp.eq.s32.totalorder %v5613_v26, %v5126_v29 }
 0x20d   : > { %v2779_v48 = vpop.f32.mrf.mxu0  ;;  %v1823_v60 = vadd.f32 %v3993_v58, %v1755_v25  ;;  %vm1705_vm11 = vcmp.eq.s32.totalorder %v5633_v42, %v5126_v29  ;;  %vm1773_vm12 = vcmp.eq.s32.totalorder %v5646_v6, %v5126_v29 }
 0x20e   : > { %v6058_v52 = vmul.f32 %v5685_v9, %v2779_v48  ;;  %v2520_v48 = vadd.f32 %v4153_v5, %v2452_v18  ;;  %v4072_v5 = vsel %vm2131_vm1, 1.0, %v6846_v2  ;;  %vm2130_vm1 = vcmp.eq.s32.totalorder %v5599_v54, %v5126_v29 }
 0x20f   : > { %v2781_v17 = vpop.f32.mrf.mxu0  ;;  %v2179_v62 = vadd.f32 %v4072_v5, %v4056_v4  ;;  %v1891_v0 = vadd.f32 %v4009_v20, %v1823_v60  ;;  %v4136_v20 = vsel %vm2403_vm4, 1.0, %v6846_v2  ;;  %vm2402_vm4 = vcmp.eq.s32.totalorder %v5651_v27, %v5126_v29 }
 0x210   : > { %v6069_v11 = vmul.f32 %v5707_v59, %v2781_v17  ;;  %v4041_v17 = vsel %vm1979_vm15, 1.0, %v6846_v2  ;;  %v6085_v61 = vadd.f32 %v4169_v24, %v2520_v48  ;;  %v4120_v48 = vsel %vm2335_vm5, 1.0, %v6846_v2 }
 0x211   : > { %v2785_v16 = vpop.f32.mrf.mxu0  ;;  %v1959_v4 = vadd.f32 %v4025_v53, %v1891_v0  ;;  %v4168_v0 = vsel %vm2539_vm7, 1.0, %v6846_v2  ;;  %v3960_v53 = vsel %vm1638_vm10, 1.0, %v6846_v2  ;;  %vm1978_vm15 = vcmp.eq.s32.totalorder %v5692_v39, %v4691_v33 }
 0x212   : > { %v6083_v18 = vmul.f32 %v5685_v9, %v2785_v16  ;;  %6886 = vst [vmem:[#allocation39_spill] sm:$0xff] %v6085_v61  ;;  %v2247_v16 = vadd.f32 %v4088_v32, %v2179_v62  ;;  %v3928_v62 = vsel %vm1502_vm8, 1.0, %v6846_v2  ;;  %v3944_v32 = vsel %vm1570_vm9, 1.0, %v6846_v2 }
 0x213   : > { %v2787_v31 = vpop.f32.mrf.mxu0  ;;  %vm2334_vm5 = vcmp.eq.s32.totalorder %v5638_v14, %v5126_v29  ;;  %vm2538_vm7 = vcmp.eq.s32.totalorder %v5675_v50, %v5126_v29  ;;  %vm1501_vm8 = vcmp.eq.s32.totalorder %v5603_v56, %v5126_v29  ;;  %vm1569_vm9 = vcmp.eq.s32.totalorder %v5606_v57, %v5126_v29 }
 0x214   : > { %v6095_v58 = vmul.f32 %v5707_v59, %v2787_v31  ;;  %v2315_v31 = vadd.f32 %v4104_v43, %v2247_v16  ;;  %v1618_v43 = vadd.f32 %v3944_v32, %v3928_v62  ;;  %vm1637_vm10 = vcmp.eq.s32.totalorder %v5630_v63, %v5126_v29 }
 0x215   : > { %v2791_v51 = vpop.f32.mrf.mxu0 }
 0x216   : > { %v6098_v24 = vmul.f32 %v5685_v9, %v2791_v51  ;;  %v4152_v51 = vsel %vm2471_vm6, 1.0, %v6846_v2  ;;  %v2383_v61 = vadd.f32 %v4120_v48, %v2315_v31  ;;  %v6130_v48 = vadd.f32 %v4041_v17, %v1959_v4 }
 0x217   : > { %v2793_v25 = vpop.f32.mrf.mxu0  ;;  %v1686_v62 = vadd.f32 %v3960_v53, %v1618_v43  ;;  %v4024_v17 = vsel %vm1910_vm14, 1.0, %v6888_v37  ;;  %v4040_v4 = vsel %vm1978_vm15, 1.0, %v6888_v37  ;;  %vm2470_vm6 = vcmp.eq.s32.totalorder %v5661_v8, %v5126_v29 }
 0x218   : > { %v6111_v60 = vmul.f32 %v5707_v59, %v2793_v25  ;;  %6887 = vst [vmem:[#allocation40_spill] sm:$0xff] %v6130_v48  ;;  %v2451_v31 = vadd.f32 %v4136_v20, %v2383_v61  ;;  %v4055_v20 = vsel %vm2062_vm0, 1.0, %v6888_v37  ;;  %vm1909_vm14 = vcmp.eq.s32.totalorder %v5670_v47, %v5126_v29 }
 0x219   : > { %v2797_v5 = vpop.f32.mrf.mxu0  ;;  %v1754_v45 = vadd.f32 %v3976_v21, %v1686_v62  ;;  %vm2061_vm15 = vcmp.eq.s32.totalorder %v5596_v38, %v5129_v34  ;;  %vm2129_vm0 = vcmp.eq.s32.totalorder %v5599_v54, %v5129_v34 }
 0x21a   : > { %v6128_v25 = vmul.f32 %v5685_v9, %v2797_v5  ;;  %v2519_v41 = vadd.f32 %v4152_v51, %v2451_v31  ;;  %v4008_v5 = vsel %vm1842_vm13, 1.0, %v6888_v37  ;;  %v4071_v51 = vsel %vm2130_vm1, 1.0, %v6888_v37 }
 0x21b   : > { %v2799_v16 = vpop.f32.mrf.mxu0  ;;  %v1822_v21 = vadd.f32 %v3992_v10, %v1754_v45  ;;  %v4087_v31 = vsel %vm2198_vm2, 1.0, %v6888_v37  ;;  %vm1841_vm13 = vcmp.eq.s32.totalorder %v5667_v22, %v5126_v29  ;;  %vm1977_vm1 = vcmp.eq.s32.totalorder %v5692_v39, %v5126_v29 }
 0x21c   : > { %v6133_v32 = vmul.f32 %v5707_v59, %v2799_v16  ;;  %v2178_v16 = vadd.f32 %v4071_v51, %v4055_v20  ;;  %v6158_v62 = vadd.f32 %v4168_v0, %v2519_v41  ;;  %v4119_v0 = vsel %vm2334_vm5, 1.0, %v6888_v37 }
 0x21d   : > { %v2803_v2 = vpop.f32.mrf.mxu0  ;;  %v1890_v48 = vadd.f32 %v4008_v5, %v1822_v21  ;;  %v4135_v5 = vsel %vm2402_vm4, 1.0, %v6888_v37  ;;  %v4151_v51 = vsel %vm2470_vm6, 1.0, %v6888_v37  ;;  %vm2197_vm2 = vcmp.eq.s32.totalorder %v5613_v26, %v5129_v34 }
 0x21e   : > { %v6150_v33 = vmul.f32 %v5685_v9, %v2803_v2  ;;  %6889 = vst [vmem:[#allocation41_spill] sm:$0xff] %v6158_v62  ;;  %v4103_v2 = vsel %vm2266_vm3, 1.0, %v6888_v37  ;;  %v2246_v36 = vadd.f32 %v4087_v31, %v2178_v16  ;;  %v3975_v62 = vsel %vm1705_vm11, 1.0, %v6888_v37 }
 0x21f   : > { %v2805_v61 = vpop.f32.mrf.mxu0  ;;  %v1958_v41 = vadd.f32 %v4024_v17, %v1890_v48  ;;  %v3927_v48 = vsel %vm1501_vm8, 1.0, %v6888_v37  ;;  %v3943_v17 = vsel %vm1569_vm9, 1.0, %v6888_v37  ;;  %vm2265_vm3 = vcmp.eq.s32.totalorder %v5624_v19, %v5129_v34 }
 0x220   : > { %v2859_v43 = vmul.f32 %v5707_v59, %v2805_v61  ;;  %v2314_v21 = vadd.f32 %v4103_v2, %v2246_v36  ;;  %v1617_v36 = vadd.f32 %v3943_v17, %v3927_v48  ;;  %v3959_v2 = vsel %vm1637_vm10, 1.0, %v6888_v37 }
 0x221   : > { %v2809_v53 = vpop.f32.mrf.mxu0  ;;  %v6191_v44 = vadd.f32 %v4040_v4, %v1958_v41  ;;  %v3991_v48 = vsel %vm1773_vm12, 1.0, %v6888_v37  ;;  %v4054_v4 = vsel %vm2061_vm15, 1.0, %v6888_v37  ;;  %v4070_v41 = vsel %vm2129_vm0, 1.0, %v6888_v37 }
 0x222   : > { %v2860_v10 = vmul.f32 %v5685_v9, %v2809_v53  ;;  %v4167_v53 = vsel %vm2538_vm7, 1.0, %v6888_v37  ;;  %v2382_v31 = vadd.f32 %v4119_v0, %v2314_v21  ;;  %v1685_v21 = vadd.f32 %v3959_v2, %v1617_v36 }
 0x223   : > { %v2811_v45 = vpop.f32.mrf.mxu0  ;;  %v4039_v29 = vsel %vm1977_vm1, 1.0, %v6888_v37  ;;  %vm2333_vm5 = vcmp.eq.s32.totalorder %v5638_v14, %v5129_v34  ;;  %vm2401_vm4 = vcmp.eq.s32.totalorder %v5651_v27, %v5129_v34  ;;  %vm2469_vm6 = vcmp.eq.s32.totalorder %v5661_v8, %v5129_v34 }
 0x224   : > { %v2861_v61 = vmul.f32 %v5707_v59, %v2811_v45  ;;  %v2450_v0 = vadd.f32 %v4135_v5, %v2382_v31  ;;  %v1753_v17 = vadd.f32 %v3975_v62, %v1685_v21  ;;  %v4023_v62 = vsel %vm1909_vm14, 1.0, %v6888_v37 }
 0x225   : > { %v2815_v20 = vpop.f32.mrf.mxu0  ;;  %v2177_v5 = vadd.f32 %v4070_v41, %v4054_v4  ;;  %v4134_v31 = vsel %vm2401_vm4, 1.0, %v6888_v37  ;;  %vm1500_vm7 = vcmp.eq.s32.totalorder %v5603_v56, %v5129_v34  ;;  %vm1568_vm8 = vcmp.eq.s32.totalorder %v5606_v57, %v5129_v34 }
 0x226   : > { %v2862_v55 = vmul.f32 %v5685_v9, %v2815_v20  ;;  %v4007_v9 = vsel %vm1841_vm13, 1.0, %v6888_v37  ;;  %v4086_v20 = vsel %vm2197_vm2, 1.0, %v6888_v37  ;;  %vm2537_vm9 = vcmp.eq.s32.totalorder %v5675_v50, %v5129_v34 }
 0x227   : > { %v2817_v16 = vpop.f32.mrf.mxu0  ;;  %v3926_v36 = vsel %vm1500_vm7, 1.0, %v6888_v37  ;;  %vm1636_vm10 = vcmp.eq.s32.totalorder %v5630_v63, %v5129_v34  ;;  %vm1704_vm11 = vcmp.eq.s32.totalorder %v5633_v42, %v5129_v34  ;;  %vm1772_vm12 = vcmp.eq.s32.totalorder %v5646_v6, %v5129_v34 }
 0x228   : > { %v2863_v45 = vmul.f32 %v5707_v59, %v2817_v16  ;;  %v2518_v59 = vadd.f32 %v4151_v51, %v2450_v0  ;;  %v2245_v16 = vadd.f32 %v4086_v20, %v2177_v5  ;;  %v4150_v2 = vsel %vm2469_vm6, 1.0, %v6888_v37 }
 0x229   : > { %v4166_v21 = vsel %vm2537_vm9, 1.0, %v6888_v37  ;;  %vm1840_vm13 = vcmp.eq.s32.totalorder %v5667_v22, %v5129_v34  ;;  %vm1908_vm14 = vcmp.eq.s32.totalorder %v5670_v47, %v5129_v34  ;;  %vm1976_vm15 = vcmp.eq.s32.totalorder %v5692_v39, %v5129_v34 }
 0x22a   : > { %2892 = vmatprep.subr.mxu1 %v2863_v45  ;;  %v3958_v45 = vsel %vm1636_vm10, 1.0, %v6888_v37  ;;  %vm2060_vm0 = vcmp.eq.s32.totalorder %v5596_v38, %v5132_v35  ;;  %vm2128_vm1 = vcmp.eq.s32.totalorder %v5599_v54, %v5132_v35  ;;  %vm2196_vm2 = vcmp.eq.s32.totalorder %v5613_v26, %v5132_v35 }
 0x22b   : > { %2893 = vmatpush1.msra.mxu1 %v2862_v55  ;;  %v1821_v55 = vadd.f32 %v3991_v48, %v1753_v17  ;;  %v3974_v48 = vsel %vm1704_vm11, 1.0, %v6888_v37  ;;  %v3990_v17 = vsel %vm1772_vm12, 1.0, %v6888_v37  ;;  %v4069_v4 = vsel %vm2128_vm1, 1.0, %v6888_v37 }
 0x22c   : > { %2894 = vmatprep.subr.mxu1 %v2861_v61  ;;  %v4102_v61 = vsel %vm2265_vm3, 1.0, %v6888_v37  ;;  %v4085_v41 = vsel %vm2196_vm2, 1.0, %v6888_v37  ;;  %vm2264_vm3 = vcmp.eq.s32.totalorder %v5624_v19, %v5132_v35  ;;  %vm2400_vm4 = vcmp.eq.s32.totalorder %v5651_v27, %v5132_v35 }
 0x22d   : > { %2895 = vmatpush1.msra.mxu1 %v2860_v10  ;;  %v6218_v10 = vadd.f32 %v4167_v53, %v2518_v59  ;;  %v1889_v51 = vadd.f32 %v4007_v9, %v1821_v55  ;;  %v2313_v53 = vadd.f32 %v4102_v61, %v2245_v16  ;;  %v4006_v9 = vsel %vm1840_vm13, 1.0, %v6888_v37 }
 0x22e   : > { %2896 = vmatprep.subr.mxu1 %v2859_v43  ;;  %v4118_v43 = vsel %vm2333_vm5, 1.0, %v6888_v37  ;;  %vm2332_vm5 = vcmp.eq.s32.totalorder %v5638_v14, %v5132_v35  ;;  %v4022_v55 = vsel %vm1908_vm14, 1.0, %v6888_v37  ;;  %v4101_v20 = vsel %vm2264_vm3, 1.0, %v6888_v37 }
 0x22f   : > { %2897 = vmatpush1.msra.mxu1 %v6150_v33  ;;  %v1957_v33 = vadd.f32 %v4023_v62, %v1889_v51  ;;  %vm2468_vm6 = vcmp.eq.s32.totalorder %v5661_v8, %v5132_v35  ;;  %vm2536_vm7 = vcmp.eq.s32.totalorder %v5675_v50, %v5132_v35  ;;  %v4133_v34 = vsel %vm2400_vm4, 1.0, %v6888_v37 }
 0x230   : > { %2898 = vmatprep.subr.mxu1 %v6133_v32  ;;  %v3942_v32 = vsel %vm1568_vm8, 1.0, %v6888_v37  ;;  %vm1499_vm8 = vcmp.eq.s32.totalorder %v5603_v56, %v5132_v35  ;;  %vm1567_vm9 = vcmp.eq.s32.totalorder %v5606_v57, %v5132_v35  ;;  %vm1635_vm10 = vcmp.eq.s32.totalorder %v5630_v63, %v5132_v35 }
 0x231   : > { %2899 = vmatpush1.msra.mxu1 %v6128_v25  ;;  %v2381_v25 = vadd.f32 %v4118_v43, %v2313_v53  ;;  %v6248_v0 = vadd.f32 %v4039_v29, %v1957_v33  ;;  %v3925_v51 = vsel %vm1499_vm8, 1.0, %v6888_v37  ;;  %v3941_v16 = vsel %vm1567_vm9, 1.0, %v6888_v37 }
 0x232   : > { %2900 = vmatprep.subr.mxu1 %v6111_v60  ;;  %v1616_v60 = vadd.f32 %v3942_v32, %v3926_v36  ;;  %v3957_v43 = vsel %vm1635_vm10, 1.0, %v6888_v37  ;;  %vm1703_vm11 = vcmp.eq.s32.totalorder %v5633_v42, %v5132_v35  ;;  %vm1771_vm12 = vcmp.eq.s32.totalorder %v5646_v6, %v5132_v35 }
 0x233   : > { %2901 = vmatpush1.msra.mxu1 %v6098_v24  ;;  %v2449_v24 = vadd.f32 %v4134_v31, %v2381_v25  ;;  %v4149_v31 = vsel %vm2468_vm6, 1.0, %v6888_v37  ;;  %v3973_v33 = vsel %vm1703_vm11, 1.0, %v6888_v37  ;;  %vm1839_vm13 = vcmp.eq.s32.totalorder %v5667_v22, %v5132_v35 }
 0x234   : > { %2902 = vmatprep.subr.mxu1 %v6095_v58  ;;  %v1684_v59 = vadd.f32 %v3958_v45, %v1616_v60  ;;  %v4005_v25 = vsel %vm1839_vm13, 1.0, %v6888_v37  ;;  %vm1907_vm14 = vcmp.eq.s32.totalorder %v5670_v47, %v5132_v35  ;;  %vm2127_vm1 = vcmp.eq.s32.totalorder %v5599_v54, %v5148_v49 }
 0x235   : > { %2903 = vmatpush1.msra.mxu1 %v6083_v18  ;;  %v2517_v18 = vadd.f32 %v4150_v2, %v2449_v24  ;;  %vm2195_vm2 = vcmp.eq.s32.totalorder %v5613_v26, %v5148_v49  ;;  %v4068_v45 = vsel %vm2127_vm1, 1.0, %v6888_v37  ;;  %vm2263_vm3 = vcmp.eq.s32.totalorder %v5624_v19, %v5148_v49 }
 0x236   : > { %2904 = vmatprep.subr.mxu1 %v6069_v11  ;;  %v1752_v58 = vadd.f32 %v3974_v48, %v1684_v59  ;;  %v4053_v11 = vsel %vm2060_vm0, 1.0, %v6888_v37  ;;  %vm2059_vm0 = vcmp.eq.s32.totalorder %v5596_v38, %v5148_v49  ;;  %v6892_v59 = vld [vmem:[#allocation31_spill] sm:$0xff]  ;;  %vm2399_vm4 = vcmp.eq.s32.totalorder %v5651_v27, %v5148_v49 }
 0x237   : > { %2905 = vmatpush1.msra.mxu1 %v6058_v52  ;;  %v2176_v62 = vadd.f32 %v4069_v4, %v4053_v11  ;;  %v6287_v5 = vadd.f32 %v4166_v21, %v2517_v18  ;;  %v4052_v60 = vsel %vm2059_vm0, 1.0, %v6888_v37  ;;  %v4084_v21 = vsel %vm2195_vm2, 1.0, %v6888_v37 }
 0x238   : > { %2906 = vmatprep.subr.mxu1 %v6050_v12  ;;  %v1820_v52 = vadd.f32 %v3990_v17, %v1752_v58  ;;  %v4038_v12 = vsel %vm1976_vm15, 1.0, %v6888_v37  ;;  %vm1975_vm15 = vcmp.eq.s32.totalorder %v5692_v39, %v5132_v35  ;;  %v2175_v24 = vadd.f32 %v4068_v45, %v4052_v60  ;;  %v6895_v35 = vld [vmem:[#allocation27_spill] sm:$0xff] }
 0x239   : > { %2907 = vmatpush1.msra.mxu1 %v6032_v28  ;;  %v4117_v28 = vsel %vm2332_vm5, 1.0, %v6888_v37  ;;  %v2244_v61 = vadd.f32 %v4085_v41, %v2176_v62  ;;  %vm2331_vm5 = vcmp.eq.s32.totalorder %v5638_v14, %v5148_v49  ;;  %v4021_v17 = vsel %vm1907_vm14, 1.0, %v6888_v37 }
 0x23a   : > { %2908 = vmatprep.subr.mxu1 %v6022_v3  ;;  %v1888_v29 = vadd.f32 %v4006_v9, %v1820_v52  ;;  %v4037_v18 = vsel %vm1975_vm15, 1.0, %v6888_v37  ;;  %v4100_v58 = vsel %vm2263_vm3, 1.0, %v6888_v37  ;;  %v6893_v9 = vld [vmem:[#allocation30_spill] sm:$0xff]  ;;  %v2243_v41 = vadd.f32 %v4084_v21, %v2175_v24  ;;  %v2866_v24 = vld [vmem:[#allocation9 + $0x10] sm:$0xff] }
 0x23b   : > { %2909 = vmatpush1.msra.mxu1 %v6019_v30  ;;  %v2312_v3 = vadd.f32 %v4101_v20, %v2244_v61  ;;  %v4116_v52 = vsel %vm2331_vm5, 1.0, %v6888_v37  ;;  %v4132_v62 = vsel %vm2399_vm4, 1.0, %v6888_v37  ;;  %vm2467_vm6 = vcmp.eq.s32.totalorder %v5661_v8, %v5148_v49  ;;  %v6896_v61 = vld [vmem:[#allocation26_spill] sm:$0xff] }
 0x23c   : > { %2910 = vmatprep.subr.mxu1 %v6001_v40  ;;  %v1956_v30 = vadd.f32 %v4022_v55, %v1888_v29  ;;  %v1615_v40 = vadd.f32 %v3941_v16, %v3925_v51  ;;  %v6894_v55 = vld [vmem:[#allocation29_spill] sm:$0xff]  ;;  %vm1566_vm8 = vcmp.eq.s32.totalorder %v5606_v57, %v5148_v49  ;;  %vm2535_vm9 = vcmp.eq.s32.totalorder %v5675_v50, %v5148_v49 }
 0x23d   : > { %2911 = vmatpush1.msra.mxu1 %v5991_v23  ;;  %v2380_v23 = vadd.f32 %v4117_v28, %v2312_v3  ;;  %v2311_v28 = vadd.f32 %v4100_v58, %v2243_v41  ;;  %vm1634_vm10 = vcmp.eq.s32.totalorder %v5630_v63, %v5148_v49  ;;  %vm1702_vm11 = vcmp.eq.s32.totalorder %v5633_v42, %v5148_v49 }
 0x23e   : > { %2912 = vmatprep.subr.mxu1 %v5985_v46  ;;  %v4165_v46 = vsel %vm2536_vm7, 1.0, %v6888_v37  ;;  %v6326_v53 = vadd.f32 %v4038_v12, %v1956_v30  ;;  %v1683_v36 = vadd.f32 %v3957_v43, %v1615_v40  ;;  %v2864_v12 = vld [vmem:[#allocation9] sm:$0xff]  ;;  %vm1498_vm7 = vcmp.eq.s32.totalorder %v5603_v56, %v5148_v49  ;;  %v6897_v30 = vld [vmem:[#allocation20_spill] sm:$0xff] }
 0x23f   : > { %2913 = vmatpush1.msra.mxu1 %v5973_v7  ;;  %v3989_v7 = vsel %vm1771_vm12, 1.0, %v6888_v37  ;;  %v2448_v32 = vadd.f32 %v4133_v34, %v2380_v23  ;;  %v3924_v29 = vsel %vm1498_vm7, 1.0, %v6888_v37  ;;  %v3940_v34 = vsel %vm1566_vm8, 1.0, %v6888_v37  ;;  %v6898_v43 = vld [vmem:[#allocation21_spill] sm:$0xff]  ;;  %v2865_v23 = vld [vmem:[#allocation9 + $0x8] sm:$0xff] }
 0x240   : > { %2914 = vmatprep.subr.mxu1 %v5960_v15  ;;  %v1751_v15 = vadd.f32 %v3973_v33, %v1683_v36  ;;  %vm1770_vm12 = vcmp.eq.s32.totalorder %v5646_v6, %v5148_v49  ;;  %v2379_v3 = vadd.f32 %v4116_v52, %v2311_v28  ;;  %v4148_v51 = vsel %vm2467_vm6, 1.0, %v6888_v37  ;;  %v6899_v36 = vld [vmem:[#allocation22_spill] sm:$0xff]  ;;  %v6905_v52 = vld [vmem:[#allocation32_spill] sm:$0xff] }
 0x241   : > { %2915 = vmatpush1.msra.mxu1 %v5948_v1  ;;  %v6890_v1 = vld [vmem:[#allocation34_spill] sm:$0xff]  ;;  %v2516_v2 = vadd.f32 %v4149_v31, %v2448_v32  ;;  %v1614_v16 = vadd.f32 %v3940_v34, %v3924_v29  ;;  %v3956_v40 = vsel %vm1634_vm10, 1.0, %v6888_v37  ;;  %v3972_v33 = vsel %vm1702_vm11, 1.0, %v6888_v37  ;;  %v6907_v28 = vld [vmem:[#allocation36_spill] sm:$0xff]  ;;  %v6908_v34 = vld [vmem:[#allocation37_spill] sm:$0xff] }
 0x242   : > { %2916 = vmatprep.subr.mxu1 %v5940_v13  ;;  %v6891_v13 = vld [vmem:[#allocation33_spill] sm:$0xff]  ;;  %v1819_v48 = vadd.f32 %v3989_v7, %v1751_v15  ;;  %vm1838_vm13 = vcmp.eq.s32.totalorder %v5667_v22, %v5148_v49  ;;  %v2447_v7 = vadd.f32 %v4132_v62, %v2379_v3  ;;  %vm1906_vm14 = vcmp.eq.s32.totalorder %v5670_v47, %v5148_v49  ;;  %v6900_v15 = vld [vmem:[#allocation23_spill] sm:$0xff]  ;;  %v2867_v29 = vld [vmem:[#allocation9 + $0x18] sm:$0xff] }
 0x243   : > { %2917 = vmatpush1.msra.mxu1 %v6890_v1  ;;  %v6366_v11 = vadd.f32 %v4165_v46, %v2516_v2  ;;  %v4164_v46 = vsel %vm2535_vm9, 1.0, %v6888_v37  ;;  %v1682_v32 = vadd.f32 %v3956_v40, %v1614_v16  ;;  %vm1974_vm15 = vcmp.eq.s32.totalorder %v5692_v39, %v5148_v49  ;;  %v6901_v1 = vld [vmem:[#allocation17_spill] sm:$0xff]  ;;  %v6902_v2 = vld [vmem:[#allocation24_spill] sm:$0xff]  ;;  %v6906_v62 = vld [vmem:[#allocation35_spill] sm:$0xff] }
 0x244   : > { %2918 = vmatprep.subr.mxu1 %v6891_v13  ;;  %v1887_v4 = vadd.f32 %v4005_v25, %v1819_v48  ;;  %v3988_v25 = vsel %vm1770_vm12, 1.0, %v6888_v37  ;;  %vm2058_vm0 = vcmp.eq.s32.totalorder %v5596_v38, %v6901_v1  ;;  %vm2126_vm1 = vcmp.eq.s32.totalorder %v5599_v54, %v6901_v1  ;;  %v6903_v48 = vld [vmem:[#allocation25_spill] sm:$0xff]  ;;  %v6909_v40 = vld [vmem:[#allocation38_spill] sm:$0xff] }
 0x245   : > { %2919 = vmatpush1.msra.mxu1 %v6892_v59  ;;  %vm2194_vm2 = vcmp.eq.s32.totalorder %v5613_v26, %v6901_v1  ;;  %v2515_v60 = vadd.f32 %v4148_v51, %v2447_v7  ;;  %v1750_v45 = vadd.f32 %v3972_v33, %v1682_v32  ;;  %v4004_v21 = vsel %vm1838_vm13, 1.0, %v6888_v37 }
 0x246   : > { %2920 = vmatprep.subr.mxu1 %v6893_v9  ;;  %v1955_v20 = vadd.f32 %v4021_v17, %v1887_v4  ;;  %v4051_v13 = vsel %vm2058_vm0, 1.0, %v6888_v37  ;;  %v4067_v59 = vsel %vm2126_vm1, 1.0, %v6888_v37  ;;  %v4083_v17 = vsel %vm2194_vm2, 1.0, %v6888_v37 }
 0x247   : > { %2921 = vmatpush1.msra.mxu1 %v6894_v55  ;;  %vm2262_vm3 = vcmp.eq.s32.totalorder %v5624_v19, %v6901_v1  ;;  %vm2330_vm5 = vcmp.eq.s32.totalorder %v5638_v14, %v6901_v1  ;;  %v1818_v58 = vadd.f32 %v3988_v25, %v1750_v45  ;;  %v4020_v9 = vsel %vm1906_vm14, 1.0, %v6888_v37  ;;  %v6911_v25 = vld [vmem:[#allocation40_spill] sm:$0xff]  ;;  %v6912_v45 = vld [vmem:[#allocation41_spill] sm:$0xff] }
 0x248   : > { %2922 = vmatprep.subr.mxu1 %v6895_v35  ;;  %v6397_v31 = vadd.f32 %v4037_v18, %v1955_v20  ;;  %v6904_v18 = vld [vmem:[#allocation28_spill] sm:$0xff]  ;;  %v4036_v4 = vsel %vm1974_vm15, 1.0, %v6888_v37  ;;  %v2174_v41 = vadd.f32 %v4067_v59, %v4051_v13  ;;  %v6443_v55 = vadd.f32 %v4164_v46, %v2515_v60  ;;  %v6910_v46 = vld [vmem:[#allocation39_spill] sm:$0xff] }
 0x249   : > { %2923 = vmatpush1.msra.mxu1 %v6896_v61  ;;  %vm2398_vm4 = vcmp.eq.s32.totalorder %v5651_v27, %v6901_v1  ;;  %vm2466_vm6 = vcmp.eq.s32.totalorder %v5661_v8, %v6901_v1  ;;  %v1886_v35 = vadd.f32 %v4004_v21, %v1818_v58  ;;  %v4115_v49 = vsel %vm2330_vm5, 1.0, %v6888_v37 }
 0x24a   : > { %2957 = vmatmul.mubr.f32.vlgmr.msra.gmra.mxu1 %v2864_v12  ;;  %3122 = vmatprep.subr.mxu1 %v6897_v30  ;;  %v4099_v12 = vsel %vm2262_vm3, 1.0, %v6888_v37  ;;  %v2242_v20 = vadd.f32 %v4083_v17, %v2174_v41  ;;  %vm2534_vm7 = vcmp.eq.s32.totalorder %v5675_v50, %v6901_v1  ;;  %v4131_v61 = vsel %vm2398_vm4, 1.0, %v6888_v37 }
 0x24b   : > { %3123 = vmatpush1.msra.mxu1 %v6898_v43  ;;  %2962 = vmatprep.mubr.f32.mxu1 %v6888_v37  ;;  %vm1497_vm8 = vcmp.eq.s32.totalorder %v5603_v56, %v6901_v1  ;;  %vm1565_vm9 = vcmp.eq.s32.totalorder %v5606_v57, %v6901_v1  ;;  %vm1633_vm10 = vcmp.eq.s32.totalorder %v5630_v63, %v6901_v1  ;;  %v4163_v7 = vsel %vm2534_vm7, 1.0, %v6888_v37 }
 0x24c   : > { %3124 = vmatprep.subr.mxu1 %v6899_v36  ;;  %v1954_v30 = vadd.f32 %v4020_v9, %v1886_v35  ;;  %v2310_v3 = vadd.f32 %v4099_v12, %v2242_v20  ;;  %v3923_v51 = vsel %vm1497_vm8, 1.0, %v6888_v37  ;;  %v3939_v16 = vsel %vm1565_vm9, 1.0, %v6888_v37 }
 0x24d   : > { %3125 = vmatpush1.msra.mxu1 %v6900_v15  ;;  %v1613_v43 = vadd.f32 %v3939_v16, %v3923_v51  ;;  %vm1701_vm11 = vcmp.eq.s32.totalorder %v5633_v42, %v6901_v1  ;;  %vm1769_vm12 = vcmp.eq.s32.totalorder %v5646_v6, %v6901_v1  ;;  %v4147_v36 = vsel %vm2466_vm6, 1.0, %v6888_v37  ;;  %v6914_v16 = vld [vmem:[#allocation19_spill] sm:$0xff] }
 0x24e   : > { %2963 = vmatmul.mubr.f32.gmra.mxu1 %v2865_v23  ;;  %3126 = vmatprep.subr.mxu1 %v6902_v2  ;;  %v3955_v23 = vsel %vm1633_vm10, 1.0, %v6888_v37  ;;  %v2378_v33 = vadd.f32 %v4115_v49, %v2310_v3  ;;  %v3971_v32 = vsel %vm1701_vm11, 1.0, %v6888_v37  ;;  %v2022_v15 = vadd.f32 %v4036_v4, %v1954_v30 }
 0x24f   : > { %3127 = vmatpush1.msra.mxu1 %v6903_v48  ;;  %2968 = vmatprep.mubr.f32.mxu1 %v6888_v37  ;;  %v1681_v2 = vadd.f32 %v3955_v23, %v1613_v43  ;;  %v3987_v60 = vsel %vm1769_vm12, 1.0, %v6888_v37  ;;  %vm1837_vm13 = vcmp.eq.s32.totalorder %v5667_v22, %v6901_v1  ;;  %vm1905_vm14 = vcmp.eq.s32.totalorder %v5670_v47, %v6901_v1 }
 0x250   : > { %3128 = vmatprep.subr.mxu1 %v6904_v18  ;;  %v2446_v21 = vadd.f32 %v4131_v61, %v2378_v33  ;;  %v4003_v13 = vsel %vm1837_vm13, 1.0, %v6888_v37  ;;  %vm1973_vm15 = vcmp.eq.s32.totalorder %v5692_v39, %v6901_v1 }
 0x251   : > { %3129 = vmatpush1.msra.mxu1 %v6905_v52  ;;  %v1749_v48 = vadd.f32 %v3971_v32, %v1681_v2 }
 0x252   : > { %2969 = vmatmul.mubr.f32.gmra.mxu1 %v2866_v24  ;;  %3130 = vmatprep.subr.mxu1 %v6906_v62  ;;  %v6913_v24 = vld [vmem:[#allocation18_spill] sm:$0xff]  ;;  %v2514_v59 = vadd.f32 %v4147_v36, %v2446_v21 }
 0x253   : > { %3131 = vmatpush1.msra.mxu1 %v6907_v28  ;;  %2974 = vmatprep.mubr.f32.mxu1 %v6888_v37  ;;  %vm2057_vm0 = vcmp.eq.s32.totalorder %v5596_v38, %v6913_v24  ;;  %vm2125_vm1 = vcmp.eq.s32.totalorder %v5599_v54, %v6913_v24  ;;  %vm2193_vm2 = vcmp.eq.s32.totalorder %v5613_v26, %v6913_v24 }
 0x254   : > { %3132 = vmatprep.subr.mxu1 %v6908_v34  ;;  %v4050_v17 = vsel %vm2057_vm0, 1.0, %v6888_v37  ;;  %v4066_v18 = vsel %vm2125_vm1, 1.0, %v6888_v37  ;;  %v4082_v58 = vsel %vm2193_vm2, 1.0, %v6888_v37  ;;  %vm2261_vm3 = vcmp.eq.s32.totalorder %v5624_v19, %v6913_v24 }
 0x255   : > { %3133 = vmatpush1.msra.mxu1 %v6909_v40  ;;  %v2173_v9 = vadd.f32 %v4066_v18, %v4050_v17  ;;  %vm2329_vm5 = vcmp.eq.s32.totalorder %v5638_v14, %v6913_v24  ;;  %v4098_v4 = vsel %vm2261_vm3, 1.0, %v6888_v37  ;;  %vm2397_vm4 = vcmp.eq.s32.totalorder %v5651_v27, %v6913_v24 }
 0x256   : > { %2975 = vmatmul.mubr.f32.gmra.mxu1 %v2867_v29  ;;  %3134 = vmatprep.subr.mxu1 %v6910_v46  ;;  %v2582_v41 = vadd.f32 %v4163_v7, %v2514_v59  ;;  %v4114_v12 = vsel %vm2329_vm5, 1.0, %v6888_v37  ;;  %v4130_v62 = vsel %vm2397_vm4, 1.0, %v6888_v37  ;;  %vm2465_vm6 = vcmp.eq.s32.totalorder %v5661_v8, %v6913_v24 }
 0x257   : > { %3135 = vmatpush1.msra.mxu1 %v6911_v25  ;;  %3186 = vmatprep.mubr.f32.mxu1 %v6888_v37  ;;  %vm1496_vm7 = vcmp.eq.s32.totalorder %v5603_v56, %v6913_v24  ;;  %vm1564_vm8 = vcmp.eq.s32.totalorder %v5606_v57, %v6913_v24  ;;  %vm2533_vm9 = vcmp.eq.s32.totalorder %v5675_v50, %v6913_v24 }
 0x258   : > { %3136 = vmatprep.subr.mxu1 %v6912_v45  ;;  %v3938_v35 = vsel %vm1564_vm8, 1.0, %v6888_v37  ;;  %vm1632_vm10 = vcmp.eq.s32.totalorder %v5630_v63, %v6913_v24  ;;  %vm1700_vm11 = vcmp.eq.s32.totalorder %v5633_v42, %v6913_v24  ;;  %vm1768_vm12 = vcmp.eq.s32.totalorder %v5646_v6, %v6913_v24 }
 0x259   : > { %3137 = vmatpush1.msra.mxu1 %v6191_v44  ;;  %v1817_v44 = vadd.f32 %v3987_v60, %v1749_v48  ;;  %v3954_v28 = vsel %vm1632_vm10, 1.0, %v6888_v37  ;;  %v4162_v29 = vsel %vm2533_vm9, 1.0, %v6888_v37  ;;  %v3970_v61 = vsel %vm1700_vm11, 1.0, %v6888_v37 }
 0x25a   : > { %3138 = vmatprep.subr.mxu1 %v6218_v10  ;;  %v4019_v10 = vsel %vm1905_vm14, 1.0, %v6888_v37  ;;  %vm1836_vm13 = vcmp.eq.s32.totalorder %v5667_v22, %v6913_v24  ;;  %v3986_v3 = vsel %vm1768_vm12, 1.0, %v6888_v37  ;;  %vm1904_vm14 = vcmp.eq.s32.totalorder %v5670_v47, %v6913_v24 }
 0x25b   : > { %3139 = vmatpush1.msra.mxu1 %v6248_v0  ;;  %v4035_v0 = vsel %vm1973_vm15, 1.0, %v6888_v37  ;;  %v1885_v52 = vadd.f32 %v4003_v13, %v1817_v44  ;;  %v4002_v51 = vsel %vm1836_vm13, 1.0, %v6888_v37  ;;  %vm2056_vm15 = vcmp.eq.s32.totalorder %v5596_v38, %v6914_v16 }
 0x25c   : > { %3140 = vmatprep.subr.mxu1 %v6287_v5  ;;  %v2241_v5 = vadd.f32 %v4082_v58, %v2173_v9  ;;  %vm2124_vm0 = vcmp.eq.s32.totalorder %v5599_v54, %v6914_v16  ;;  %vm2192_vm1 = vcmp.eq.s32.totalorder %v5613_v26, %v6914_v16  ;;  %vm1972_vm2 = vcmp.eq.s32.totalorder %v5692_v39, %v6913_v24 }
 0x25d   : > { %3141 = vmatpush1.msra.mxu1 %v6326_v53  ;;  %v1953_v53 = vadd.f32 %v4019_v10, %v1885_v52  ;;  %v4049_v23 = vsel %vm2056_vm15, 1.0, %v6888_v37  ;;  %v4065_v46 = vsel %vm2124_vm0, 1.0, %v6888_v37  ;;  %v4081_v33 = vsel %vm2192_vm1, 1.0, %v6888_v37 }
 0x25e   : > { %3142 = vmatprep.subr.mxu1 %v6366_v11  ;;  %v2309_v1 = vadd.f32 %v4098_v4, %v2241_v5  ;;  %v3922_v11 = vsel %vm1496_vm7, 1.0, %v6888_v37  ;;  %vm2260_vm3 = vcmp.eq.s32.totalorder %v5624_v19, %v6914_v16  ;;  %vm2328_vm5 = vcmp.eq.s32.totalorder %v5638_v14, %v6914_v16 }
 0x25f   : > { %3143 = vmatpush1.msra.mxu1 %v6397_v31  ;;  %v2021_v31 = vadd.f32 %v4035_v0, %v1953_v53  ;;  %v1612_v49 = vadd.f32 %v3938_v35, %v3922_v11  ;;  %v4018_v32 = vsel %vm1904_vm14, 1.0, %v6888_v37  ;;  %v2172_v25 = vadd.f32 %v4065_v46, %v4049_v23  ;;  %v6915_v53 = vld [vmem:[#allocation14_spill] sm:$0xff] }
 0x260   : > { %3144 = vmatprep.subr.mxu1 %v6443_v55  ;;  %v2377_v20 = vadd.f32 %v4114_v12, %v2309_v1  ;;  %v4146_v55 = vsel %vm2465_vm6, 1.0, %v6888_v37  ;;  %v4097_v2 = vsel %vm2260_vm3, 1.0, %v6888_v37  ;;  %v4113_v60 = vsel %vm2328_vm5, 1.0, %v6888_v37 }
 0x261   : > { %3145 = vmatpush1.msra.mxu1 %v2022_v15  ;;  %v1680_v30 = vadd.f32 %v3954_v28, %v1612_v49  ;;  %v4034_v15 = vsel %vm1972_vm2, 1.0, %v6888_v37  ;;  %vm2396_vm4 = vcmp.eq.s32.totalorder %v5651_v27, %v6914_v16  ;;  %v2240_v21 = vadd.f32 %v4081_v33, %v2172_v25 }
 0x262   : > { %3146 = vmatprep.subr.mxu1 %v2582_v41  ;;  %v2445_v34 = vadd.f32 %v4130_v62, %v2377_v20  ;;  %vm2464_vm6 = vcmp.eq.s32.totalorder %v5661_v8, %v6914_v16  ;;  %vm2532_vm7 = vcmp.eq.s32.totalorder %v5675_v50, %v6914_v16  ;;  %v4129_v13 = vsel %vm2396_vm4, 1.0, %v6888_v37 }
 0x263   : > { %3147 = vmatpush1.msra.mxu1 %v2021_v31  ;;  %v1748_v43 = vadd.f32 %v3970_v61, %v1680_v30  ;;  %vm1495_vm8 = vcmp.eq.s32.totalorder %v5603_v56, %v6914_v16  ;;  %vm1563_vm9 = vcmp.eq.s32.totalorder %v5606_v57, %v6914_v16  ;;  %vm1631_vm10 = vcmp.eq.s32.totalorder %v5630_v63, %v6914_v16 }
 0x264   : > { %v2513_v40 = vadd.f32 %v4146_v55, %v2445_v34  ;;  %v2308_v24 = vadd.f32 %v4097_v2, %v2240_v21  ;;  %v3921_v59 = vsel %vm1495_vm8, 1.0, %v6888_v37  ;;  %v3937_v17 = vsel %vm1563_vm9, 1.0, %v6888_v37  ;;  %v2870_v2 = vld [vmem:[%s6826_s4 + $0x10] sm:$0xff]  ;;  %v2989_v21 = vld [vmem:[%s6827_s5] sm:$0xff] }
 0x265   : > { %v1816_v7 = vadd.f32 %v3986_v3, %v1748_v43  ;;  %v1611_v18 = vadd.f32 %v3937_v17, %v3921_v59  ;;  %v3953_v58 = vsel %vm1631_vm10, 1.0, %v6888_v37  ;;  %vm1699_vm11 = vcmp.eq.s32.totalorder %v5633_v42, %v6914_v16  ;;  %v3077_v59 = vld [vmem:[#allocation7 + $0x18] sm:$0xff]  ;;  %v2991_v17 = vld [vmem:[%s6827_s5 + $0x10] sm:$0xff] }
 0x266   : > { %v2581_v36 = vadd.f32 %v4162_v29, %v2513_v40  ;;  %vm1767_vm12 = vcmp.eq.s32.totalorder %v5646_v6, %v6914_v16  ;;  %v2376_v9 = vadd.f32 %v4113_v60, %v2308_v24  ;;  %v4145_v10 = vsel %vm2464_vm6, 1.0, %v6888_v37  ;;  %v3076_v24 = vld [vmem:[#allocation7 + $0x10] sm:$0xff] }
 0x267   : > { %v1884_v45 = vadd.f32 %v4002_v51, %v1816_v7  ;;  %v3969_v0 = vsel %vm1699_vm11, 1.0, %v6888_v37  ;;  %v4161_v4 = vsel %vm2532_vm7, 1.0, %v6888_v37  ;;  %v1679_v41 = vadd.f32 %v3953_v58, %v1611_v18  ;;  %v3078_v18 = vld [vmem:[#allocation7 + $0x20] sm:$0xff]  ;;  %v2992_v58 = vld [vmem:[%s6827_s5 + $0x18] sm:$0xff] }
 0x268   : > { %3148 = vmatprep.subr.mxu1 %v2581_v36  ;;  %v3985_v52 = vsel %vm1767_vm12, 1.0, %v6888_v37  ;;  %vm1835_vm13 = vcmp.eq.s32.totalorder %v5667_v22, %v6914_v16  ;;  %v2444_v5 = vadd.f32 %v4129_v13, %v2376_v9  ;;  %vm1903_vm14 = vcmp.eq.s32.totalorder %v5670_v47, %v6914_v16  ;;  %v3075_v13 = vld [vmem:[#allocation7 + $0x8] sm:$0xff]  ;;  %v3039_v9 = vld [vmem:[#allocation3] sm:$0x1] }
 0x269   : > { %v1952_v48 = vadd.f32 %v4018_v32, %v1884_v45  ;;  %v4001_v12 = vsel %vm1835_vm13, 1.0, %v6888_v37  ;;  %vm1971_vm15 = vcmp.eq.s32.totalorder %v5692_v39, %v6914_v16  ;;  %v1747_v62 = vadd.f32 %v3969_v0, %v1679_v41  ;;  %v3074_v45 = vld [vmem:[#allocation7] sm:$0xff]  ;;  %v3081_v0 = vld [vmem:[#allocation7 + $0x38] sm:$0xff]  ;;  %v3083_v41 = vld [vmem:[#allocation7 + $0x48] sm:$0xff] }
 0x26a   : > { %vm2055_vm0 = vcmp.eq.s32.totalorder %v5596_v38, %v6915_v53  ;;  %vm2123_vm1 = vcmp.eq.s32.totalorder %v5599_v54, %v6915_v53  ;;  %vm2191_vm2 = vcmp.eq.s32.totalorder %v5613_v26, %v6915_v53  ;;  %v2512_v1 = vadd.f32 %v4145_v10, %v2444_v5  ;;  %v3080_v10 = vld [vmem:[#allocation7 + $0x30] sm:$0xff]  ;;  %v3085_v5 = vld [vmem:[#allocation7 + $0x58] sm:$0xff] }
 0x26b   : > { %v2020_v44 = vadd.f32 %v4034_v15, %v1952_v48  ;;  %v4048_v11 = vsel %vm2055_vm0, 1.0, %v6888_v37  ;;  %v4064_v35 = vsel %vm2123_vm1, 1.0, %v6888_v37  ;;  %v4080_v31 = vsel %vm2191_vm2, 1.0, %v6888_v37  ;;  %v2990_v48 = vld [vmem:[%s6827_s5 + $0x8] sm:$0xff] }
 0x26c   : > { %v1815_v20 = vadd.f32 %v3985_v52, %v1747_v62  ;;  %v2171_v49 = vadd.f32 %v4064_v35, %v4048_v11  ;;  %vm2259_vm3 = vcmp.eq.s32.totalorder %v5624_v19, %v6915_v53  ;;  %vm2327_vm5 = vcmp.eq.s32.totalorder %v5638_v14, %v6915_v53  ;;  %v3084_v52 = vld [vmem:[#allocation7 + $0x50] sm:$0xff]  ;;  %v3087_v62 = vld [vmem:[#allocation7 + $0x68] sm:$0xff]  ;;  %v3089_v11 = vld [vmem:[#allocation7 + $0x78] sm:$0xff] }
 0x26d   : > { %3149 = vmatpush1.msra.mxu1 %v2020_v44  ;;  %v2580_v38 = vadd.f32 %v4161_v4, %v2512_v1  ;;  %v4017_v54 = vsel %vm1903_vm14, 1.0, %v6888_v37  ;;  %v4096_v26 = vsel %vm2259_vm3, 1.0, %v6888_v37  ;;  %vm2395_vm4 = vcmp.eq.s32.totalorder %v5651_v27, %v6915_v53  ;;  %v3079_v44 = vld [vmem:[#allocation7 + $0x28] sm:$0xff]  ;;  %v3082_v4 = vld [vmem:[#allocation7 + $0x40] sm:$0xff]  ;;  %v3088_v1 = vld [vmem:[#allocation7 + $0x70] sm:$0xff] }
 0x26e   : > { %v1883_v28 = vadd.f32 %v4001_v12, %v1815_v20  ;;  %v4033_v55 = vsel %vm1971_vm15, 1.0, %v6888_v37  ;;  %v2239_v29 = vadd.f32 %v4080_v31, %v2171_v49  ;;  %v4112_v19 = vsel %vm2327_vm5, 1.0, %v6888_v37  ;;  %v3086_v12 = vld [vmem:[#allocation7 + $0x60] sm:$0xff] }
 0x26f   : > { %3150 = vmatprep.subr.mxu1 %v2580_v38  ;;  %v4128_v14 = vsel %vm2395_vm4, 1.0, %v6888_v37  ;;  %vm2463_vm6 = vcmp.eq.s32.totalorder %v5661_v8, %v6915_v53  ;;  %vm1494_vm7 = vcmp.eq.s32.totalorder %v5603_v56, %v6915_v53  ;;  %vm1562_vm8 = vcmp.eq.s32.totalorder %v5606_v57, %v6915_v53 }
 0x270   : > { %v1951_v27 = vadd.f32 %v4017_v54, %v1883_v28  ;;  %v2307_v61 = vadd.f32 %v4096_v26, %v2239_v29  ;;  %vm2531_vm9 = vcmp.eq.s32.totalorder %v5675_v50, %v6915_v53  ;;  %v3920_v34 = vsel %vm1494_vm7, 1.0, %v6888_v37  ;;  %v2869_v50 = vld [vmem:[%s6826_s4 + $0x8] sm:$0xff] }
 0x271   : > { %v3936_v30 = vsel %vm1562_vm8, 1.0, %v6888_v37  ;;  %vm1630_vm10 = vcmp.eq.s32.totalorder %v5630_v63, %v6915_v53  ;;  %vm1698_vm11 = vcmp.eq.s32.totalorder %v5633_v42, %v6915_v53  ;;  %vm1766_vm12 = vcmp.eq.s32.totalorder %v5646_v6, %v6915_v53  ;;  %v2868_v63 = vld [vmem:[%s6826_s4] sm:$0xff] }
 0x272   : > { %v2019_v56 = vadd.f32 %v4033_v55, %v1951_v27  ;;  %v2375_v57 = vadd.f32 %v4112_v19, %v2307_v61  ;;  %v1610_v8 = vadd.f32 %v3936_v30, %v3920_v34  ;;  %v3952_v3 = vsel %vm1630_vm10, 1.0, %v6888_v37 }
 0x273   : > { %v4144_v51 = vsel %vm2463_vm6, 1.0, %v6888_v37  ;;  %v3968_v16 = vsel %vm1698_vm11, 1.0, %v6888_v37  ;;  %vm1834_vm13 = vcmp.eq.s32.totalorder %v5667_v22, %v6915_v53  ;;  %v4160_v42 = vsel %vm2531_vm9, 1.0, %v6888_v37 }
 0x274   : > { %3151 = vmatpush1.msra.mxu1 %v2019_v56  ;;  %v2443_v40 = vadd.f32 %v4128_v14, %v2375_v57  ;;  %v1678_v43 = vadd.f32 %v3952_v3, %v1610_v8  ;;  %v3984_v6 = vsel %vm1766_vm12, 1.0, %v6888_v37  ;;  %vm1902_vm14 = vcmp.eq.s32.totalorder %v5670_v47, %v6915_v53 }
 0x275   : > { %v4413_v33 = vmov 0   ;;  %v4000_v22 = vsel %vm1834_vm13, 1.0, %v6888_v37  ;;  %vm1970_vm15 = vcmp.eq.s32.totalorder %v5692_v39, %v6915_v53  ;;  %v4016_v32 = vsel %vm1902_vm14, 1.0, %v6888_v37  ;;  %v2871_v39 = vld [vmem:[%s6826_s4 + $0x18] sm:$0xff] }
 0x276   : > { %v2511_v23 = vadd.f32 %v4144_v51, %v2443_v40  ;;  %v1746_v46 = vadd.f32 %v3968_v16, %v1678_v43  ;;  %4255 = vset.pattern.permute.xlu0 %v4413_v33  ;;  %4256 = vset.pattern.permute.xlu1 %v4413_v33  ;;  %v4032_v25 = vsel %vm1970_vm15, 1.0, %v6888_v37 }
 0x277   : > { %2874 = vperm.xlu0 %4255, %v2868_v63   ;;  %3337 = vperm.xlu1 %4256, %v2868_v63  }
 0x278   : > { %v2579_v36 = vadd.f32 %v4160_v42, %v2511_v23  ;;  %v1814_v7 = vadd.f32 %v3984_v6, %v1746_v46 }
 0x27a   : > { %3152 = vmatprep.subr.mxu1 %v2579_v36  ;;  %v1882_v47 = vadd.f32 %v4000_v22, %v1814_v7 }
 0x27b   : > { %2879 = vperm.xlu0 %4255, %v2869_v50   ;;  %3342 = vperm.xlu1 %4256, %v2869_v50  }
 0x27c   : > { %v1950_v15 = vadd.f32 %v4016_v32, %v1882_v47 }
 0x27e   : > { %v2018_v60 = vadd.f32 %v4032_v25, %v1950_v15 }
 0x27f   : > { %2884 = vperm.xlu0 %4255, %v2870_v2   ;;  %3347 = vperm.xlu1 %4256, %v2870_v2  }
 0x280   : > { %3153 = vmatpush1.msra.mxu1 %v2018_v60 }
 0x281   : > { %3187 = vmatmul.mubr.f32.vlgmr.msra.gmra.mxu1 %v3074_v45 }
 0x282   : > { %3192 = vmatprep.mubr.f32.mxu1 %v6888_v37 }
 0x283   : > { %2889 = vperm.xlu0 %4255, %v2871_v39   ;;  %2995 = vperm.xlu1 %4256, %v2989_v21  }
 0x285   : > { %3193 = vmatmul.mubr.f32.gmra.mxu1 %v3075_v13 }
 0x286   : > { %3198 = vmatprep.mubr.f32.mxu1 %v6888_v37 }
 0x287   : > { %3000 = vperm.xlu0 %4255, %v2990_v48   ;;  %3352 = vperm.xlu1 %4256, %v2871_v39  }
 0x289   : > { %3199 = vmatmul.mubr.f32.gmra.mxu1 %v3076_v24 }
 0x28a   : > { %3204 = vmatprep.mubr.f32.mxu1 %v6888_v37 }
 0x28b   : > { %3458 = vperm.xlu0 %4255, %v2989_v21   ;;  %3463 = vperm.xlu1 %4256, %v2990_v48  }
 0x28d   : > { %3205 = vmatmul.mubr.f32.gmra.mxu1 %v3077_v59 }
 0x28e   : > { %3210 = vmatprep.mubr.f32.mxu1 %v6888_v37 }
 0x28f   : > { %3005 = vperm.xlu0 %4255, %v2991_v17   ;;  %3468 = vperm.xlu1 %4256, %v2991_v17  }
 0x291   : > { %3211 = vmatmul.mubr.f32.gmra.mxu1 %v3078_v18 }
 0x292   : > { %3216 = vmatprep.mubr.f32.mxu1 %v6888_v37 }
 0x293   : > { %3010 = vperm.xlu0 %4255, %v2992_v58   ;;  %3473 = vperm.xlu1 %4256, %v2992_v58  }
 0x295   : > { %3217 = vmatmul.mubr.f32.gmra.mxu1 %v3079_v44 }
 0x296   : > { %3222 = vmatprep.mubr.f32.mxu1 %v6888_v37 }
 0x297   : > { %3042 = vperm.xlu0 %4255, %v3039_v9  }
 0x299   : > { %3223 = vmatmul.mubr.f32.gmra.mxu1 %v3080_v10 }
 0x29a   : > { %3228 = vmatprep.mubr.f32.mxu1 %v6888_v37 }
 0x29d   : > { %3229 = vmatmul.mubr.f32.gmra.mxu1 %v3081_v0 }
 0x29e   : > { %3234 = vmatprep.mubr.f32.mxu1 %v6888_v37 }
 0x2a1   : > { %3235 = vmatmul.mubr.f32.gmra.mxu1 %v3082_v4 }
 0x2a2   : > { %3240 = vmatprep.mubr.f32.mxu1 %v6888_v37 }
 0x2a5   : > { %3241 = vmatmul.mubr.f32.gmra.mxu1 %v3083_v41 }
 0x2a6   : > { %3246 = vmatprep.mubr.f32.mxu1 %v6888_v37 }
 0x2a9   : > { %3247 = vmatmul.mubr.f32.gmra.mxu1 %v3084_v52  ;;  %v4414_v52 = vmov 1966171168  }
 0x2aa   : > { %3252 = vmatprep.mubr.f32.mxu1 %v6888_v37 }
 0x2ad   : > { %3253 = vmatmul.mubr.f32.gmra.mxu1 %v3085_v5  ;;  %v3055_v5 = vunpack.c.l.s4 %v4414_v52 }
 0x2ae   : > { %3258 = vmatprep.mubr.f32.mxu1 %v6888_v37 }
 0x2b1   : > { %3259 = vmatmul.mubr.f32.gmra.mxu1 %v3086_v12 }
 0x2b2   : > { %3264 = vmatprep.mubr.f32.mxu1 %v6888_v37 }
 0x2b5   : > { %3265 = vmatmul.mubr.f32.gmra.mxu1 %v3087_v62 }
 0x2b6   : > { %3270 = vmatprep.mubr.f32.mxu1 %v6888_v37 }
 0x2b9   : > { %3271 = vmatmul.mubr.f32.gmra.mxu1 %v3088_v1 }
 0x2ba   : > { %3276 = vmatprep.mubr.f32.mxu1 %v6888_v37 }
 0x2bd   : > { %3277 = vmatmul.mubr.f32.gmra.mxu1 %v3089_v11 }
 0x2f2   : > { %v2875_v35 = vpop.permute.xlu0 %2874  ;;  %v6707_v49 = vpop.permute.xlu1 %3337 }
 0x2f6   : > { %v2880_v31 = vpop.permute.xlu0 %2879  ;;  %v6709_v54 = vpop.permute.xlu1 %3342 }
 0x2fa   : > { %v2885_v20 = vpop.permute.xlu0 %2884  ;;  %v6713_v19 = vpop.permute.xlu1 %3347 }
 0x2fe   : > { %v2890_v38 = vpop.permute.xlu0 %2889  ;;  %v2996_v16 = vpop.permute.xlu1 %2995 }
 0x302   : > { %v3001_v26 = vpop.permute.xlu0 %3000 }
 0x306   : > { %v6711_v29 = vpop.permute.xlu0 %3458 }
 0x30a   : > { %v2958_v28 = vpop.f32.mrf.mxu1  ;;  %v3006_v51 = vpop.permute.xlu0 %3005 }
 0x30b   : > { %v2959_v14 = vadd.f32 %v2958_v28, %v2875_v35 }
 0x30c   : > { %v2960_v55 = vpop.f32.mrf.mxu1 }
 0x30d   : > { %v2961_v34 = vadd.f32 %v2960_v55, %v2875_v35  ;;  %v2981_v8 = vmax.f32 %v2959_v14, 0.0  ;;  %v3056_v35 = vunpack.c.0.s8 %v3055_v5 }
 0x30e   : > { %v2964_v27 = vpop.f32.mrf.mxu1  ;;  %v3011_v15 = vpop.permute.xlu0 %3010 }
 0x30f   : > { %v2965_v61 = vadd.f32 %v2964_v27, %v2880_v31  ;;  %v2982_v63 = vmax.f32 %v2961_v34, 0.0  ;;  %v3013_v33 = vmul.f32 %v2996_v16, %v2981_v8  ;;  %v6717_v55 = vsub.s32 %v3056_v35, %v6915_v53  ;;  %v3502_v8 = vld [vmem:[#allocation3] sm:$0x1] }
 0x310   : > { %v2966_v30 = vpop.f32.mrf.mxu1  ;;  %3505 = vperm.xlu1 %4256, %v3502_v8  }
 0x311   : > { %v2983_v56 = vmax.f32 %v2965_v61, 0.0  ;;  %v2967_v57 = vadd.f32 %v2966_v30, %v2880_v31  ;;  %v3014_v47 = vmul.f32 %v2996_v16, %v2982_v63  ;;  %v6917_v30 = vlaneseq }
 0x312   : > { %v2970_v3 = vpop.f32.mrf.mxu1  ;;  %v3043_v62 = vpop.permute.xlu0 %3042 }
 0x313   : > { %v2984_v40 = vmax.f32 %v2967_v57, 0.0  ;;  %v2971_v43 = vadd.f32 %v2970_v3, %v2885_v20  ;;  %v3015_v6 = vmul.f32 %v3001_v26, %v2983_v56  ;;  %vm6721_vm0 = vcmp.lt.s32.totalorder %v6917_v30, 256 }
 0x314   : > { %v2972_v42 = vpop.f32.mrf.mxu1 }
 0x315   : > { %v2985_v23 = vmax.f32 %v2971_v43, 0.0  ;;  %v2973_v46 = vadd.f32 %v2972_v42, %v2885_v20  ;;  %v3016_v36 = vmul.f32 %v3001_v26, %v2984_v40  ;;  %v3021_v2 = vadd.f32 %v3015_v6, %v3013_v33 }
 0x316   : > { %v2976_v22 = vpop.f32.mrf.mxu1 }
 0x317   : > { %v2986_v7 = vmax.f32 %v2973_v46, 0.0  ;;  %v3017_v50 = vmul.f32 %v3006_v51, %v2985_v23  ;;  %v2977_v32 = vadd.f32 %v2976_v22, %v2890_v38  ;;  %v3030_v21 = vadd.f32 %v3016_v36, %v3014_v47 }
 0x318   : > { %v2978_v25 = vpop.f32.mrf.mxu1 }
 0x319   : > { %v3018_v60 = vmul.f32 %v3006_v51, %v2986_v7  ;;  %v2987_v45 = vmax.f32 %v2977_v32, 0.0  ;;  %v2979_v39 = vadd.f32 %v2978_v25, %v2890_v38  ;;  %v3022_v13 = vadd.f32 %v3021_v2, %v3017_v50  ;;  %v6916_v38 = vld [vmem:[#allocation15_spill] sm:$0xff] }
 0x31a   : > { %v3048_v26 = vrot.slane %v3043_v62, %v6916_v38 }
 0x31b   : > { %v2988_v48 = vmax.f32 %v2979_v39, 0.0  ;;  %v3019_v24 = vmul.f32 %v3011_v15, %v2987_v45  ;;  %v3031_v59 = vadd.f32 %v3030_v21, %v3018_v60 }
 0x31d   : > { %v3020_v17 = vmul.f32 %v3011_v15, %v2988_v48  ;;  %v3023_v18 = vadd.f32 %v3022_v13, %v3019_v24 }
 0x31f   : > { %v3024_v58 = vrot.slane %v3023_v18, 4  ;;  %v3032_v44 = vadd.f32 %v3031_v59, %v3020_v17 }
 0x321   : > { %v3025_v9 = vadd.f32 %v3024_v58, %v3023_v18  ;;  %v3033_v10 = vrot.slane %v3032_v44, 4  ;;  %v3283_v18 = vld [vmem:[%s4583_s2 + $0x2] sm:$0x3]  ;;  %s3548_s2 = sshll.u32 %s6728_s14, 4  ;;  %s3549_s2 = int_to_ptr.vmem [resolvable:$true] %s3548_s2 }
 0x322   : > { %s4337_s10 = scalar_lea.vmem %s3549_s2, 64  ;;  %p4344_p12 = scmp.lt.s32.totalorder %s3549_s2, %s4342_s8 }
 0x323   : > { %v3026_v0 = vrot.slane %v3025_v9, 2  ;;  %v3034_v4 = vadd.f32 %v3033_v10, %v3032_v44  ;;  %v6920_v44 = vld [vmem:[#allocation16_spill] sm:$0xff]  ;;  %v3288_v10 = vrot.slane %v3283_v18, %v6916_v38  ;;  %p4338_p0 = scmp.ne.s32.totalorder %s3549_s2, %s4337_s10  ;;  %p4345_p7 = scmp.lt.s32.totalorder %s4343_s18, %s4337_s10 }
 0x325   : > { %v3035_v41 = vrot.slane %v3034_v4, 2  ;;  %v3027_v12 = vadd.f32 %v3026_v0, %v3025_v9  ;;  %v3292_v9 = vrot.slane %v3283_v18, %v6920_v44  ;;  %p4339_p2 = pnand %p4338_p0, %p6921_p1  ;;  %p4346_p9 = por %p4345_p7, %p4344_p12 }
 0x327   : > { %v3028_v1 = vrot.slane %v3027_v12, 1  ;;  %v3036_v11 = vadd.f32 %v3035_v41, %v3034_v4  ;;  %p4340_p6 = pneg %p4339_p2 }
 0x329   : > { %v3029_v31 = vadd.f32 %v3028_v1, %v3027_v12  ;;  %v3037_v20 = vrot.slane %v3036_v11, 1  ;;  %p4347_p13 = pnand %p4346_p9, %p4340_p6 }
 0x32b   : > { %v3038_v28 = vadd.f32 %v3037_v20, %v3036_v11  ;;  %v3049_v14 = vadd.f32 %v3048_v26, %v3029_v31 }
 0x32d   : > { %v3050_v27 = vadd.f32 %v3048_v26, %v3038_v28 }
 0x32f   : > { %v3053_v61 = vcombine.low %v3049_v14, %v3050_v27 }
 0x331   : > { %v3060_v34 = vrot.slane %v3053_v61, %v6717_v55 }
 0x333   : > { %v3067_v57 = vrot.slane %v3060_v34, %v6717_v55 }
 0x335   : > { %3073 = vst.msk [vmem:[%s6728_s14] sm:$0x3] %vm6721_vm0, %v3067_v57 }
 0x341   : > { %v6733_v53 = vpop.f32.mrf.mxu1 }
 0x343   : > { %v6735_v3 = vpop.f32.mrf.mxu1 }
 0x345   : > { %v6737_v51 = vpop.f32.mrf.mxu1 }
 0x347   : > { %v6739_v16 = vpop.f32.mrf.mxu1 }
 0x349   : > { %v6741_v40 = vpop.f32.mrf.mxu1 }
 0x34b   : > { %v6743_v43 = vpop.f32.mrf.mxu1 }
 0x34d   : > { %v6745_v63 = vpop.f32.mrf.mxu1 }
 0x34f   : > { %v6747_v42 = vpop.f32.mrf.mxu1 }
 0x351   : > { %v6749_v6 = vpop.f32.mrf.mxu1 }
 0x353   : > { %v6751_v23 = vpop.f32.mrf.mxu1 }
 0x355   : > { %v6753_v46 = vpop.f32.mrf.mxu1 }
 0x357   : > { %v3220_v33 = vpop.f32.mrf.mxu1 }
 0x359   : > { %v3224_v22 = vpop.f32.mrf.mxu1 }
 0x35a   : > { %v3307_v8 = vmul.f32 %v3288_v10, %v3224_v22  ;;  %v3300_v22 = vmul.f32 %v3292_v9, %v6743_v43 }
 0x35b   : > { %v3226_v36 = vpop.f32.mrf.mxu1 }
 0x35c   : > { %v3308_v57 = vmul.f32 %v3292_v9, %v3226_v36 }
 0x35d   : > { %v3230_v7 = vpop.f32.mrf.mxu1 }
 0x35e   : > { %v3309_v30 = vmul.f32 %v3288_v10, %v3230_v7  ;;  %v3301_v7 = vmul.f32 %v3288_v10, %v6745_v63  ;;  %v3327_v63 = vld [vmem:[#allocation9] sm:$0xff] }
 0x35f   : > { %v3232_v50 = vpop.f32.mrf.mxu1 }
 0x360   : > { %v3310_v34 = vmul.f32 %v3292_v9, %v3232_v50  ;;  %v3302_v50 = vmul.f32 %v3292_v9, %v6747_v42  ;;  %v3295_v42 = vmul.f32 %v3288_v10, %v6733_v53 }
 0x361   : > { %v3236_v32 = vpop.f32.mrf.mxu1 }
 0x362   : > { %v3311_v61 = vmul.f32 %v3288_v10, %v3236_v32 }
 0x363   : > { %v3238_v47 = vpop.f32.mrf.mxu1 }
 0x364   : > { %v3312_v27 = vmul.f32 %v3292_v9, %v3238_v47  ;;  %v3303_v47 = vmul.f32 %v3288_v10, %v6749_v6  ;;  %v3296_v6 = vmul.f32 %v3292_v9, %v6735_v3  ;;  %v3353_v3 = vpop.permute.xlu1 %3352 }
 0x365   : > { %v3242_v25 = vpop.f32.mrf.mxu1 }
 0x366   : > { %v3313_v14 = vmul.f32 %v3288_v10, %v3242_v25  ;;  %v3304_v25 = vmul.f32 %v3292_v9, %v6751_v23  ;;  %v3297_v23 = vmul.f32 %v3288_v10, %v6737_v51  ;;  %v3330_v51 = vld [vmem:[#allocation9 + $0x18] sm:$0xff] }
 0x367   : > { %v3244_v15 = vpop.f32.mrf.mxu1 }
 0x368   : > { %v3314_v28 = vmul.f32 %v3292_v9, %v3244_v15  ;;  %v3464_v15 = vpop.permute.xlu1 %3463 }
 0x369   : > { %v3248_v2 = vpop.f32.mrf.mxu1 }
 0x36a   : > { %v3315_v26 = vmul.f32 %v3288_v10, %v3248_v2  ;;  %v3305_v2 = vmul.f32 %v3288_v10, %v6753_v46  ;;  %v3298_v46 = vmul.f32 %v3292_v9, %v6739_v16  ;;  %v3329_v16 = vld [vmem:[#allocation9 + $0x10] sm:$0xff] }
 0x36b   : > { %v3250_v60 = vpop.f32.mrf.mxu1 }
 0x36c   : > { %v3316_v20 = vmul.f32 %v3292_v9, %v3250_v60  ;;  %v3306_v60 = vmul.f32 %v3292_v9, %v3220_v33  ;;  %v3299_v33 = vmul.f32 %v3288_v10, %v6741_v40  ;;  %v3328_v40 = vld [vmem:[#allocation9 + $0x8] sm:$0xff]  ;;  %v3469_v44 = vpop.permute.xlu1 %3468 }
 0x36d   : > { %v3254_v45 = vpop.f32.mrf.mxu1 }
 0x36e   : > { %v3317_v31 = vmul.f32 %v3288_v10, %v3254_v45 }
 0x36f   : > { %v3256_v39 = vpop.f32.mrf.mxu1 }
 0x370   : > { %v3318_v35 = vmul.f32 %v3292_v9, %v3256_v39 }
 0x371   : > { %v3260_v21 = vpop.f32.mrf.mxu1 }
 0x372   : > { %v3319_v11 = vmul.f32 %v3288_v10, %v3260_v21 }
 0x373   : > { %v3262_v13 = vpop.f32.mrf.mxu1 }
 0x374   : > { %v3320_v1 = vmul.f32 %v3292_v9, %v3262_v13 }
 0x375   : > { %v3266_v48 = vpop.f32.mrf.mxu1 }
 0x376   : > { %v3321_v62 = vmul.f32 %v3288_v10, %v3266_v48 }
 0x377   : > { %v3268_v24 = vpop.f32.mrf.mxu1 }
 0x378   : > { %v3322_v12 = vmul.f32 %v3292_v9, %v3268_v24 }
 0x379   : > { %v3272_v59 = vpop.f32.mrf.mxu1 }
 0x37a   : > { %v3323_v5 = vmul.f32 %v3288_v10, %v3272_v59 }
 0x37b   : > { %v3274_v17 = vpop.f32.mrf.mxu1 }
 0x37c   : > { %v3324_v52 = vmul.f32 %v3292_v9, %v3274_v17 }
 0x37d   : > { %v3278_v58 = vpop.f32.mrf.mxu1 }
 0x37e   : > { %v3325_v41 = vmul.f32 %v3288_v10, %v3278_v58 }
 0x37f   : > { %v3280_v0 = vpop.f32.mrf.mxu1 }
 0x380   : > { %v3326_v4 = vmul.f32 %v3292_v9, %v3280_v0 }
 0x382   : > { %3355 = vmatprep.subr.mxu0 %v3326_v4 }
 0x383   : > { %3356 = vmatpush1.msra.mxu0 %v3325_v41 }
 0x384   : > { %3357 = vmatprep.subr.mxu0 %v3324_v52 }
 0x385   : > { %3358 = vmatpush1.msra.mxu0 %v3323_v5 }
 0x386   : > { %3359 = vmatprep.subr.mxu0 %v3322_v12 }
 0x387   : > { %3360 = vmatpush1.msra.mxu0 %v3321_v62 }
 0x388   : > { %3361 = vmatprep.subr.mxu0 %v3320_v1 }
 0x389   : > { %3362 = vmatpush1.msra.mxu0 %v3319_v11 }
 0x38a   : > { %3363 = vmatprep.subr.mxu0 %v3318_v35 }
 0x38b   : > { %3364 = vmatpush1.msra.mxu0 %v3317_v31 }
 0x38c   : > { %3365 = vmatprep.subr.mxu0 %v3316_v20  ;;  %v3474_v20 = vpop.permute.xlu1 %3473 }
 0x38d   : > { %3366 = vmatpush1.msra.mxu0 %v3315_v26 }
 0x38e   : > { %3367 = vmatprep.subr.mxu0 %v3314_v28 }
 0x38f   : > { %3368 = vmatpush1.msra.mxu0 %v3313_v14 }
 0x390   : > { %3369 = vmatprep.subr.mxu0 %v3312_v27 }
 0x391   : > { %3370 = vmatpush1.msra.mxu0 %v3311_v61 }
 0x392   : > { %3371 = vmatprep.subr.mxu0 %v3310_v34 }
 0x393   : > { %3372 = vmatpush1.msra.mxu0 %v3309_v30 }
 0x394   : > { %3373 = vmatprep.subr.mxu0 %v3308_v57 }
 0x395   : > { %3374 = vmatpush1.msra.mxu0 %v3307_v8 }
 0x396   : > { %3375 = vmatprep.subr.mxu0 %v3306_v60 }
 0x397   : > { %3376 = vmatpush1.msra.mxu0 %v3305_v2 }
 0x398   : > { %3377 = vmatprep.subr.mxu0 %v3304_v25 }
 0x399   : > { %3378 = vmatpush1.msra.mxu0 %v3303_v47 }
 0x39a   : > { %3379 = vmatprep.subr.mxu0 %v3302_v50 }
 0x39b   : > { %3380 = vmatpush1.msra.mxu0 %v3301_v7 }
 0x39c   : > { %3381 = vmatprep.subr.mxu0 %v3300_v22  ;;  %v3506_v22 = vpop.permute.xlu1 %3505 }
 0x39d   : > { %3382 = vmatpush1.msra.mxu0 %v3299_v33 }
 0x39e   : > { %3383 = vmatprep.subr.mxu0 %v3298_v46 }
 0x39f   : > { %3384 = vmatpush1.msra.mxu0 %v3297_v23 }
 0x3a0   : > { %3385 = vmatprep.subr.mxu0 %v3296_v6  ;;  %v3511_v6 = vrot.slane %v3506_v22, %v6916_v38 }
 0x3a1   : > { %3386 = vmatpush1.msra.mxu0 %v3295_v42 }
 0x3a2   : > { %3420 = vmatmul.mubr.f32.vlgmr.msra.gmra.mxu0 %v3327_v63 }
 0x3a3   : > { %3425 = vmatprep.mubr.f32.mxu0 %v6888_v37 }
 0x3a6   : > { %3426 = vmatmul.mubr.f32.gmra.mxu0 %v3328_v40 }
 0x3a7   : > { %3431 = vmatprep.mubr.f32.mxu0 %v6888_v37 }
 0x3aa   : > { %3432 = vmatmul.mubr.f32.gmra.mxu0 %v3329_v16 }
 0x3ab   : > { %3437 = vmatprep.mubr.f32.mxu0 %v6888_v37 }
 0x3ae   : > { %3438 = vmatmul.mubr.f32.gmra.mxu0 %v3330_v51 }
 0x462   : > { %v3421_v43 = vpop.f32.mrf.mxu0 }
 0x463   : > { %v3422_v36 = vadd.f32 %v3421_v43, %v6707_v49 }
 0x464   : > { %v3423_v53 = vpop.f32.mrf.mxu0 }
 0x465   : > { %v3424_v39 = vadd.f32 %v3423_v53, %v6707_v49  ;;  %v3444_v24 = vmax.f32 %v3422_v36, 0.0 }
 0x466   : > { %v3427_v32 = vpop.f32.mrf.mxu0 }
 0x467   : > { %v3428_v45 = vadd.f32 %v3427_v32, %v6709_v54  ;;  %v3445_v18 = vmax.f32 %v3424_v39, 0.0  ;;  %v3476_v4 = vmul.f32 %v6711_v29, %v3444_v24 }
 0x468   : > { %v3429_v21 = vpop.f32.mrf.mxu0 }
 0x469   : > { %v3446_v13 = vmax.f32 %v3428_v45, 0.0  ;;  %v3430_v48 = vadd.f32 %v3429_v21, %v6709_v54  ;;  %v3477_v54 = vmul.f32 %v6711_v29, %v3445_v18 }
 0x46a   : > { %v3433_v59 = vpop.f32.mrf.mxu0 }
 0x46b   : > { %v3447_v37 = vmax.f32 %v3430_v48, 0.0  ;;  %v3434_v17 = vadd.f32 %v3433_v59, %v6713_v19  ;;  %v3478_v9 = vmul.f32 %v3464_v15, %v3446_v13 }
 0x46c   : > { %v3435_v58 = vpop.f32.mrf.mxu0 }
 0x46d   : > { %v3448_v10 = vmax.f32 %v3434_v17, 0.0  ;;  %v3436_v0 = vadd.f32 %v3435_v58, %v6713_v19  ;;  %v3479_v49 = vmul.f32 %v3464_v15, %v3447_v37  ;;  %v3484_v1 = vadd.f32 %v3478_v9, %v3476_v4 }
 0x46e   : > { %v3439_v41 = vpop.f32.mrf.mxu0 }
 0x46f   : > { %v3449_v52 = vmax.f32 %v3436_v0, 0.0  ;;  %v3480_v5 = vmul.f32 %v3469_v44, %v3448_v10  ;;  %v3440_v12 = vadd.f32 %v3439_v41, %v3353_v3  ;;  %v3493_v26 = vadd.f32 %v3479_v49, %v3477_v54 }
 0x470   : > { %v3441_v62 = vpop.f32.mrf.mxu0 }
 0x471   : > { %v3481_v11 = vmul.f32 %v3469_v44, %v3449_v52  ;;  %v3450_v35 = vmax.f32 %v3440_v12, 0.0  ;;  %v3442_v31 = vadd.f32 %v3441_v62, %v3353_v3  ;;  %v3485_v28 = vadd.f32 %v3484_v1, %v3480_v5 }
 0x473   : > { %v3451_v14 = vmax.f32 %v3442_v31, 0.0  ;;  %v3482_v27 = vmul.f32 %v3474_v20, %v3450_v35  ;;  %v3494_v19 = vadd.f32 %v3493_v26, %v3481_v11 }
 0x475   : > { %v3483_v61 = vmul.f32 %v3474_v20, %v3451_v14  ;;  %v3486_v34 = vadd.f32 %v3485_v28, %v3482_v27 }
 0x477   : > { %v3487_v30 = vrot.slane %v3486_v34, 4  ;;  %v3495_v57 = vadd.f32 %v3494_v19, %v3483_v61 }
 0x479   : > { %v3488_v8 = vadd.f32 %v3487_v30, %v3486_v34  ;;  %v3496_v60 = vrot.slane %v3495_v57, 4 }
 0x47b   : > { %v3489_v29 = vrot.slane %v3488_v8, 2  ;;  %v3497_v2 = vadd.f32 %v3496_v60, %v3495_v57 }
 0x47d   : > { %v3498_v25 = vrot.slane %v3497_v2, 2  ;;  %v3490_v47 = vadd.f32 %v3489_v29, %v3488_v8 }
 0x47f   : > { %v3491_v50 = vrot.slane %v3490_v47, 1  ;;  %v3499_v7 = vadd.f32 %v3498_v25, %v3497_v2 }
 0x481   : > { %v3492_v33 = vadd.f32 %v3491_v50, %v3490_v47  ;;  %v3500_v46 = vrot.slane %v3499_v7, 1 }
 0x483   : > { %v3501_v23 = vadd.f32 %v3500_v46, %v3499_v7  ;;  %v3512_v42 = vadd.f32 %v3511_v6, %v3492_v33 }
 0x485   : > { %v3513_v63 = vadd.f32 %v3511_v6, %v3501_v23 }
 0x487   : > { %v3516_v40 = vcombine.low %v3512_v42, %v3513_v63 }
 0x489   : > { %v3523_v16 = vrot.slane %v3516_v40, %v6717_v55 }
 0x48b   : > { %v3530_v51 = vrot.slane %v3523_v16, %v6717_v55 }
 0x48d   : > { %3532 = vst.msk [vmem:[%s6728_s14 + $0x2] sm:$0x3] %vm6721_vm0, %v3530_v51 }
 0x48e   : > { %4350 = shalt.err (!%p4347_p13)
}
 0x48f   : > { %s4351_s20 = scalar_lea.hbm %s3546_s19, 64  ;;  %s4355_s22 = scalar_lea.hbm %s6829_s7, 128 }
 0x490   : > { %p4352_p5 = scmp.ne.s32.totalorder %s3546_s19, %s4351_s20  ;;  %p4356_p8 = scmp.lt.s32.totalorder %s3546_s19, %s6829_s7 }
 0x491   : > { %p4357_p3 = scmp.lt.s32.totalorder %s4355_s22, %s4351_s20 }
 0x492   : > { %p4353_p10 = pnand %p4352_p5, %p6921_p1 }
 0x493   : > { %p4358_p11 = por %p4357_p3, %p4356_p8 }
 0x494   : > { %p4354_p4 = pneg %p4353_p10 }
 0x496   : > { %p4359_p0 = pnand %p4358_p11, %p4354_p4 }
 0x498   : > { %4362 = shalt.err (!%p4359_p0)
}
 0x499   : > { %4193 = dma.vmem_to_hbm [thread:$0]  (%p6921_p1), %s3549_s2, 64, %s3546_s19, %s3534_s30  }
 0x49a PF: > { %s3560_s14 = sand.u32 1, %s4393_s26   ;;  %p6922_p2 = scmp.ne.s32.totalorder %s6850_s9, 0 }
 0x49b   : > { %p6923_p6 = scmp.ge.s32.totalorder %s4405_s29, 2  ;;  %s3561_s25 = scalar_lea.sflag [#allocation6], %s3560_s14 }
 0x49d   : > { %p4207_p12 = pnand %p6923_p6, %p6922_p2 }
 0x49f   : > { %p4208_p7 = pneg %p4207_p12 }
 0x4a1   : > { %4388 = dma.done.wait (%p4208_p7), %s3561_s25, 64  }
 0x4a2   : > { %4390 = vsyncadd (%p4208_p7), %s3561_s25, 4294967232  ;;  %p23_p9 = scmp.ge.s32.totalorder %s4531_s24, 4   ;;  %s6924_s26 = smov %s4397_s27 }
 0x4a3   : > { %s6925_s27 = smov %s4401_s28  ;;  %s6926_s28 = smov %s4547_s12 }
 0x4a4   : > { %s6927_s29 = smov %s4531_s24  ;;  %25 = sbr.rel (!%p23_p9) target bundleno = 9 (0x9), region = 104 }
 0x4a9   :  { %3566 = vsyncpa [#allocation5], 1 }
 0x4aa   :  { %3568 = vsyncpa [#allocation5 + $0x1], 1 }
 0x4ab   :  { %3569 = vsyncpa [#allocation8], 1 }
 0x4ac   :  { %3570 = vsyncpa [#allocation6], 1 }
 0x4ad   :  { %3572 = vsyncpa [#allocation6 + $0x1], 1 }

</bundles_post_ra>
